<compile_context>
chip_gen: v6e
topology: v6e:2x2x1
jax: 0.10.0
libtpu: 0.0.40
codegen_flags: <defaults>
</compile_context>

<pallas_src>
import jax
import jax.numpy as jnp
from jax import lax
from jax.experimental import pallas as pl
from jax.experimental.pallas import tpu as pltpu


# fixed by the module definition: Conv1d(14, 20, 10, 5), AvgPool1d(5, 3)
CONV_IN, CONV_OUT, CONV_K, CONV_S = 14, 20, 10, 5
POOL_K, POOL_S = 5, 3


# ----------------------------- Pallas kernel ------------------------------- #

def fused_kernel(x_ref, wih_ref, whh_ref, b_ref, bcp_ref, bf_ref,
                 wcp_hbm_ref, wf_hbm_ref,
                 out_ref,
                 wcp_vmem, wf_vmem, dma_sems, hs_ref):
    """Fused LSTM(1,H) recurrence + Conv1d + AvgPool1d + ReLU + fc1 + ReLU.

    x_ref:       (T, FP, 1)     padded cat(s, a), unsqueezed           [VMEM]
    wih_ref:     (1, 4*HP)      W_ih^T packed per gate [i|f|o|g], f32  [VMEM]
    whh_ref:     (HP, 4*HP)     W_hh^T packed per gate, bf16           [VMEM]
    b_ref:       (1, 4*HP)      b_ih + b_hh packed per gate, f32       [VMEM]
    bcp_ref:     (1, JP)        pooled conv bias, f32                  [VMEM]
    bf_ref:      (1, OP)        fc1 bias, f32                          [VMEM]
    wcp_hbm_ref: (F, HP, JP)    folded Conv1d+AvgPool1d weight, bf16   [ANY/HBM]
    wf_hbm_ref:  (JP, OP)       fc1 weight (transposed), bf16          [ANY/HBM]
    out_ref:     (T, OP)        ReLU(fc1(...)), lane-dense             [VMEM]
    wcp_vmem/wf_vmem:           VMEM landing buffers for the manual DMAs
    dma_sems:    DMA sems (2,)
    hs_ref:      (T, FP, HP)    VMEM scratch: per-step hidden states (f32)
    """
    T, FP, HP = hs_ref.shape
    F = wcp_vmem.shape[0]                 # real (unpadded) channel count
    JP = wcp_vmem.shape[2]

    # Kick off the epilogue-weight DMAs; they overlap the serial recurrence.
    cp_wcp = pltpu.make_async_copy(wcp_hbm_ref, wcp_vmem, dma_sems.at[0])
    cp_wf = pltpu.make_async_copy(wf_hbm_ref, wf_vmem, dma_sems.at[1])
    cp_wcp.start()
    cp_wf.start()

    wih = wih_ref[...]                    # (1, 4*HP) tiny
    b = b_ref[...]                        # (1, 4*HP) tiny

    h = jnp.zeros((FP, HP), jnp.float32)
    c = jnp.zeros((FP, HP), jnp.float32)
    for t in range(T):                    # T is small and static -> full unroll
        # x-dependent gate term recomputed per step (cheap VPU FMA, no scratch).
        pre = x_ref[t] * wih + b                                    # (FP, 4*HP) f32
        gates = pre + jnp.dot(h.astype(jnp.bfloat16), whh_ref[...],
                              preferred_element_type=jnp.float32)   # bf16 MXU, f32 acc
        sig = jax.nn.sigmoid(gates[:, :3 * HP])     # [i | f | o] in one EUP slice
        i_g = sig[:, 0 * HP:1 * HP]
        f_g = sig[:, 1 * HP:2 * HP]
        o_g = sig[:, 2 * HP:3 * HP]
        g_g = jnp.tanh(gates[:, 3 * HP:4 * HP])
        c = f_g * c + i_g * g_g
        h = o_g * jnp.tanh(c)
        hs_ref[t] = h                     # stays in VMEM; never goes to HBM

    # Epilogue weights must be resident now.
    cp_wcp.wait()
    cp_wf.wait()

    # Conv1d(14->20,k10,s5) + AvgPool1d(5,3) folded into per-channel linear
    # maps; contract over channels as 14 accumulated (T,HP)x(HP,JP) matmuls
    # (no lane concatenation / relayout), then ReLU, fc1, ReLU.
    acc = jnp.zeros((T, JP), jnp.float32)
    for ch in range(F):
        acc = acc + jnp.dot(hs_ref[:, ch, :].astype(jnp.bfloat16), wcp_vmem[ch],
                            preferred_element_type=jnp.float32)
    feat = jnp.maximum(acc + bcp_ref[...], 0.0)                     # (T, JP)
    pred = jnp.dot(feat.astype(jnp.bfloat16), wf_vmem[...],
                   preferred_element_type=jnp.float32) + bf_ref[...]
    out_ref[...] = jnp.maximum(pred, 0.0)                           # (T, OP)


# ------------------------------ JAX wrapper -------------------------------- #

@jax.jit
def lstm_cnn_critic_net(s, a, params):
    """s: (T, state_dim), a: (T, action_dim).  Returns (T, action_dim)."""
    w_ih, w_hh, b_ih, b_hh, wc, bc, wf, bf = params
    f32, bf16 = jnp.float32, jnp.bfloat16

    T = s.shape[0]
    F = s.shape[1] + a.shape[1]                  # 14, must equal Conv1d in_channels
    H = w_hh.shape[1]                            # hidden_layer_size
    L_CONV = (H - CONV_K) // CONV_S + 1
    L_POOL = (L_CONV - POOL_K) // POOL_S + 1
    J = CONV_OUT * L_POOL                        # flattened CNN features
    A = wf.shape[0]                              # action_dim

    HP = ((H + 127) // 128) * 128                # 100 -> 128 (lane-dense gates)
    FP = ((F + 7) // 8) * 8                      # 14  -> 16  (sublane-aligned rows)
    JP = ((J + 127) // 128) * 128                # 100 -> 128
    OP = ((A + 127) // 128) * 128                # 4   -> 128 (lane-dense output)

    # ---- LSTM params: reorder torch gates [i,f,g,o] -> [i,f,o,g] and pack ----
    perm = jnp.array([0, 1, 3, 2])               # three sigmoid gates contiguous
    wih_p = jnp.pad(w_ih.reshape(4, H)[perm], ((0, 0), (0, HP - H))) \
        .reshape(1, 4 * HP).astype(f32)
    b_p = jnp.pad((b_ih + b_hh).reshape(4, H)[perm], ((0, 0), (0, HP - H))) \
        .reshape(1, 4 * HP).astype(f32)
    whh4 = w_hh.reshape(4, H, H)[perm].transpose(2, 0, 1)    # (in, gate, out) = W_hh^T per gate
    whh_p = jnp.pad(whh4, ((0, HP - H), (0, 0), (0, HP - H))) \
        .reshape(HP, 4 * HP).astype(bf16)

    # ---- Conv1d + AvgPool1d folded into per-channel linear maps (F, HP, JP) ----
    # pool[t, oc, q] = bc[oc] + (1/5) * sum_{w,c,k} h[t, c, (q*3+w)*5 + k] * wc[oc, c, k]
    # NOTE: ~80% of this folded weight is structural zeros; further trimming
    # (per-q 30-wide windows) is possible if the kernel remains DMA-bound.
    wc_t = wc.transpose(1, 2, 0).astype(f32)                 # (F, K, C_OUT)
    wcp = jnp.zeros((F, H, CONV_OUT, L_POOL), f32)
    for q in range(L_POOL):
        for w in range(POOL_K):
            p0 = (q * POOL_S + w) * CONV_S
            wcp = wcp.at[:, p0:p0 + CONV_K, :, q].add(wc_t / POOL_K)
    wcp_p = jnp.pad(wcp.reshape(F, H, J),
                    ((0, 0), (0, HP - H), (0, JP - J))).astype(bf16)   # (F, HP, JP)
    bcp_p = jnp.pad(jnp.repeat(bc, L_POOL), (0, JP - J)).reshape(1, JP).astype(f32)

    # ---- fc1 ----
    # TODO(synk): the original module declares fc1 = Linear(H*(state_dim+action_dim), A),
    # which is dimensionally inconsistent with the CNN output (20*L_pool); fc1 is sized
    # to the actual flattened CNN output so the forward pass is well defined.
    wf_p = jnp.pad(wf.T, ((0, JP - J), (0, OP - A))).astype(bf16)       # (JP, OP)
    bf_p = jnp.pad(bf, (0, OP - A)).reshape(1, OP).astype(f32)

    # ---- input: cat(s, a) -> (T, F) -> zero padded (T, FP, 1) ----
    x = jnp.concatenate([s, a], axis=1).astype(f32)
    x3 = jnp.pad(x, ((0, 0), (0, FP - F)))[:, :, None]

    vmem = pl.BlockSpec(memory_space=pltpu.MemorySpace.VMEM)
    hbm = pl.BlockSpec(memory_space=pl.ANY)     # manual DMA inside the kernel

    out_pad = pl.pallas_call(
        fused_kernel,
        out_shape=jax.ShapeDtypeStruct((T, OP), f32),
        in_specs=[vmem, vmem, vmem, vmem, vmem, vmem, hbm, hbm],
        out_specs=vmem,
        scratch_shapes=[
            pltpu.VMEM((F, HP, JP), bf16),      # folded conv+pool weight landing buffer
            pltpu.VMEM((JP, OP), bf16),         # fc1 weight landing buffer
            pltpu.SemaphoreType.DMA((2,)),      # DMA completion semaphores
            pltpu.VMEM((T, FP, HP), f32),       # hidden states (stay on-chip)
        ],
    )(x3, wih_p, whh_p, b_p, bcp_p, bf_p, wcp_p, wf_p)
    return out_pad[:, :A]


# -------------------------- pure-JAX reference ----------------------------- #

def reference_forward(s, a, params):
    w_ih, w_hh, b_ih, b_hh, wc, bc, wf, bf = params
    x = jnp.concatenate([s, a], axis=1).astype(jnp.float32)   # (T, F)
    T, F = x.shape
    H = w_hh.shape[1]
    hp = jax.lax.Precision.HIGHEST
    h = jnp.zeros((F, H), jnp.float32)
    c = jnp.zeros((F, H), jnp.float32)
    outs = []
    for t in range(T):
        xt = x[t][:, None]
        gates = (jnp.dot(xt, w_ih.T, precision=hp)
                 + jnp.dot(h, w_hh.T, precision=hp) + b_ih + b_hh)
        i = jax.nn.sigmoid(gates[:, 0:H])
        f = jax.nn.sigmoid(gates[:, H:2 * H])
        g = jnp.tanh(gates[:, 2 * H:3 * H])
        o = jax.nn.sigmoid(gates[:, 3 * H:4 * H])
        c = f * c + i * g
        h = o * jnp.tanh(c)
        outs.append(h)
    lstm_out = jnp.stack(outs, axis=0)                        # (T, F, H)
    conv = lax.conv_general_dilated(
        lstm_out, wc, window_strides=(CONV_S,), padding="VALID",
        dimension_numbers=("NCH", "OIH", "NCH"), precision=hp)
    conv = conv + bc[None, :, None]                           # (T, 20, L_conv)
    L_conv = conv.shape[2]
    L_pool = (L_conv - POOL_K) // POOL_S + 1
    pool = jnp.stack([conv[:, :, q * POOL_S:q * POOL_S + POOL_K].mean(axis=2)
                      for q in range(L_pool)], axis=2)        # (T, 20, L_pool)
    cnn_out = jnp.maximum(pool, 0.0)
    fc_in = cnn_out.reshape(T, -1)
    pred = jnp.dot(fc_in, wf.T, precision=hp) + bf
    return jnp.maximum(pred, 0.0)


# ---------------------------------- main ------------------------------------ #

if __name__ == "__main__":
    T, STATE_DIM, ACTION_DIM, H = 8, 10, 4, 100     # state+action = 14 = Conv1d in_channels
    L_CONV = (H - CONV_K) // CONV_S + 1             # 19
    L_POOL = (L_CONV - POOL_K) // POOL_S + 1        # 5

    key = jax.random.PRNGKey(0)
    ks = jax.random.split(key, 10)
    u = lambda k, shape, sc=0.1: jax.random.uniform(k, shape, jnp.float32, -sc, sc)

    w_ih = u(ks[0], (4 * H, 1))                     # nn.LSTM(1, H): weight_ih_l0
    w_hh = u(ks[1], (4 * H, H))                     # weight_hh_l0
    b_ih = u(ks[2], (4 * H,))
    b_hh = u(ks[3], (4 * H,))
    wc = u(ks[4], (CONV_OUT, CONV_IN, CONV_K))      # Conv1d(14, 20, 10, 5).weight
    bc = u(ks[5], (CONV_OUT,))
    wf = u(ks[6], (ACTION_DIM, CONV_OUT * L_POOL))  # fc1 sized to actual CNN output
    bf = u(ks[7], (ACTION_DIM,))
    s_in = jax.random.uniform(ks[8], (T, STATE_DIM), jnp.float32, -1.0, 1.0)
    a_in = jax.random.uniform(ks[9], (T, ACTION_DIM), jnp.float32, -1.0, 1.0)
    params = (w_ih, w_hh, b_ih, b_hh, wc, bc, wf, bf)

    out = lstm_cnn_critic_net(s_in, a_in, params)
    out = jax.block_until_ready(out)
    assert out.shape == (T, ACTION_DIM)

    ref = reference_forward(s_in, a_in, params)
    max_err = float(jnp.max(jnp.abs(out - ref)))
    if max_err > 1e-2:
        raise AssertionError(f"mismatch vs reference: max abs err {max_err}")

    print("KERNEL_OK")
</pallas_src>

<mosaic_0001>
module attributes {stable_mosaic.version = 11 : i64} {
  func.func @fused_kernel(%arg0: memref<8x16x1xf32, #tpu.memory_space<vmem>>, %arg1: memref<1x512xf32, #tpu.memory_space<vmem>>, %arg2: memref<128x512xbf16, #tpu.memory_space<vmem>>, %arg3: memref<1x512xf32, #tpu.memory_space<vmem>>, %arg4: memref<1x128xf32, #tpu.memory_space<vmem>>, %arg5: memref<1x128xf32, #tpu.memory_space<vmem>>, %arg6: memref<14x128x128xbf16, #tpu.memory_space<any>>, %arg7: memref<128x128xbf16, #tpu.memory_space<any>>, %arg8: memref<8x128xf32, #tpu.memory_space<vmem>>, %arg9: memref<14x128x128xbf16, #tpu.memory_space<vmem>>, %arg10: memref<128x128xbf16, #tpu.memory_space<vmem>>, %arg11: memref<2x!tpu.dma_semaphore, #tpu.memory_space<semaphore_mem>>, %arg12: memref<8x16x128xf32, #tpu.memory_space<vmem>>) attributes {dimension_semantics = [], scalar_prefetch = 0 : i64, scratch_operands = 4 : i64, tpu.core_type = #tpu.core_type<tc>} {
    %c0_i32 = arith.constant 0 : i32
    %0 = tpu.memref_slice %arg11[%c0_i32] : memref<2x!tpu.dma_semaphore, #tpu.memory_space<semaphore_mem>> -> memref<1x!tpu.dma_semaphore, #tpu.memory_space<semaphore_mem>>
    %1 = tpu.memref_squeeze %0 : memref<1x!tpu.dma_semaphore, #tpu.memory_space<semaphore_mem>> -> memref<!tpu.dma_semaphore, #tpu.memory_space<semaphore_mem>>
    tpu.enqueue_dma source(%arg6 : memref<14x128x128xbf16, #tpu.memory_space<any>>) target(%arg9 : memref<14x128x128xbf16, #tpu.memory_space<vmem>>) target_semaphore(%1 : memref<!tpu.dma_semaphore, #tpu.memory_space<semaphore_mem>>)
    %c1_i32 = arith.constant 1 : i32
    %2 = tpu.memref_slice %arg11[%c1_i32] : memref<2x!tpu.dma_semaphore, #tpu.memory_space<semaphore_mem>> -> memref<1x!tpu.dma_semaphore, #tpu.memory_space<semaphore_mem>>
    %3 = tpu.memref_squeeze %2 : memref<1x!tpu.dma_semaphore, #tpu.memory_space<semaphore_mem>> -> memref<!tpu.dma_semaphore, #tpu.memory_space<semaphore_mem>>
    tpu.enqueue_dma source(%arg7 : memref<128x128xbf16, #tpu.memory_space<any>>) target(%arg10 : memref<128x128xbf16, #tpu.memory_space<vmem>>) target_semaphore(%3 : memref<!tpu.dma_semaphore, #tpu.memory_space<semaphore_mem>>)
    %c0 = arith.constant 0 : index
    %c0_0 = arith.constant 0 : index
    %4 = vector.load %arg1[%c0, %c0_0] : memref<1x512xf32, #tpu.memory_space<vmem>>, vector<1x512xf32>
    %c0_1 = arith.constant 0 : index
    %c0_2 = arith.constant 0 : index
    %5 = vector.load %arg3[%c0_1, %c0_2] : memref<1x512xf32, #tpu.memory_space<vmem>>, vector<1x512xf32>
    %cst = arith.constant 0.000000e+00 : f32
    %6 = vector.broadcast %cst : f32 to vector<16x128xf32>
    %cst_3 = arith.constant 0.000000e+00 : f32
    %7 = vector.broadcast %cst_3 : f32 to vector<16x128xf32>
    %c0_4 = arith.constant 0 : index
    %c0_5 = arith.constant 0 : index
    %c0_6 = arith.constant 0 : index
    %8 = vector.load %arg0[%c0_4, %c0_5, %c0_6] : memref<8x16x1xf32, #tpu.memory_space<vmem>>, vector<1x16x1xf32>
    %9 = vector.shape_cast %8 : vector<1x16x1xf32> to vector<16x1xf32>
    %10 = vector.broadcast %9 : vector<16x1xf32> to vector<16x512xf32>
    %11 = vector.broadcast %4 : vector<1x512xf32> to vector<16x512xf32>
    %12 = arith.mulf %10, %11 : vector<16x512xf32>
    %13 = vector.broadcast %5 : vector<1x512xf32> to vector<16x512xf32>
    %14 = arith.addf %12, %13 : vector<16x512xf32>
    %15 = arith.truncf %6 : vector<16x128xf32> to vector<16x128xbf16>
    %c0_7 = arith.constant 0 : index
    %c0_8 = arith.constant 0 : index
    %16 = vector.load %arg2[%c0_7, %c0_8] : memref<128x512xbf16, #tpu.memory_space<vmem>>, vector<128x512xbf16>
    %cst_9 = arith.constant dense<0.000000e+00> : vector<16x512xf32>
    %17 = tpu.matmul %15, %16, %cst_9 {dimension_numbers = #tpu.dot_dimension_numbers<[1], [0], [0], [1], [0, 0, 1, 1], [], []>} : vector<16x128xbf16>, vector<128x512xbf16>, vector<16x512xf32> -> vector<16x512xf32>
    %18 = arith.addf %14, %17 : vector<16x512xf32>
    %19 = vector.extract_strided_slice %18 {offsets = [0, 0], sizes = [16, 384], strides = [1, 1]} : vector<16x512xf32> to vector<16x384xf32>
    %20 = arith.negf %19 : vector<16x384xf32>
    %21 = math.exp %20 : vector<16x384xf32>
    %cst_10 = arith.constant 1.000000e+00 : f32
    %22 = vector.broadcast %cst_10 : f32 to vector<16x384xf32>
    %23 = arith.addf %22, %21 : vector<16x384xf32>
    %24 = arith.divf %22, %23 : vector<16x384xf32>
    %25 = vector.extract_strided_slice %24 {offsets = [0, 0], sizes = [16, 128], strides = [1, 1]} : vector<16x384xf32> to vector<16x128xf32>
    %26 = vector.extract_strided_slice %24 {offsets = [0, 128], sizes = [16, 128], strides = [1, 1]} : vector<16x384xf32> to vector<16x128xf32>
    %27 = vector.extract_strided_slice %24 {offsets = [0, 256], sizes = [16, 128], strides = [1, 1]} : vector<16x384xf32> to vector<16x128xf32>
    %28 = vector.extract_strided_slice %18 {offsets = [0, 384], sizes = [16, 128], strides = [1, 1]} : vector<16x512xf32> to vector<16x128xf32>
    %29 = math.tanh %28 : vector<16x128xf32>
    %30 = arith.mulf %26, %7 : vector<16x128xf32>
    %31 = arith.mulf %25, %29 : vector<16x128xf32>
    %32 = arith.addf %30, %31 : vector<16x128xf32>
    %33 = math.tanh %32 : vector<16x128xf32>
    %34 = arith.mulf %27, %33 : vector<16x128xf32>
    %c0_11 = arith.constant 0 : index
    %c0_12 = arith.constant 0 : index
    %c0_13 = arith.constant 0 : index
    %35 = vector.load %arg12[%c0_11, %c0_12, %c0_13] : memref<8x16x128xf32, #tpu.memory_space<vmem>>, vector<1x16x128xf32>
    %36 = vector.shape_cast %35 : vector<1x16x128xf32> to vector<16x128xf32>
    %37 = vector.shape_cast %34 : vector<16x128xf32> to vector<1x16x128xf32>
    tpu.vector_store %arg12[%c0_11, %c0_12, %c0_13], %37 {strides = array<i32>} : memref<8x16x128xf32, #tpu.memory_space<vmem>>, vector<1x16x128xf32>,
    %c1 = arith.constant 1 : index
    %c0_14 = arith.constant 0 : index
    %c0_15 = arith.constant 0 : index
    %38 = vector.load %arg0[%c1, %c0_14, %c0_15] : memref<8x16x1xf32, #tpu.memory_space<vmem>>, vector<1x16x1xf32>
    %39 = vector.shape_cast %38 : vector<1x16x1xf32> to vector<16x1xf32>
    %40 = vector.broadcast %39 : vector<16x1xf32> to vector<16x512xf32>
    %41 = vector.broadcast %4 : vector<1x512xf32> to vector<16x512xf32>
    %42 = arith.mulf %40, %41 : vector<16x512xf32>
    %43 = vector.broadcast %5 : vector<1x512xf32> to vector<16x512xf32>
    %44 = arith.addf %42, %43 : vector<16x512xf32>
    %45 = arith.truncf %34 : vector<16x128xf32> to vector<16x128xbf16>
    %c0_16 = arith.constant 0 : index
    %c0_17 = arith.constant 0 : index
    %46 = vector.load %arg2[%c0_16, %c0_17] : memref<128x512xbf16, #tpu.memory_space<vmem>>, vector<128x512xbf16>
    %cst_18 = arith.constant dense<0.000000e+00> : vector<16x512xf32>
    %47 = tpu.matmul %45, %46, %cst_18 {dimension_numbers = #tpu.dot_dimension_numbers<[1], [0], [0], [1], [0, 0, 1, 1], [], []>} : vector<16x128xbf16>, vector<128x512xbf16>, vector<16x512xf32> -> vector<16x512xf32>
    %48 = arith.addf %44, %47 : vector<16x512xf32>
    %49 = vector.extract_strided_slice %48 {offsets = [0, 0], sizes = [16, 384], strides = [1, 1]} : vector<16x512xf32> to vector<16x384xf32>
    %50 = arith.negf %49 : vector<16x384xf32>
    %51 = math.exp %50 : vector<16x384xf32>
    %cst_19 = arith.constant 1.000000e+00 : f32
    %52 = vector.broadcast %cst_19 : f32 to vector<16x384xf32>
    %53 = arith.addf %52, %51 : vector<16x384xf32>
    %54 = arith.divf %52, %53 : vector<16x384xf32>
    %55 = vector.extract_strided_slice %54 {offsets = [0, 0], sizes = [16, 128], strides = [1, 1]} : vector<16x384xf32> to vector<16x128xf32>
    %56 = vector.extract_strided_slice %54 {offsets = [0, 128], sizes = [16, 128], strides = [1, 1]} : vector<16x384xf32> to vector<16x128xf32>
    %57 = vector.extract_strided_slice %54 {offsets = [0, 256], sizes = [16, 128], strides = [1, 1]} : vector<16x384xf32> to vector<16x128xf32>
    %58 = vector.extract_strided_slice %48 {offsets = [0, 384], sizes = [16, 128], strides = [1, 1]} : vector<16x512xf32> to vector<16x128xf32>
    %59 = math.tanh %58 : vector<16x128xf32>
    %60 = arith.mulf %56, %32 : vector<16x128xf32>
    %61 = arith.mulf %55, %59 : vector<16x128xf32>
    %62 = arith.addf %60, %61 : vector<16x128xf32>
    %63 = math.tanh %62 : vector<16x128xf32>
    %64 = arith.mulf %57, %63 : vector<16x128xf32>
    %c1_20 = arith.constant 1 : index
    %c0_21 = arith.constant 0 : index
    %c0_22 = arith.constant 0 : index
    %65 = vector.load %arg12[%c1_20, %c0_21, %c0_22] : memref<8x16x128xf32, #tpu.memory_space<vmem>>, vector<1x16x128xf32>
    %66 = vector.shape_cast %65 : vector<1x16x128xf32> to vector<16x128xf32>
    %67 = vector.shape_cast %64 : vector<16x128xf32> to vector<1x16x128xf32>
    tpu.vector_store %arg12[%c1_20, %c0_21, %c0_22], %67 {strides = array<i32>} : memref<8x16x128xf32, #tpu.memory_space<vmem>>, vector<1x16x128xf32>,
    %c2 = arith.constant 2 : index
    %c0_23 = arith.constant 0 : index
    %c0_24 = arith.constant 0 : index
    %68 = vector.load %arg0[%c2, %c0_23, %c0_24] : memref<8x16x1xf32, #tpu.memory_space<vmem>>, vector<1x16x1xf32>
    %69 = vector.shape_cast %68 : vector<1x16x1xf32> to vector<16x1xf32>
    %70 = vector.broadcast %69 : vector<16x1xf32> to vector<16x512xf32>
    %71 = vector.broadcast %4 : vector<1x512xf32> to vector<16x512xf32>
    %72 = arith.mulf %70, %71 : vector<16x512xf32>
    %73 = vector.broadcast %5 : vector<1x512xf32> to vector<16x512xf32>
    %74 = arith.addf %72, %73 : vector<16x512xf32>
    %75 = arith.truncf %64 : vector<16x128xf32> to vector<16x128xbf16>
    %c0_25 = arith.constant 0 : index
    %c0_26 = arith.constant 0 : index
    %76 = vector.load %arg2[%c0_25, %c0_26] : memref<128x512xbf16, #tpu.memory_space<vmem>>, vector<128x512xbf16>
    %cst_27 = arith.constant dense<0.000000e+00> : vector<16x512xf32>
    %77 = tpu.matmul %75, %76, %cst_27 {dimension_numbers = #tpu.dot_dimension_numbers<[1], [0], [0], [1], [0, 0, 1, 1], [], []>} : vector<16x128xbf16>, vector<128x512xbf16>, vector<16x512xf32> -> vector<16x512xf32>
    %78 = arith.addf %74, %77 : vector<16x512xf32>
    %79 = vector.extract_strided_slice %78 {offsets = [0, 0], sizes = [16, 384], strides = [1, 1]} : vector<16x512xf32> to vector<16x384xf32>
    %80 = arith.negf %79 : vector<16x384xf32>
    %81 = math.exp %80 : vector<16x384xf32>
    %cst_28 = arith.constant 1.000000e+00 : f32
    %82 = vector.broadcast %cst_28 : f32 to vector<16x384xf32>
    %83 = arith.addf %82, %81 : vector<16x384xf32>
    %84 = arith.divf %82, %83 : vector<16x384xf32>
    %85 = vector.extract_strided_slice %84 {offsets = [0, 0], sizes = [16, 128], strides = [1, 1]} : vector<16x384xf32> to vector<16x128xf32>
    %86 = vector.extract_strided_slice %84 {offsets = [0, 128], sizes = [16, 128], strides = [1, 1]} : vector<16x384xf32> to vector<16x128xf32>
    %87 = vector.extract_strided_slice %84 {offsets = [0, 256], sizes = [16, 128], strides = [1, 1]} : vector<16x384xf32> to vector<16x128xf32>
    %88 = vector.extract_strided_slice %78 {offsets = [0, 384], sizes = [16, 128], strides = [1, 1]} : vector<16x512xf32> to vector<16x128xf32>
    %89 = math.tanh %88 : vector<16x128xf32>
    %90 = arith.mulf %86, %62 : vector<16x128xf32>
    %91 = arith.mulf %85, %89 : vector<16x128xf32>
    %92 = arith.addf %90, %91 : vector<16x128xf32>
    %93 = math.tanh %92 : vector<16x128xf32>
    %94 = arith.mulf %87, %93 : vector<16x128xf32>
    %c2_29 = arith.constant 2 : index
    %c0_30 = arith.constant 0 : index
    %c0_31 = arith.constant 0 : index
    %95 = vector.load %arg12[%c2_29, %c0_30, %c0_31] : memref<8x16x128xf32, #tpu.memory_space<vmem>>, vector<1x16x128xf32>
    %96 = vector.shape_cast %95 : vector<1x16x128xf32> to vector<16x128xf32>
    %97 = vector.shape_cast %94 : vector<16x128xf32> to vector<1x16x128xf32>
    tpu.vector_store %arg12[%c2_29, %c0_30, %c0_31], %97 {strides = array<i32>} : memref<8x16x128xf32, #tpu.memory_space<vmem>>, vector<1x16x128xf32>,
    %c3 = arith.constant 3 : index
    %c0_32 = arith.constant 0 : index
    %c0_33 = arith.constant 0 : index
    %98 = vector.load %arg0[%c3, %c0_32, %c0_33] : memref<8x16x1xf32, #tpu.memory_space<vmem>>, vector<1x16x1xf32>
    %99 = vector.shape_cast %98 : vector<1x16x1xf32> to vector<16x1xf32>
    %100 = vector.broadcast %99 : vector<16x1xf32> to vector<16x512xf32>
    %101 = vector.broadcast %4 : vector<1x512xf32> to vector<16x512xf32>
    %102 = arith.mulf %100, %101 : vector<16x512xf32>
    %103 = vector.broadcast %5 : vector<1x512xf32> to vector<16x512xf32>
    %104 = arith.addf %102, %103 : vector<16x512xf32>
    %105 = arith.truncf %94 : vector<16x128xf32> to vector<16x128xbf16>
    %c0_34 = arith.constant 0 : index
    %c0_35 = arith.constant 0 : index
    %106 = vector.load %arg2[%c0_34, %c0_35] : memref<128x512xbf16, #tpu.memory_space<vmem>>, vector<128x512xbf16>
    %cst_36 = arith.constant dense<0.000000e+00> : vector<16x512xf32>
    %107 = tpu.matmul %105, %106, %cst_36 {dimension_numbers = #tpu.dot_dimension_numbers<[1], [0], [0], [1], [0, 0, 1, 1], [], []>} : vector<16x128xbf16>, vector<128x512xbf16>, vector<16x512xf32> -> vector<16x512xf32>
    %108 = arith.addf %104, %107 : vector<16x512xf32>
    %109 = vector.extract_strided_slice %108 {offsets = [0, 0], sizes = [16, 384], strides = [1, 1]} : vector<16x512xf32> to vector<16x384xf32>
    %110 = arith.negf %109 : vector<16x384xf32>
    %111 = math.exp %110 : vector<16x384xf32>
    %cst_37 = arith.constant 1.000000e+00 : f32
    %112 = vector.broadcast %cst_37 : f32 to vector<16x384xf32>
    %113 = arith.addf %112, %111 : vector<16x384xf32>
    %114 = arith.divf %112, %113 : vector<16x384xf32>
    %115 = vector.extract_strided_slice %114 {offsets = [0, 0], sizes = [16, 128], strides = [1, 1]} : vector<16x384xf32> to vector<16x128xf32>
    %116 = vector.extract_strided_slice %114 {offsets = [0, 128], sizes = [16, 128], strides = [1, 1]} : vector<16x384xf32> to vector<16x128xf32>
    %117 = vector.extract_strided_slice %114 {offsets = [0, 256], sizes = [16, 128], strides = [1, 1]} : vector<16x384xf32> to vector<16x128xf32>
    %118 = vector.extract_strided_slice %108 {offsets = [0, 384], sizes = [16, 128], strides = [1, 1]} : vector<16x512xf32> to vector<16x128xf32>
    %119 = math.tanh %118 : vector<16x128xf32>
    %120 = arith.mulf %116, %92 : vector<16x128xf32>
    %121 = arith.mulf %115, %119 : vector<16x128xf32>
    %122 = arith.addf %120, %121 : vector<16x128xf32>
    %123 = math.tanh %122 : vector<16x128xf32>
    %124 = arith.mulf %117, %123 : vector<16x128xf32>
    %c3_38 = arith.constant 3 : index
    %c0_39 = arith.constant 0 : index
    %c0_40 = arith.constant 0 : index
    %125 = vector.load %arg12[%c3_38, %c0_39, %c0_40] : memref<8x16x128xf32, #tpu.memory_space<vmem>>, vector<1x16x128xf32>
    %126 = vector.shape_cast %125 : vector<1x16x128xf32> to vector<16x128xf32>
    %127 = vector.shape_cast %124 : vector<16x128xf32> to vector<1x16x128xf32>
    tpu.vector_store %arg12[%c3_38, %c0_39, %c0_40], %127 {strides = array<i32>} : memref<8x16x128xf32, #tpu.memory_space<vmem>>, vector<1x16x128xf32>,
    %c4 = arith.constant 4 : index
    %c0_41 = arith.constant 0 : index
    %c0_42 = arith.constant 0 : index
    %128 = vector.load %arg0[%c4, %c0_41, %c0_42] : memref<8x16x1xf32, #tpu.memory_space<vmem>>, vector<1x16x1xf32>
    %129 = vector.shape_cast %128 : vector<1x16x1xf32> to vector<16x1xf32>
    %130 = vector.broadcast %129 : vector<16x1xf32> to vector<16x512xf32>
    %131 = vector.broadcast %4 : vector<1x512xf32> to vector<16x512xf32>
    %132 = arith.mulf %130, %131 : vector<16x512xf32>
    %133 = vector.broadcast %5 : vector<1x512xf32> to vector<16x512xf32>
    %134 = arith.addf %132, %133 : vector<16x512xf32>
    %135 = arith.truncf %124 : vector<16x128xf32> to vector<16x128xbf16>
    %c0_43 = arith.constant 0 : index
    %c0_44 = arith.constant 0 : index
    %136 = vector.load %arg2[%c0_43, %c0_44] : memref<128x512xbf16, #tpu.memory_space<vmem>>, vector<128x512xbf16>
    %cst_45 = arith.constant dense<0.000000e+00> : vector<16x512xf32>
    %137 = tpu.matmul %135, %136, %cst_45 {dimension_numbers = #tpu.dot_dimension_numbers<[1], [0], [0], [1], [0, 0, 1, 1], [], []>} : vector<16x128xbf16>, vector<128x512xbf16>, vector<16x512xf32> -> vector<16x512xf32>
    %138 = arith.addf %134, %137 : vector<16x512xf32>
    %139 = vector.extract_strided_slice %138 {offsets = [0, 0], sizes = [16, 384], strides = [1, 1]} : vector<16x512xf32> to vector<16x384xf32>
    %140 = arith.negf %139 : vector<16x384xf32>
    %141 = math.exp %140 : vector<16x384xf32>
    %cst_46 = arith.constant 1.000000e+00 : f32
    %142 = vector.broadcast %cst_46 : f32 to vector<16x384xf32>
    %143 = arith.addf %142, %141 : vector<16x384xf32>
    %144 = arith.divf %142, %143 : vector<16x384xf32>
    %145 = vector.extract_strided_slice %144 {offsets = [0, 0], sizes = [16, 128], strides = [1, 1]} : vector<16x384xf32> to vector<16x128xf32>
    %146 = vector.extract_strided_slice %144 {offsets = [0, 128], sizes = [16, 128], strides = [1, 1]} : vector<16x384xf32> to vector<16x128xf32>
    %147 = vector.extract_strided_slice %144 {offsets = [0, 256], sizes = [16, 128], strides = [1, 1]} : vector<16x384xf32> to vector<16x128xf32>
    %148 = vector.extract_strided_slice %138 {offsets = [0, 384], sizes = [16, 128], strides = [1, 1]} : vector<16x512xf32> to vector<16x128xf32>
    %149 = math.tanh %148 : vector<16x128xf32>
    %150 = arith.mulf %146, %122 : vector<16x128xf32>
    %151 = arith.mulf %145, %149 : vector<16x128xf32>
    %152 = arith.addf %150, %151 : vector<16x128xf32>
    %153 = math.tanh %152 : vector<16x128xf32>
    %154 = arith.mulf %147, %153 : vector<16x128xf32>
    %c4_47 = arith.constant 4 : index
    %c0_48 = arith.constant 0 : index
    %c0_49 = arith.constant 0 : index
    %155 = vector.load %arg12[%c4_47, %c0_48, %c0_49] : memref<8x16x128xf32, #tpu.memory_space<vmem>>, vector<1x16x128xf32>
    %156 = vector.shape_cast %155 : vector<1x16x128xf32> to vector<16x128xf32>
    %157 = vector.shape_cast %154 : vector<16x128xf32> to vector<1x16x128xf32>
    tpu.vector_store %arg12[%c4_47, %c0_48, %c0_49], %157 {strides = array<i32>} : memref<8x16x128xf32, #tpu.memory_space<vmem>>, vector<1x16x128xf32>,
    %c5 = arith.constant 5 : index
    %c0_50 = arith.constant 0 : index
    %c0_51 = arith.constant 0 : index
    %158 = vector.load %arg0[%c5, %c0_50, %c0_51] : memref<8x16x1xf32, #tpu.memory_space<vmem>>, vector<1x16x1xf32>
    %159 = vector.shape_cast %158 : vector<1x16x1xf32> to vector<16x1xf32>
    %160 = vector.broadcast %159 : vector<16x1xf32> to vector<16x512xf32>
    %161 = vector.broadcast %4 : vector<1x512xf32> to vector<16x512xf32>
    %162 = arith.mulf %160, %161 : vector<16x512xf32>
    %163 = vector.broadcast %5 : vector<1x512xf32> to vector<16x512xf32>
    %164 = arith.addf %162, %163 : vector<16x512xf32>
    %165 = arith.truncf %154 : vector<16x128xf32> to vector<16x128xbf16>
    %c0_52 = arith.constant 0 : index
    %c0_53 = arith.constant 0 : index
    %166 = vector.load %arg2[%c0_52, %c0_53] : memref<128x512xbf16, #tpu.memory_space<vmem>>, vector<128x512xbf16>
    %cst_54 = arith.constant dense<0.000000e+00> : vector<16x512xf32>
    %167 = tpu.matmul %165, %166, %cst_54 {dimension_numbers = #tpu.dot_dimension_numbers<[1], [0], [0], [1], [0, 0, 1, 1], [], []>} : vector<16x128xbf16>, vector<128x512xbf16>, vector<16x512xf32> -> vector<16x512xf32>
    %168 = arith.addf %164, %167 : vector<16x512xf32>
    %169 = vector.extract_strided_slice %168 {offsets = [0, 0], sizes = [16, 384], strides = [1, 1]} : vector<16x512xf32> to vector<16x384xf32>
    %170 = arith.negf %169 : vector<16x384xf32>
    %171 = math.exp %170 : vector<16x384xf32>
    %cst_55 = arith.constant 1.000000e+00 : f32
    %172 = vector.broadcast %cst_55 : f32 to vector<16x384xf32>
    %173 = arith.addf %172, %171 : vector<16x384xf32>
    %174 = arith.divf %172, %173 : vector<16x384xf32>
    %175 = vector.extract_strided_slice %174 {offsets = [0, 0], sizes = [16, 128], strides = [1, 1]} : vector<16x384xf32> to vector<16x128xf32>
    %176 = vector.extract_strided_slice %174 {offsets = [0, 128], sizes = [16, 128], strides = [1, 1]} : vector<16x384xf32> to vector<16x128xf32>
    %177 = vector.extract_strided_slice %174 {offsets = [0, 256], sizes = [16, 128], strides = [1, 1]} : vector<16x384xf32> to vector<16x128xf32>
    %178 = vector.extract_strided_slice %168 {offsets = [0, 384], sizes = [16, 128], strides = [1, 1]} : vector<16x512xf32> to vector<16x128xf32>
    %179 = math.tanh %178 : vector<16x128xf32>
    %180 = arith.mulf %176, %152 : vector<16x128xf32>
    %181 = arith.mulf %175, %179 : vector<16x128xf32>
    %182 = arith.addf %180, %181 : vector<16x128xf32>
    %183 = math.tanh %182 : vector<16x128xf32>
    %184 = arith.mulf %177, %183 : vector<16x128xf32>
    %c5_56 = arith.constant 5 : index
    %c0_57 = arith.constant 0 : index
    %c0_58 = arith.constant 0 : index
    %185 = vector.load %arg12[%c5_56, %c0_57, %c0_58] : memref<8x16x128xf32, #tpu.memory_space<vmem>>, vector<1x16x128xf32>
    %186 = vector.shape_cast %185 : vector<1x16x128xf32> to vector<16x128xf32>
    %187 = vector.shape_cast %184 : vector<16x128xf32> to vector<1x16x128xf32>
    tpu.vector_store %arg12[%c5_56, %c0_57, %c0_58], %187 {strides = array<i32>} : memref<8x16x128xf32, #tpu.memory_space<vmem>>, vector<1x16x128xf32>,
    %c6 = arith.constant 6 : index
    %c0_59 = arith.constant 0 : index
    %c0_60 = arith.constant 0 : index
    %188 = vector.load %arg0[%c6, %c0_59, %c0_60] : memref<8x16x1xf32, #tpu.memory_space<vmem>>, vector<1x16x1xf32>
    %189 = vector.shape_cast %188 : vector<1x16x1xf32> to vector<16x1xf32>
    %190 = vector.broadcast %189 : vector<16x1xf32> to vector<16x512xf32>
    %191 = vector.broadcast %4 : vector<1x512xf32> to vector<16x512xf32>
    %192 = arith.mulf %190, %191 : vector<16x512xf32>
    %193 = vector.broadcast %5 : vector<1x512xf32> to vector<16x512xf32>
    %194 = arith.addf %192, %193 : vector<16x512xf32>
    %195 = arith.truncf %184 : vector<16x128xf32> to vector<16x128xbf16>
    %c0_61 = arith.constant 0 : index
    %c0_62 = arith.constant 0 : index
    %196 = vector.load %arg2[%c0_61, %c0_62] : memref<128x512xbf16, #tpu.memory_space<vmem>>, vector<128x512xbf16>
    %cst_63 = arith.constant dense<0.000000e+00> : vector<16x512xf32>
    %197 = tpu.matmul %195, %196, %cst_63 {dimension_numbers = #tpu.dot_dimension_numbers<[1], [0], [0], [1], [0, 0, 1, 1], [], []>} : vector<16x128xbf16>, vector<128x512xbf16>, vector<16x512xf32> -> vector<16x512xf32>
    %198 = arith.addf %194, %197 : vector<16x512xf32>
    %199 = vector.extract_strided_slice %198 {offsets = [0, 0], sizes = [16, 384], strides = [1, 1]} : vector<16x512xf32> to vector<16x384xf32>
    %200 = arith.negf %199 : vector<16x384xf32>
    %201 = math.exp %200 : vector<16x384xf32>
    %cst_64 = arith.constant 1.000000e+00 : f32
    %202 = vector.broadcast %cst_64 : f32 to vector<16x384xf32>
    %203 = arith.addf %202, %201 : vector<16x384xf32>
    %204 = arith.divf %202, %203 : vector<16x384xf32>
    %205 = vector.extract_strided_slice %204 {offsets = [0, 0], sizes = [16, 128], strides = [1, 1]} : vector<16x384xf32> to vector<16x128xf32>
    %206 = vector.extract_strided_slice %204 {offsets = [0, 128], sizes = [16, 128], strides = [1, 1]} : vector<16x384xf32> to vector<16x128xf32>
    %207 = vector.extract_strided_slice %204 {offsets = [0, 256], sizes = [16, 128], strides = [1, 1]} : vector<16x384xf32> to vector<16x128xf32>
    %208 = vector.extract_strided_slice %198 {offsets = [0, 384], sizes = [16, 128], strides = [1, 1]} : vector<16x512xf32> to vector<16x128xf32>
    %209 = math.tanh %208 : vector<16x128xf32>
    %210 = arith.mulf %206, %182 : vector<16x128xf32>
    %211 = arith.mulf %205, %209 : vector<16x128xf32>
    %212 = arith.addf %210, %211 : vector<16x128xf32>
    %213 = math.tanh %212 : vector<16x128xf32>
    %214 = arith.mulf %207, %213 : vector<16x128xf32>
    %c6_65 = arith.constant 6 : index
    %c0_66 = arith.constant 0 : index
    %c0_67 = arith.constant 0 : index
    %215 = vector.load %arg12[%c6_65, %c0_66, %c0_67] : memref<8x16x128xf32, #tpu.memory_space<vmem>>, vector<1x16x128xf32>
    %216 = vector.shape_cast %215 : vector<1x16x128xf32> to vector<16x128xf32>
    %217 = vector.shape_cast %214 : vector<16x128xf32> to vector<1x16x128xf32>
    tpu.vector_store %arg12[%c6_65, %c0_66, %c0_67], %217 {strides = array<i32>} : memref<8x16x128xf32, #tpu.memory_space<vmem>>, vector<1x16x128xf32>,
    %c7 = arith.constant 7 : index
    %c0_68 = arith.constant 0 : index
    %c0_69 = arith.constant 0 : index
    %218 = vector.load %arg0[%c7, %c0_68, %c0_69] : memref<8x16x1xf32, #tpu.memory_space<vmem>>, vector<1x16x1xf32>
    %219 = vector.shape_cast %218 : vector<1x16x1xf32> to vector<16x1xf32>
    %220 = vector.broadcast %219 : vector<16x1xf32> to vector<16x512xf32>
    %221 = vector.broadcast %4 : vector<1x512xf32> to vector<16x512xf32>
    %222 = arith.mulf %220, %221 : vector<16x512xf32>
    %223 = vector.broadcast %5 : vector<1x512xf32> to vector<16x512xf32>
    %224 = arith.addf %222, %223 : vector<16x512xf32>
    %225 = arith.truncf %214 : vector<16x128xf32> to vector<16x128xbf16>
    %c0_70 = arith.constant 0 : index
    %c0_71 = arith.constant 0 : index
    %226 = vector.load %arg2[%c0_70, %c0_71] : memref<128x512xbf16, #tpu.memory_space<vmem>>, vector<128x512xbf16>
    %cst_72 = arith.constant dense<0.000000e+00> : vector<16x512xf32>
    %227 = tpu.matmul %225, %226, %cst_72 {dimension_numbers = #tpu.dot_dimension_numbers<[1], [0], [0], [1], [0, 0, 1, 1], [], []>} : vector<16x128xbf16>, vector<128x512xbf16>, vector<16x512xf32> -> vector<16x512xf32>
    %228 = arith.addf %224, %227 : vector<16x512xf32>
    %229 = vector.extract_strided_slice %228 {offsets = [0, 0], sizes = [16, 384], strides = [1, 1]} : vector<16x512xf32> to vector<16x384xf32>
    %230 = arith.negf %229 : vector<16x384xf32>
    %231 = math.exp %230 : vector<16x384xf32>
    %cst_73 = arith.constant 1.000000e+00 : f32
    %232 = vector.broadcast %cst_73 : f32 to vector<16x384xf32>
    %233 = arith.addf %232, %231 : vector<16x384xf32>
    %234 = arith.divf %232, %233 : vector<16x384xf32>
    %235 = vector.extract_strided_slice %234 {offsets = [0, 0], sizes = [16, 128], strides = [1, 1]} : vector<16x384xf32> to vector<16x128xf32>
    %236 = vector.extract_strided_slice %234 {offsets = [0, 128], sizes = [16, 128], strides = [1, 1]} : vector<16x384xf32> to vector<16x128xf32>
    %237 = vector.extract_strided_slice %234 {offsets = [0, 256], sizes = [16, 128], strides = [1, 1]} : vector<16x384xf32> to vector<16x128xf32>
    %238 = vector.extract_strided_slice %228 {offsets = [0, 384], sizes = [16, 128], strides = [1, 1]} : vector<16x512xf32> to vector<16x128xf32>
    %239 = math.tanh %238 : vector<16x128xf32>
    %240 = arith.mulf %236, %212 : vector<16x128xf32>
    %241 = arith.mulf %235, %239 : vector<16x128xf32>
    %242 = arith.addf %240, %241 : vector<16x128xf32>
    %243 = math.tanh %242 : vector<16x128xf32>
    %244 = arith.mulf %237, %243 : vector<16x128xf32>
    %c7_74 = arith.constant 7 : index
    %c0_75 = arith.constant 0 : index
    %c0_76 = arith.constant 0 : index
    %245 = vector.load %arg12[%c7_74, %c0_75, %c0_76] : memref<8x16x128xf32, #tpu.memory_space<vmem>>, vector<1x16x128xf32>
    %246 = vector.shape_cast %245 : vector<1x16x128xf32> to vector<16x128xf32>
    %247 = vector.shape_cast %244 : vector<16x128xf32> to vector<1x16x128xf32>
    tpu.vector_store %arg12[%c7_74, %c0_75, %c0_76], %247 {strides = array<i32>} : memref<8x16x128xf32, #tpu.memory_space<vmem>>, vector<1x16x128xf32>,
    %c0_i32_77 = arith.constant 0 : i32
    %248 = tpu.memref_slice %arg11[%c0_i32_77] : memref<2x!tpu.dma_semaphore, #tpu.memory_space<semaphore_mem>> -> memref<1x!tpu.dma_semaphore, #tpu.memory_space<semaphore_mem>>
    %249 = tpu.memref_squeeze %248 : memref<1x!tpu.dma_semaphore, #tpu.memory_space<semaphore_mem>> -> memref<!tpu.dma_semaphore, #tpu.memory_space<semaphore_mem>>
    tpu.wait_dma2 semaphore(%249 : memref<!tpu.dma_semaphore, #tpu.memory_space<semaphore_mem>>) src(%arg6 : memref<14x128x128xbf16, #tpu.memory_space<any>>) dst(%arg9 : memref<14x128x128xbf16, #tpu.memory_space<vmem>>)
    %c1_i32_78 = arith.constant 1 : i32
    %250 = tpu.memref_slice %arg11[%c1_i32_78] : memref<2x!tpu.dma_semaphore, #tpu.memory_space<semaphore_mem>> -> memref<1x!tpu.dma_semaphore, #tpu.memory_space<semaphore_mem>>
    %251 = tpu.memref_squeeze %250 : memref<1x!tpu.dma_semaphore, #tpu.memory_space<semaphore_mem>> -> memref<!tpu.dma_semaphore, #tpu.memory_space<semaphore_mem>>
    tpu.wait_dma2 semaphore(%251 : memref<!tpu.dma_semaphore, #tpu.memory_space<semaphore_mem>>) src(%arg7 : memref<128x128xbf16, #tpu.memory_space<any>>) dst(%arg10 : memref<128x128xbf16, #tpu.memory_space<vmem>>)
    %cst_79 = arith.constant 0.000000e+00 : f32
    %252 = vector.broadcast %cst_79 : f32 to vector<8x128xf32>
    %c0_80 = arith.constant 0 : index
    %c0_81 = arith.constant 0 : index
    %c0_82 = arith.constant 0 : index
    %253 = vector.load %arg12[%c0_80, %c0_81, %c0_82] : memref<8x16x128xf32, #tpu.memory_space<vmem>>, vector<8x1x128xf32>
    %254 = vector.shape_cast %253 : vector<8x1x128xf32> to vector<8x128xf32>
    %255 = arith.truncf %254 : vector<8x128xf32> to vector<8x128xbf16>
    %c0_83 = arith.constant 0 : index
    %c0_84 = arith.constant 0 : index
    %c0_85 = arith.constant 0 : index
    %256 = vector.load %arg9[%c0_83, %c0_84, %c0_85] : memref<14x128x128xbf16, #tpu.memory_space<vmem>>, vector<1x128x128xbf16>
    %257 = vector.shape_cast %256 : vector<1x128x128xbf16> to vector<128x128xbf16>
    %cst_86 = arith.constant dense<0.000000e+00> : vector<8x128xf32>
    %258 = tpu.matmul %255, %257, %cst_86 {dimension_numbers = #tpu.dot_dimension_numbers<[1], [0], [0], [1], [0, 0, 1, 1], [], []>} : vector<8x128xbf16>, vector<128x128xbf16>, vector<8x128xf32> -> vector<8x128xf32>
    %259 = arith.addf %252, %258 : vector<8x128xf32>
    %c0_87 = arith.constant 0 : index
    %c1_88 = arith.constant 1 : index
    %c0_89 = arith.constant 0 : index
    %260 = vector.load %arg12[%c0_87, %c1_88, %c0_89] : memref<8x16x128xf32, #tpu.memory_space<vmem>>, vector<8x1x128xf32>
    %261 = vector.shape_cast %260 : vector<8x1x128xf32> to vector<8x128xf32>
    %262 = arith.truncf %261 : vector<8x128xf32> to vector<8x128xbf16>
    %c1_90 = arith.constant 1 : index
    %c0_91 = arith.constant 0 : index
    %c0_92 = arith.constant 0 : index
    %263 = vector.load %arg9[%c1_90, %c0_91, %c0_92] : memref<14x128x128xbf16, #tpu.memory_space<vmem>>, vector<1x128x128xbf16>
    %264 = vector.shape_cast %263 : vector<1x128x128xbf16> to vector<128x128xbf16>
    %cst_93 = arith.constant dense<0.000000e+00> : vector<8x128xf32>
    %265 = tpu.matmul %262, %264, %cst_93 {dimension_numbers = #tpu.dot_dimension_numbers<[1], [0], [0], [1], [0, 0, 1, 1], [], []>} : vector<8x128xbf16>, vector<128x128xbf16>, vector<8x128xf32> -> vector<8x128xf32>
    %266 = arith.addf %259, %265 : vector<8x128xf32>
    %c0_94 = arith.constant 0 : index
    %c2_95 = arith.constant 2 : index
    %c0_96 = arith.constant 0 : index
    %267 = vector.load %arg12[%c0_94, %c2_95, %c0_96] : memref<8x16x128xf32, #tpu.memory_space<vmem>>, vector<8x1x128xf32>
    %268 = vector.shape_cast %267 : vector<8x1x128xf32> to vector<8x128xf32>
    %269 = arith.truncf %268 : vector<8x128xf32> to vector<8x128xbf16>
    %c2_97 = arith.constant 2 : index
    %c0_98 = arith.constant 0 : index
    %c0_99 = arith.constant 0 : index
    %270 = vector.load %arg9[%c2_97, %c0_98, %c0_99] : memref<14x128x128xbf16, #tpu.memory_space<vmem>>, vector<1x128x128xbf16>
    %271 = vector.shape_cast %270 : vector<1x128x128xbf16> to vector<128x128xbf16>
    %cst_100 = arith.constant dense<0.000000e+00> : vector<8x128xf32>
    %272 = tpu.matmul %269, %271, %cst_100 {dimension_numbers = #tpu.dot_dimension_numbers<[1], [0], [0], [1], [0, 0, 1, 1], [], []>} : vector<8x128xbf16>, vector<128x128xbf16>, vector<8x128xf32> -> vector<8x128xf32>
    %273 = arith.addf %266, %272 : vector<8x128xf32>
    %c0_101 = arith.constant 0 : index
    %c3_102 = arith.constant 3 : index
    %c0_103 = arith.constant 0 : index
    %274 = vector.load %arg12[%c0_101, %c3_102, %c0_103] : memref<8x16x128xf32, #tpu.memory_space<vmem>>, vector<8x1x128xf32>
    %275 = vector.shape_cast %274 : vector<8x1x128xf32> to vector<8x128xf32>
    %276 = arith.truncf %275 : vector<8x128xf32> to vector<8x128xbf16>
    %c3_104 = arith.constant 3 : index
    %c0_105 = arith.constant 0 : index
    %c0_106 = arith.constant 0 : index
    %277 = vector.load %arg9[%c3_104, %c0_105, %c0_106] : memref<14x128x128xbf16, #tpu.memory_space<vmem>>, vector<1x128x128xbf16>
    %278 = vector.shape_cast %277 : vector<1x128x128xbf16> to vector<128x128xbf16>
    %cst_107 = arith.constant dense<0.000000e+00> : vector<8x128xf32>
    %279 = tpu.matmul %276, %278, %cst_107 {dimension_numbers = #tpu.dot_dimension_numbers<[1], [0], [0], [1], [0, 0, 1, 1], [], []>} : vector<8x128xbf16>, vector<128x128xbf16>, vector<8x128xf32> -> vector<8x128xf32>
    %280 = arith.addf %273, %279 : vector<8x128xf32>
    %c0_108 = arith.constant 0 : index
    %c4_109 = arith.constant 4 : index
    %c0_110 = arith.constant 0 : index
    %281 = vector.load %arg12[%c0_108, %c4_109, %c0_110] : memref<8x16x128xf32, #tpu.memory_space<vmem>>, vector<8x1x128xf32>
    %282 = vector.shape_cast %281 : vector<8x1x128xf32> to vector<8x128xf32>
    %283 = arith.truncf %282 : vector<8x128xf32> to vector<8x128xbf16>
    %c4_111 = arith.constant 4 : index
    %c0_112 = arith.constant 0 : index
    %c0_113 = arith.constant 0 : index
    %284 = vector.load %arg9[%c4_111, %c0_112, %c0_113] : memref<14x128x128xbf16, #tpu.memory_space<vmem>>, vector<1x128x128xbf16>
    %285 = vector.shape_cast %284 : vector<1x128x128xbf16> to vector<128x128xbf16>
    %cst_114 = arith.constant dense<0.000000e+00> : vector<8x128xf32>
    %286 = tpu.matmul %283, %285, %cst_114 {dimension_numbers = #tpu.dot_dimension_numbers<[1], [0], [0], [1], [0, 0, 1, 1], [], []>} : vector<8x128xbf16>, vector<128x128xbf16>, vector<8x128xf32> -> vector<8x128xf32>
    %287 = arith.addf %280, %286 : vector<8x128xf32>
    %c0_115 = arith.constant 0 : index
    %c5_116 = arith.constant 5 : index
    %c0_117 = arith.constant 0 : index
    %288 = vector.load %arg12[%c0_115, %c5_116, %c0_117] : memref<8x16x128xf32, #tpu.memory_space<vmem>>, vector<8x1x128xf32>
    %289 = vector.shape_cast %288 : vector<8x1x128xf32> to vector<8x128xf32>
    %290 = arith.truncf %289 : vector<8x128xf32> to vector<8x128xbf16>
    %c5_118 = arith.constant 5 : index
    %c0_119 = arith.constant 0 : index
    %c0_120 = arith.constant 0 : index
    %291 = vector.load %arg9[%c5_118, %c0_119, %c0_120] : memref<14x128x128xbf16, #tpu.memory_space<vmem>>, vector<1x128x128xbf16>
    %292 = vector.shape_cast %291 : vector<1x128x128xbf16> to vector<128x128xbf16>
    %cst_121 = arith.constant dense<0.000000e+00> : vector<8x128xf32>
    %293 = tpu.matmul %290, %292, %cst_121 {dimension_numbers = #tpu.dot_dimension_numbers<[1], [0], [0], [1], [0, 0, 1, 1], [], []>} : vector<8x128xbf16>, vector<128x128xbf16>, vector<8x128xf32> -> vector<8x128xf32>
    %294 = arith.addf %287, %293 : vector<8x128xf32>
    %c0_122 = arith.constant 0 : index
    %c6_123 = arith.constant 6 : index
    %c0_124 = arith.constant 0 : index
    %295 = vector.load %arg12[%c0_122, %c6_123, %c0_124] : memref<8x16x128xf32, #tpu.memory_space<vmem>>, vector<8x1x128xf32>
    %296 = vector.shape_cast %295 : vector<8x1x128xf32> to vector<8x128xf32>
    %297 = arith.truncf %296 : vector<8x128xf32> to vector<8x128xbf16>
    %c6_125 = arith.constant 6 : index
    %c0_126 = arith.constant 0 : index
    %c0_127 = arith.constant 0 : index
    %298 = vector.load %arg9[%c6_125, %c0_126, %c0_127] : memref<14x128x128xbf16, #tpu.memory_space<vmem>>, vector<1x128x128xbf16>
    %299 = vector.shape_cast %298 : vector<1x128x128xbf16> to vector<128x128xbf16>
    %cst_128 = arith.constant dense<0.000000e+00> : vector<8x128xf32>
    %300 = tpu.matmul %297, %299, %cst_128 {dimension_numbers = #tpu.dot_dimension_numbers<[1], [0], [0], [1], [0, 0, 1, 1], [], []>} : vector<8x128xbf16>, vector<128x128xbf16>, vector<8x128xf32> -> vector<8x128xf32>
    %301 = arith.addf %294, %300 : vector<8x128xf32>
    %c0_129 = arith.constant 0 : index
    %c7_130 = arith.constant 7 : index
    %c0_131 = arith.constant 0 : index
    %302 = vector.load %arg12[%c0_129, %c7_130, %c0_131] : memref<8x16x128xf32, #tpu.memory_space<vmem>>, vector<8x1x128xf32>
    %303 = vector.shape_cast %302 : vector<8x1x128xf32> to vector<8x128xf32>
    %304 = arith.truncf %303 : vector<8x128xf32> to vector<8x128xbf16>
    %c7_132 = arith.constant 7 : index
    %c0_133 = arith.constant 0 : index
    %c0_134 = arith.constant 0 : index
    %305 = vector.load %arg9[%c7_132, %c0_133, %c0_134] : memref<14x128x128xbf16, #tpu.memory_space<vmem>>, vector<1x128x128xbf16>
    %306 = vector.shape_cast %305 : vector<1x128x128xbf16> to vector<128x128xbf16>
    %cst_135 = arith.constant dense<0.000000e+00> : vector<8x128xf32>
    %307 = tpu.matmul %304, %306, %cst_135 {dimension_numbers = #tpu.dot_dimension_numbers<[1], [0], [0], [1], [0, 0, 1, 1], [], []>} : vector<8x128xbf16>, vector<128x128xbf16>, vector<8x128xf32> -> vector<8x128xf32>
    %308 = arith.addf %301, %307 : vector<8x128xf32>
    %c0_136 = arith.constant 0 : index
    %c8 = arith.constant 8 : index
    %c0_137 = arith.constant 0 : index
    %309 = vector.load %arg12[%c0_136, %c8, %c0_137] : memref<8x16x128xf32, #tpu.memory_space<vmem>>, vector<8x1x128xf32>
    %310 = vector.shape_cast %309 : vector<8x1x128xf32> to vector<8x128xf32>
    %311 = arith.truncf %310 : vector<8x128xf32> to vector<8x128xbf16>
    %c8_138 = arith.constant 8 : index
    %c0_139 = arith.constant 0 : index
    %c0_140 = arith.constant 0 : index
    %312 = vector.load %arg9[%c8_138, %c0_139, %c0_140] : memref<14x128x128xbf16, #tpu.memory_space<vmem>>, vector<1x128x128xbf16>
    %313 = vector.shape_cast %312 : vector<1x128x128xbf16> to vector<128x128xbf16>
    %cst_141 = arith.constant dense<0.000000e+00> : vector<8x128xf32>
    %314 = tpu.matmul %311, %313, %cst_141 {dimension_numbers = #tpu.dot_dimension_numbers<[1], [0], [0], [1], [0, 0, 1, 1], [], []>} : vector<8x128xbf16>, vector<128x128xbf16>, vector<8x128xf32> -> vector<8x128xf32>
    %315 = arith.addf %308, %314 : vector<8x128xf32>
    %c0_142 = arith.constant 0 : index
    %c9 = arith.constant 9 : index
    %c0_143 = arith.constant 0 : index
    %316 = vector.load %arg12[%c0_142, %c9, %c0_143] : memref<8x16x128xf32, #tpu.memory_space<vmem>>, vector<8x1x128xf32>
    %317 = vector.shape_cast %316 : vector<8x1x128xf32> to vector<8x128xf32>
    %318 = arith.truncf %317 : vector<8x128xf32> to vector<8x128xbf16>
    %c9_144 = arith.constant 9 : index
    %c0_145 = arith.constant 0 : index
    %c0_146 = arith.constant 0 : index
    %319 = vector.load %arg9[%c9_144, %c0_145, %c0_146] : memref<14x128x128xbf16, #tpu.memory_space<vmem>>, vector<1x128x128xbf16>
    %320 = vector.shape_cast %319 : vector<1x128x128xbf16> to vector<128x128xbf16>
    %cst_147 = arith.constant dense<0.000000e+00> : vector<8x128xf32>
    %321 = tpu.matmul %318, %320, %cst_147 {dimension_numbers = #tpu.dot_dimension_numbers<[1], [0], [0], [1], [0, 0, 1, 1], [], []>} : vector<8x128xbf16>, vector<128x128xbf16>, vector<8x128xf32> -> vector<8x128xf32>
    %322 = arith.addf %315, %321 : vector<8x128xf32>
    %c0_148 = arith.constant 0 : index
    %c10 = arith.constant 10 : index
    %c0_149 = arith.constant 0 : index
    %323 = vector.load %arg12[%c0_148, %c10, %c0_149] : memref<8x16x128xf32, #tpu.memory_space<vmem>>, vector<8x1x128xf32>
    %324 = vector.shape_cast %323 : vector<8x1x128xf32> to vector<8x128xf32>
    %325 = arith.truncf %324 : vector<8x128xf32> to vector<8x128xbf16>
    %c10_150 = arith.constant 10 : index
    %c0_151 = arith.constant 0 : index
    %c0_152 = arith.constant 0 : index
    %326 = vector.load %arg9[%c10_150, %c0_151, %c0_152] : memref<14x128x128xbf16, #tpu.memory_space<vmem>>, vector<1x128x128xbf16>
    %327 = vector.shape_cast %326 : vector<1x128x128xbf16> to vector<128x128xbf16>
    %cst_153 = arith.constant dense<0.000000e+00> : vector<8x128xf32>
    %328 = tpu.matmul %325, %327, %cst_153 {dimension_numbers = #tpu.dot_dimension_numbers<[1], [0], [0], [1], [0, 0, 1, 1], [], []>} : vector<8x128xbf16>, vector<128x128xbf16>, vector<8x128xf32> -> vector<8x128xf32>
    %329 = arith.addf %322, %328 : vector<8x128xf32>
    %c0_154 = arith.constant 0 : index
    %c11 = arith.constant 11 : index
    %c0_155 = arith.constant 0 : index
    %330 = vector.load %arg12[%c0_154, %c11, %c0_155] : memref<8x16x128xf32, #tpu.memory_space<vmem>>, vector<8x1x128xf32>
    %331 = vector.shape_cast %330 : vector<8x1x128xf32> to vector<8x128xf32>
    %332 = arith.truncf %331 : vector<8x128xf32> to vector<8x128xbf16>
    %c11_156 = arith.constant 11 : index
    %c0_157 = arith.constant 0 : index
    %c0_158 = arith.constant 0 : index
    %333 = vector.load %arg9[%c11_156, %c0_157, %c0_158] : memref<14x128x128xbf16, #tpu.memory_space<vmem>>, vector<1x128x128xbf16>
    %334 = vector.shape_cast %333 : vector<1x128x128xbf16> to vector<128x128xbf16>
    %cst_159 = arith.constant dense<0.000000e+00> : vector<8x128xf32>
    %335 = tpu.matmul %332, %334, %cst_159 {dimension_numbers = #tpu.dot_dimension_numbers<[1], [0], [0], [1], [0, 0, 1, 1], [], []>} : vector<8x128xbf16>, vector<128x128xbf16>, vector<8x128xf32> -> vector<8x128xf32>
    %336 = arith.addf %329, %335 : vector<8x128xf32>
    %c0_160 = arith.constant 0 : index
    %c12 = arith.constant 12 : index
    %c0_161 = arith.constant 0 : index
    %337 = vector.load %arg12[%c0_160, %c12, %c0_161] : memref<8x16x128xf32, #tpu.memory_space<vmem>>, vector<8x1x128xf32>
    %338 = vector.shape_cast %337 : vector<8x1x128xf32> to vector<8x128xf32>
    %339 = arith.truncf %338 : vector<8x128xf32> to vector<8x128xbf16>
    %c12_162 = arith.constant 12 : index
    %c0_163 = arith.constant 0 : index
    %c0_164 = arith.constant 0 : index
    %340 = vector.load %arg9[%c12_162, %c0_163, %c0_164] : memref<14x128x128xbf16, #tpu.memory_space<vmem>>, vector<1x128x128xbf16>
    %341 = vector.shape_cast %340 : vector<1x128x128xbf16> to vector<128x128xbf16>
    %cst_165 = arith.constant dense<0.000000e+00> : vector<8x128xf32>
    %342 = tpu.matmul %339, %341, %cst_165 {dimension_numbers = #tpu.dot_dimension_numbers<[1], [0], [0], [1], [0, 0, 1, 1], [], []>} : vector<8x128xbf16>, vector<128x128xbf16>, vector<8x128xf32> -> vector<8x128xf32>
    %343 = arith.addf %336, %342 : vector<8x128xf32>
    %c0_166 = arith.constant 0 : index
    %c13 = arith.constant 13 : index
    %c0_167 = arith.constant 0 : index
    %344 = vector.load %arg12[%c0_166, %c13, %c0_167] : memref<8x16x128xf32, #tpu.memory_space<vmem>>, vector<8x1x128xf32>
    %345 = vector.shape_cast %344 : vector<8x1x128xf32> to vector<8x128xf32>
    %346 = arith.truncf %345 : vector<8x128xf32> to vector<8x128xbf16>
    %c13_168 = arith.constant 13 : index
    %c0_169 = arith.constant 0 : index
    %c0_170 = arith.constant 0 : index
    %347 = vector.load %arg9[%c13_168, %c0_169, %c0_170] : memref<14x128x128xbf16, #tpu.memory_space<vmem>>, vector<1x128x128xbf16>
    %348 = vector.shape_cast %347 : vector<1x128x128xbf16> to vector<128x128xbf16>
    %cst_171 = arith.constant dense<0.000000e+00> : vector<8x128xf32>
    %349 = tpu.matmul %346, %348, %cst_171 {dimension_numbers = #tpu.dot_dimension_numbers<[1], [0], [0], [1], [0, 0, 1, 1], [], []>} : vector<8x128xbf16>, vector<128x128xbf16>, vector<8x128xf32> -> vector<8x128xf32>
    %350 = arith.addf %343, %349 : vector<8x128xf32>
    %c0_172 = arith.constant 0 : index
    %c0_173 = arith.constant 0 : index
    %351 = vector.load %arg4[%c0_172, %c0_173] : memref<1x128xf32, #tpu.memory_space<vmem>>, vector<1x128xf32>
    %352 = vector.broadcast %351 : vector<1x128xf32> to vector<8x128xf32>
    %353 = arith.addf %350, %352 : vector<8x128xf32>
    %cst_174 = arith.constant 0.000000e+00 : f32
    %354 = vector.broadcast %cst_174 : f32 to vector<8x128xf32>
    %355 = arith.maximumf %353, %354 : vector<8x128xf32>
    %356 = arith.truncf %355 : vector<8x128xf32> to vector<8x128xbf16>
    %c0_175 = arith.constant 0 : index
    %c0_176 = arith.constant 0 : index
    %357 = vector.load %arg10[%c0_175, %c0_176] : memref<128x128xbf16, #tpu.memory_space<vmem>>, vector<128x128xbf16>
    %cst_177 = arith.constant dense<0.000000e+00> : vector<8x128xf32>
    %358 = tpu.matmul %356, %357, %cst_177 {dimension_numbers = #tpu.dot_dimension_numbers<[1], [0], [0], [1], [0, 0, 1, 1], [], []>} : vector<8x128xbf16>, vector<128x128xbf16>, vector<8x128xf32> -> vector<8x128xf32>
    %c0_178 = arith.constant 0 : index
    %c0_179 = arith.constant 0 : index
    %359 = vector.load %arg5[%c0_178, %c0_179] : memref<1x128xf32, #tpu.memory_space<vmem>>, vector<1x128xf32>
    %360 = vector.broadcast %359 : vector<1x128xf32> to vector<8x128xf32>
    %361 = arith.addf %358, %360 : vector<8x128xf32>
    %cst_180 = arith.constant 0.000000e+00 : f32
    %362 = vector.broadcast %cst_180 : f32 to vector<8x128xf32>
    %363 = arith.maximumf %361, %362 : vector<8x128xf32>
    %c0_181 = arith.constant 0 : index
    %c0_182 = arith.constant 0 : index
    %364 = vector.load %arg8[%c0_181, %c0_182] : memref<8x128xf32, #tpu.memory_space<vmem>>, vector<8x128xf32>
    tpu.vector_store %arg8[%c0_181, %c0_182], %363 {strides = array<i32>} : memref<8x128xf32, #tpu.memory_space<vmem>>, vector<8x128xf32>,
    return
  }
}

</mosaic_0001>

<bundles_post_ra>
// kernel: lstm_cnn_critic_net.1
= control target key start
LH: loop header
LB: loop body
LE: loop exit
PB: predicated region body
PF: predicated region fallthrough
CT: control target
= control target key end

     0   :  { %s8732_s0 = inlined_call_operand.vmem [shape: f32[8,16,1], index: 0, kind: input, shape index: {}]   ;;  %s8733_s1 = inlined_call_operand.vmem [shape: f32[1,512], index: 1, kind: input, shape index: {}]   ;;  %s8734_s2 = inlined_call_operand.vmem [shape: bf16[128,512], index: 2, kind: input, shape index: {}]   ;;  %s8735_s3 = inlined_call_operand.vmem [shape: f32[1,512], index: 3, kind: input, shape index: {}]   ;;  %s8736_s4 = inlined_call_operand.vmem [shape: f32[1,128], index: 4, kind: input, shape index: {}]   ;;  %s8737_s5 = inlined_call_operand.vmem [shape: f32[1,128], index: 5, kind: input, shape index: {}]   ;;  %s8738_s6 = inlined_call_operand.vmem [shape: bf16[14,128,128], index: 6, kind: input, shape index: {}]   ;;  %s8739_s7 = inlined_call_operand.vmem [shape: bf16[128,128], index: 7, kind: input, shape index: {}]   ;;  %s8740_s8 = inlined_call_operand.vmem [shape: f32[8,128], index: 8, kind: output, shape index: {}]  }
   0x1   :  { %v59_v0 = vld [vmem:[%s8738_s6] sm:$0xff]  ;;  %v61_v1 = vld [vmem:[%s8738_s6 + $0x8] sm:$0xff]  ;;  %v63_v2 = vld [vmem:[%s8738_s6 + $0x10] sm:$0xff] }
   0x2   :  { %60 = vst [vmem:[#allocation2] sm:$0xff] %v59_v0  ;;  %62 = vst [vmem:[#allocation2 + $0x8] sm:$0xff] %v61_v1  ;;  %v65_v3 = vld [vmem:[%s8738_s6 + $0x18] sm:$0xff]  ;;  %v67_v4 = vld [vmem:[%s8738_s6 + $0x20] sm:$0xff] }
   0x3   :  { %64 = vst [vmem:[#allocation2 + $0x10] sm:$0xff] %v63_v2  ;;  %v69_v5 = vld [vmem:[%s8738_s6 + $0x28] sm:$0xff]  ;;  %66 = vst [vmem:[#allocation2 + $0x18] sm:$0xff] %v65_v3  ;;  %v71_v6 = vld [vmem:[%s8738_s6 + $0x30] sm:$0xff] }
   0x4   :  { %68 = vst [vmem:[#allocation2 + $0x20] sm:$0xff] %v67_v4  ;;  %70 = vst [vmem:[#allocation2 + $0x28] sm:$0xff] %v69_v5  ;;  %v73_v7 = vld [vmem:[%s8738_s6 + $0x38] sm:$0xff]  ;;  %v75_v8 = vld [vmem:[%s8738_s6 + $0x40] sm:$0xff] }
   0x5   :  { %72 = vst [vmem:[#allocation2 + $0x30] sm:$0xff] %v71_v6  ;;  %74 = vst [vmem:[#allocation2 + $0x38] sm:$0xff] %v73_v7  ;;  %v77_v9 = vld [vmem:[%s8738_s6 + $0x48] sm:$0xff]  ;;  %v79_v10 = vld [vmem:[%s8738_s6 + $0x50] sm:$0xff] }
   0x6   :  { %76 = vst [vmem:[#allocation2 + $0x40] sm:$0xff] %v75_v8  ;;  %v81_v11 = vld [vmem:[%s8738_s6 + $0x58] sm:$0xff]  ;;  %78 = vst [vmem:[#allocation2 + $0x48] sm:$0xff] %v77_v9  ;;  %v83_v12 = vld [vmem:[%s8738_s6 + $0x60] sm:$0xff] }
   0x7   :  { %80 = vst [vmem:[#allocation2 + $0x50] sm:$0xff] %v79_v10  ;;  %82 = vst [vmem:[#allocation2 + $0x58] sm:$0xff] %v81_v11  ;;  %v85_v13 = vld [vmem:[%s8738_s6 + $0x68] sm:$0xff]  ;;  %v87_v14 = vld [vmem:[%s8738_s6 + $0x70] sm:$0xff] }
   0x8   :  { %84 = vst [vmem:[#allocation2 + $0x60] sm:$0xff] %v83_v12  ;;  %86 = vst [vmem:[#allocation2 + $0x68] sm:$0xff] %v85_v13  ;;  %v89_v15 = vld [vmem:[%s8738_s6 + $0x78] sm:$0xff]  ;;  %v91_v16 = vld [vmem:[%s8738_s6 + $0x80] sm:$0xff] }
   0x9   :  { %88 = vst [vmem:[#allocation2 + $0x70] sm:$0xff] %v87_v14  ;;  %v93_v17 = vld [vmem:[%s8738_s6 + $0x88] sm:$0xff]  ;;  %90 = vst [vmem:[#allocation2 + $0x78] sm:$0xff] %v89_v15  ;;  %v95_v18 = vld [vmem:[%s8738_s6 + $0x90] sm:$0xff] }
   0xa   :  { %92 = vst [vmem:[#allocation2 + $0x80] sm:$0xff] %v91_v16  ;;  %94 = vst [vmem:[#allocation2 + $0x88] sm:$0xff] %v93_v17  ;;  %v97_v19 = vld [vmem:[%s8738_s6 + $0x98] sm:$0xff]  ;;  %v99_v20 = vld [vmem:[%s8738_s6 + $0xa0] sm:$0xff] }
   0xb   :  { %96 = vst [vmem:[#allocation2 + $0x90] sm:$0xff] %v95_v18  ;;  %98 = vst [vmem:[#allocation2 + $0x98] sm:$0xff] %v97_v19  ;;  %v101_v21 = vld [vmem:[%s8738_s6 + $0xa8] sm:$0xff]  ;;  %v103_v22 = vld [vmem:[%s8738_s6 + $0xb0] sm:$0xff] }
   0xc   :  { %100 = vst [vmem:[#allocation2 + $0xa0] sm:$0xff] %v99_v20  ;;  %v105_v23 = vld [vmem:[%s8738_s6 + $0xb8] sm:$0xff]  ;;  %102 = vst [vmem:[#allocation2 + $0xa8] sm:$0xff] %v101_v21  ;;  %v107_v24 = vld [vmem:[%s8738_s6 + $0xc0] sm:$0xff] }
   0xd   :  { %104 = vst [vmem:[#allocation2 + $0xb0] sm:$0xff] %v103_v22  ;;  %106 = vst [vmem:[#allocation2 + $0xb8] sm:$0xff] %v105_v23  ;;  %v109_v25 = vld [vmem:[%s8738_s6 + $0xc8] sm:$0xff]  ;;  %v111_v26 = vld [vmem:[%s8738_s6 + $0xd0] sm:$0xff] }
   0xe   :  { %108 = vst [vmem:[#allocation2 + $0xc0] sm:$0xff] %v107_v24  ;;  %110 = vst [vmem:[#allocation2 + $0xc8] sm:$0xff] %v109_v25  ;;  %v113_v27 = vld [vmem:[%s8738_s6 + $0xd8] sm:$0xff]  ;;  %v115_v28 = vld [vmem:[%s8738_s6 + $0xe0] sm:$0xff] }
   0xf   :  { %112 = vst [vmem:[#allocation2 + $0xd0] sm:$0xff] %v111_v26  ;;  %v117_v29 = vld [vmem:[%s8738_s6 + $0xe8] sm:$0xff]  ;;  %114 = vst [vmem:[#allocation2 + $0xd8] sm:$0xff] %v113_v27  ;;  %v119_v30 = vld [vmem:[%s8738_s6 + $0xf0] sm:$0xff] }
  0x10   :  { %116 = vst [vmem:[#allocation2 + $0xe0] sm:$0xff] %v115_v28  ;;  %118 = vst [vmem:[#allocation2 + $0xe8] sm:$0xff] %v117_v29  ;;  %v121_v31 = vld [vmem:[%s8738_s6 + $0xf8] sm:$0xff]  ;;  %v123_v32 = vld [vmem:[%s8738_s6 + $0x100] sm:$0xff] }
  0x11   :  { %120 = vst [vmem:[#allocation2 + $0xf0] sm:$0xff] %v119_v30  ;;  %122 = vst [vmem:[#allocation2 + $0xf8] sm:$0xff] %v121_v31  ;;  %v125_v33 = vld [vmem:[%s8738_s6 + $0x108] sm:$0xff]  ;;  %v127_v34 = vld [vmem:[%s8738_s6 + $0x110] sm:$0xff] }
  0x12   :  { %124 = vst [vmem:[#allocation2 + $0x100] sm:$0xff] %v123_v32  ;;  %v129_v35 = vld [vmem:[%s8738_s6 + $0x118] sm:$0xff]  ;;  %126 = vst [vmem:[#allocation2 + $0x108] sm:$0xff] %v125_v33  ;;  %v131_v36 = vld [vmem:[%s8738_s6 + $0x120] sm:$0xff] }
  0x13   :  { %128 = vst [vmem:[#allocation2 + $0x110] sm:$0xff] %v127_v34  ;;  %130 = vst [vmem:[#allocation2 + $0x118] sm:$0xff] %v129_v35  ;;  %v133_v37 = vld [vmem:[%s8738_s6 + $0x128] sm:$0xff]  ;;  %v135_v38 = vld [vmem:[%s8738_s6 + $0x130] sm:$0xff] }
  0x14   :  { %132 = vst [vmem:[#allocation2 + $0x120] sm:$0xff] %v131_v36  ;;  %134 = vst [vmem:[#allocation2 + $0x128] sm:$0xff] %v133_v37  ;;  %v137_v39 = vld [vmem:[%s8738_s6 + $0x138] sm:$0xff]  ;;  %v139_v40 = vld [vmem:[%s8738_s6 + $0x140] sm:$0xff] }
  0x15   :  { %136 = vst [vmem:[#allocation2 + $0x130] sm:$0xff] %v135_v38  ;;  %v141_v41 = vld [vmem:[%s8738_s6 + $0x148] sm:$0xff]  ;;  %138 = vst [vmem:[#allocation2 + $0x138] sm:$0xff] %v137_v39  ;;  %v143_v42 = vld [vmem:[%s8738_s6 + $0x150] sm:$0xff] }
  0x16   :  { %140 = vst [vmem:[#allocation2 + $0x140] sm:$0xff] %v139_v40  ;;  %142 = vst [vmem:[#allocation2 + $0x148] sm:$0xff] %v141_v41  ;;  %v145_v43 = vld [vmem:[%s8738_s6 + $0x158] sm:$0xff]  ;;  %v147_v44 = vld [vmem:[%s8738_s6 + $0x160] sm:$0xff] }
  0x17   :  { %144 = vst [vmem:[#allocation2 + $0x150] sm:$0xff] %v143_v42  ;;  %146 = vst [vmem:[#allocation2 + $0x158] sm:$0xff] %v145_v43  ;;  %v149_v45 = vld [vmem:[%s8738_s6 + $0x168] sm:$0xff]  ;;  %v151_v46 = vld [vmem:[%s8738_s6 + $0x170] sm:$0xff] }
  0x18   :  { %148 = vst [vmem:[#allocation2 + $0x160] sm:$0xff] %v147_v44  ;;  %v153_v47 = vld [vmem:[%s8738_s6 + $0x178] sm:$0xff]  ;;  %150 = vst [vmem:[#allocation2 + $0x168] sm:$0xff] %v149_v45  ;;  %v155_v48 = vld [vmem:[%s8738_s6 + $0x180] sm:$0xff] }
  0x19   :  { %152 = vst [vmem:[#allocation2 + $0x170] sm:$0xff] %v151_v46  ;;  %154 = vst [vmem:[#allocation2 + $0x178] sm:$0xff] %v153_v47  ;;  %v157_v49 = vld [vmem:[%s8738_s6 + $0x188] sm:$0xff]  ;;  %v159_v50 = vld [vmem:[%s8738_s6 + $0x190] sm:$0xff] }
  0x1a   :  { %156 = vst [vmem:[#allocation2 + $0x180] sm:$0xff] %v155_v48  ;;  %158 = vst [vmem:[#allocation2 + $0x188] sm:$0xff] %v157_v49  ;;  %v161_v51 = vld [vmem:[%s8738_s6 + $0x198] sm:$0xff]  ;;  %v163_v52 = vld [vmem:[%s8738_s6 + $0x1a0] sm:$0xff] }
  0x1b   :  { %160 = vst [vmem:[#allocation2 + $0x190] sm:$0xff] %v159_v50  ;;  %v165_v53 = vld [vmem:[%s8738_s6 + $0x1a8] sm:$0xff]  ;;  %162 = vst [vmem:[#allocation2 + $0x198] sm:$0xff] %v161_v51  ;;  %v167_v54 = vld [vmem:[%s8738_s6 + $0x1b0] sm:$0xff] }
  0x1c   :  { %164 = vst [vmem:[#allocation2 + $0x1a0] sm:$0xff] %v163_v52  ;;  %166 = vst [vmem:[#allocation2 + $0x1a8] sm:$0xff] %v165_v53  ;;  %v169_v55 = vld [vmem:[%s8738_s6 + $0x1b8] sm:$0xff]  ;;  %v171_v56 = vld [vmem:[%s8738_s6 + $0x1c0] sm:$0xff] }
  0x1d   :  { %168 = vst [vmem:[#allocation2 + $0x1b0] sm:$0xff] %v167_v54  ;;  %170 = vst [vmem:[#allocation2 + $0x1b8] sm:$0xff] %v169_v55  ;;  %v173_v57 = vld [vmem:[%s8738_s6 + $0x1c8] sm:$0xff]  ;;  %v175_v58 = vld [vmem:[%s8738_s6 + $0x1d0] sm:$0xff] }
  0x1e   :  { %172 = vst [vmem:[#allocation2 + $0x1c0] sm:$0xff] %v171_v56  ;;  %v177_v59 = vld [vmem:[%s8738_s6 + $0x1d8] sm:$0xff]  ;;  %174 = vst [vmem:[#allocation2 + $0x1c8] sm:$0xff] %v173_v57  ;;  %v179_v60 = vld [vmem:[%s8738_s6 + $0x1e0] sm:$0xff] }
  0x1f   :  { %176 = vst [vmem:[#allocation2 + $0x1d0] sm:$0xff] %v175_v58  ;;  %178 = vst [vmem:[#allocation2 + $0x1d8] sm:$0xff] %v177_v59  ;;  %v181_v61 = vld [vmem:[%s8738_s6 + $0x1e8] sm:$0xff]  ;;  %v183_v62 = vld [vmem:[%s8738_s6 + $0x1f0] sm:$0xff] }
  0x20   :  { %180 = vst [vmem:[#allocation2 + $0x1e0] sm:$0xff] %v179_v60  ;;  %182 = vst [vmem:[#allocation2 + $0x1e8] sm:$0xff] %v181_v61  ;;  %v185_v63 = vld [vmem:[%s8738_s6 + $0x1f8] sm:$0xff]  ;;  %v187_v0 = vld [vmem:[%s8738_s6 + $0x200] sm:$0xff] }
  0x21   :  { %184 = vst [vmem:[#allocation2 + $0x1f0] sm:$0xff] %v183_v62  ;;  %v189_v1 = vld [vmem:[%s8738_s6 + $0x208] sm:$0xff]  ;;  %186 = vst [vmem:[#allocation2 + $0x1f8] sm:$0xff] %v185_v63  ;;  %v191_v2 = vld [vmem:[%s8738_s6 + $0x210] sm:$0xff] }
  0x22   :  { %188 = vst [vmem:[#allocation2 + $0x200] sm:$0xff] %v187_v0  ;;  %190 = vst [vmem:[#allocation2 + $0x208] sm:$0xff] %v189_v1  ;;  %v193_v3 = vld [vmem:[%s8738_s6 + $0x218] sm:$0xff]  ;;  %v195_v4 = vld [vmem:[%s8738_s6 + $0x220] sm:$0xff] }
  0x23   :  { %192 = vst [vmem:[#allocation2 + $0x210] sm:$0xff] %v191_v2  ;;  %194 = vst [vmem:[#allocation2 + $0x218] sm:$0xff] %v193_v3  ;;  %v197_v5 = vld [vmem:[%s8738_s6 + $0x228] sm:$0xff]  ;;  %v199_v6 = vld [vmem:[%s8738_s6 + $0x230] sm:$0xff] }
  0x24   :  { %196 = vst [vmem:[#allocation2 + $0x220] sm:$0xff] %v195_v4  ;;  %v201_v7 = vld [vmem:[%s8738_s6 + $0x238] sm:$0xff]  ;;  %198 = vst [vmem:[#allocation2 + $0x228] sm:$0xff] %v197_v5  ;;  %v203_v8 = vld [vmem:[%s8738_s6 + $0x240] sm:$0xff] }
  0x25   :  { %200 = vst [vmem:[#allocation2 + $0x230] sm:$0xff] %v199_v6  ;;  %202 = vst [vmem:[#allocation2 + $0x238] sm:$0xff] %v201_v7  ;;  %v205_v9 = vld [vmem:[%s8738_s6 + $0x248] sm:$0xff]  ;;  %v207_v10 = vld [vmem:[%s8738_s6 + $0x250] sm:$0xff] }
  0x26   :  { %204 = vst [vmem:[#allocation2 + $0x240] sm:$0xff] %v203_v8  ;;  %206 = vst [vmem:[#allocation2 + $0x248] sm:$0xff] %v205_v9  ;;  %v209_v11 = vld [vmem:[%s8738_s6 + $0x258] sm:$0xff]  ;;  %v211_v12 = vld [vmem:[%s8738_s6 + $0x260] sm:$0xff] }
  0x27   :  { %208 = vst [vmem:[#allocation2 + $0x250] sm:$0xff] %v207_v10  ;;  %v213_v13 = vld [vmem:[%s8738_s6 + $0x268] sm:$0xff]  ;;  %210 = vst [vmem:[#allocation2 + $0x258] sm:$0xff] %v209_v11  ;;  %v215_v14 = vld [vmem:[%s8738_s6 + $0x270] sm:$0xff] }
  0x28   :  { %212 = vst [vmem:[#allocation2 + $0x260] sm:$0xff] %v211_v12  ;;  %214 = vst [vmem:[#allocation2 + $0x268] sm:$0xff] %v213_v13  ;;  %v217_v15 = vld [vmem:[%s8738_s6 + $0x278] sm:$0xff]  ;;  %v219_v16 = vld [vmem:[%s8738_s6 + $0x280] sm:$0xff] }
  0x29   :  { %216 = vst [vmem:[#allocation2 + $0x270] sm:$0xff] %v215_v14  ;;  %218 = vst [vmem:[#allocation2 + $0x278] sm:$0xff] %v217_v15  ;;  %v221_v17 = vld [vmem:[%s8738_s6 + $0x288] sm:$0xff]  ;;  %v223_v18 = vld [vmem:[%s8738_s6 + $0x290] sm:$0xff] }
  0x2a   :  { %220 = vst [vmem:[#allocation2 + $0x280] sm:$0xff] %v219_v16  ;;  %v225_v19 = vld [vmem:[%s8738_s6 + $0x298] sm:$0xff]  ;;  %222 = vst [vmem:[#allocation2 + $0x288] sm:$0xff] %v221_v17  ;;  %v227_v20 = vld [vmem:[%s8738_s6 + $0x2a0] sm:$0xff] }
  0x2b   :  { %224 = vst [vmem:[#allocation2 + $0x290] sm:$0xff] %v223_v18  ;;  %226 = vst [vmem:[#allocation2 + $0x298] sm:$0xff] %v225_v19  ;;  %v229_v21 = vld [vmem:[%s8738_s6 + $0x2a8] sm:$0xff]  ;;  %v231_v22 = vld [vmem:[%s8738_s6 + $0x2b0] sm:$0xff] }
  0x2c   :  { %228 = vst [vmem:[#allocation2 + $0x2a0] sm:$0xff] %v227_v20  ;;  %230 = vst [vmem:[#allocation2 + $0x2a8] sm:$0xff] %v229_v21  ;;  %v233_v23 = vld [vmem:[%s8738_s6 + $0x2b8] sm:$0xff]  ;;  %v235_v24 = vld [vmem:[%s8738_s6 + $0x2c0] sm:$0xff] }
  0x2d   :  { %232 = vst [vmem:[#allocation2 + $0x2b0] sm:$0xff] %v231_v22  ;;  %v237_v25 = vld [vmem:[%s8738_s6 + $0x2c8] sm:$0xff]  ;;  %234 = vst [vmem:[#allocation2 + $0x2b8] sm:$0xff] %v233_v23  ;;  %v239_v26 = vld [vmem:[%s8738_s6 + $0x2d0] sm:$0xff] }
  0x2e   :  { %236 = vst [vmem:[#allocation2 + $0x2c0] sm:$0xff] %v235_v24  ;;  %238 = vst [vmem:[#allocation2 + $0x2c8] sm:$0xff] %v237_v25  ;;  %v241_v27 = vld [vmem:[%s8738_s6 + $0x2d8] sm:$0xff]  ;;  %v243_v28 = vld [vmem:[%s8738_s6 + $0x2e0] sm:$0xff] }
  0x2f   :  { %240 = vst [vmem:[#allocation2 + $0x2d0] sm:$0xff] %v239_v26  ;;  %242 = vst [vmem:[#allocation2 + $0x2d8] sm:$0xff] %v241_v27  ;;  %v245_v29 = vld [vmem:[%s8738_s6 + $0x2e8] sm:$0xff]  ;;  %v247_v30 = vld [vmem:[%s8738_s6 + $0x2f0] sm:$0xff] }
  0x30   :  { %244 = vst [vmem:[#allocation2 + $0x2e0] sm:$0xff] %v243_v28  ;;  %v249_v31 = vld [vmem:[%s8738_s6 + $0x2f8] sm:$0xff]  ;;  %246 = vst [vmem:[#allocation2 + $0x2e8] sm:$0xff] %v245_v29  ;;  %v251_v32 = vld [vmem:[%s8738_s6 + $0x300] sm:$0xff] }
  0x31   :  { %248 = vst [vmem:[#allocation2 + $0x2f0] sm:$0xff] %v247_v30  ;;  %250 = vst [vmem:[#allocation2 + $0x2f8] sm:$0xff] %v249_v31  ;;  %v253_v33 = vld [vmem:[%s8738_s6 + $0x308] sm:$0xff]  ;;  %v255_v34 = vld [vmem:[%s8738_s6 + $0x310] sm:$0xff] }
  0x32   :  { %252 = vst [vmem:[#allocation2 + $0x300] sm:$0xff] %v251_v32  ;;  %254 = vst [vmem:[#allocation2 + $0x308] sm:$0xff] %v253_v33  ;;  %v257_v35 = vld [vmem:[%s8738_s6 + $0x318] sm:$0xff]  ;;  %v259_v36 = vld [vmem:[%s8738_s6 + $0x320] sm:$0xff] }
  0x33   :  { %256 = vst [vmem:[#allocation2 + $0x310] sm:$0xff] %v255_v34  ;;  %v261_v37 = vld [vmem:[%s8738_s6 + $0x328] sm:$0xff]  ;;  %258 = vst [vmem:[#allocation2 + $0x318] sm:$0xff] %v257_v35  ;;  %v263_v38 = vld [vmem:[%s8738_s6 + $0x330] sm:$0xff] }
  0x34   :  { %260 = vst [vmem:[#allocation2 + $0x320] sm:$0xff] %v259_v36  ;;  %262 = vst [vmem:[#allocation2 + $0x328] sm:$0xff] %v261_v37  ;;  %v265_v39 = vld [vmem:[%s8738_s6 + $0x338] sm:$0xff]  ;;  %v267_v40 = vld [vmem:[%s8738_s6 + $0x340] sm:$0xff] }
  0x35   :  { %264 = vst [vmem:[#allocation2 + $0x330] sm:$0xff] %v263_v38  ;;  %266 = vst [vmem:[#allocation2 + $0x338] sm:$0xff] %v265_v39  ;;  %v269_v41 = vld [vmem:[%s8738_s6 + $0x348] sm:$0xff]  ;;  %v271_v42 = vld [vmem:[%s8738_s6 + $0x350] sm:$0xff] }
  0x36   :  { %268 = vst [vmem:[#allocation2 + $0x340] sm:$0xff] %v267_v40  ;;  %v273_v43 = vld [vmem:[%s8738_s6 + $0x358] sm:$0xff]  ;;  %270 = vst [vmem:[#allocation2 + $0x348] sm:$0xff] %v269_v41  ;;  %v275_v44 = vld [vmem:[%s8738_s6 + $0x360] sm:$0xff] }
  0x37   :  { %272 = vst [vmem:[#allocation2 + $0x350] sm:$0xff] %v271_v42  ;;  %274 = vst [vmem:[#allocation2 + $0x358] sm:$0xff] %v273_v43  ;;  %v277_v45 = vld [vmem:[%s8738_s6 + $0x368] sm:$0xff]  ;;  %v279_v46 = vld [vmem:[%s8738_s6 + $0x370] sm:$0xff] }
  0x38   :  { %276 = vst [vmem:[#allocation2 + $0x360] sm:$0xff] %v275_v44  ;;  %278 = vst [vmem:[#allocation2 + $0x368] sm:$0xff] %v277_v45  ;;  %v281_v47 = vld [vmem:[%s8738_s6 + $0x378] sm:$0xff] }
  0x39   :  { %280 = vst [vmem:[#allocation2 + $0x370] sm:$0xff] %v279_v46  ;;  %282 = vst [vmem:[#allocation2 + $0x378] sm:$0xff] %v281_v47 }
  0x3a   :  { %290 = vsyncadd [#allocation4], 14336  ;;  %v325_v48 = vld [vmem:[%s8739_s7] sm:$0xff]  ;;  %v327_v49 = vld [vmem:[%s8739_s7 + $0x8] sm:$0xff] }
  0x3b   :  { %326 = vst [vmem:[#allocation3] sm:$0xff] %v325_v48  ;;  %328 = vst [vmem:[#allocation3 + $0x8] sm:$0xff] %v327_v49  ;;  %v329_v50 = vld [vmem:[%s8739_s7 + $0x10] sm:$0xff]  ;;  %v331_v51 = vld [vmem:[%s8739_s7 + $0x18] sm:$0xff] }
  0x3c   :  { %v333_v52 = vld [vmem:[%s8739_s7 + $0x20] sm:$0xff]  ;;  %330 = vst [vmem:[#allocation3 + $0x10] sm:$0xff] %v329_v50  ;;  %332 = vst [vmem:[#allocation3 + $0x18] sm:$0xff] %v331_v51  ;;  %v335_v53 = vld [vmem:[%s8739_s7 + $0x28] sm:$0xff] }
  0x3d   :  { %334 = vst [vmem:[#allocation3 + $0x20] sm:$0xff] %v333_v52  ;;  %v337_v54 = vld [vmem:[%s8739_s7 + $0x30] sm:$0xff]  ;;  %v339_v55 = vld [vmem:[%s8739_s7 + $0x38] sm:$0xff]  ;;  %336 = vst [vmem:[#allocation3 + $0x28] sm:$0xff] %v335_v53 }
  0x3e   :  { %338 = vst [vmem:[#allocation3 + $0x30] sm:$0xff] %v337_v54  ;;  %340 = vst [vmem:[#allocation3 + $0x38] sm:$0xff] %v339_v55 }
  0x3f   :  { %348 = vsyncadd [#allocation4 + $0x1], 1024  ;;  %v7468_v56 = vld [vmem:[%s8734_s2 + $0xe4] ss:$16 sps:$4 sm:$0xff]   ;;  %v7057_v57 = vmov 0   ;;  %v352_v23 = vld [vmem:[%s8732_s0 + $0x8] sm:$0xff]  ;;  %v364_v41 = vlaneseq }
  0x40   :  { %645 = vmatprep.mubr.bf16.mxu0 %v7057_v57  ;;  %688 = vmatprep.mubr.bf16.mxu1 %v7057_v57  ;;  %v7475_v58 = vld [vmem:[%s8734_s2 + $0xec] ss:$16 sps:$4 sm:$0xff]   ;;  %v7480_v59 = vld [vmem:[%s8734_s2 + $0xe0] ss:$16 sps:$4 sm:$0xff]   ;;  %v7485_v60 = vld [vmem:[%s8734_s2 + $0xe8] ss:$16 sps:$4 sm:$0xff]  }
  0x41   :  { %6531 = vset.pattern.permute.xlu0 %v7057_v57  ;;  %6532 = vset.pattern.permute.xlu1 %v7057_v57  ;;  %v7493_v61 = vld [vmem:[%s8734_s2 + $0xc4] ss:$16 sps:$4 sm:$0xff]   ;;  %v7500_v62 = vld [vmem:[%s8734_s2 + $0xcc] ss:$16 sps:$4 sm:$0xff]   ;;  %v7507_v63 = vld [vmem:[%s8734_s2 + $0xc0] ss:$16 sps:$4 sm:$0xff]  }
  0x42   :  { %613 = vmatprep.subr.bf16.mxu0 %v7468_v56  ;;  %656 = vmatprep.subr.bf16.mxu1 %v7475_v58  ;;  %v7512_v0 = vld [vmem:[%s8734_s2 + $0xc8] ss:$16 sps:$4 sm:$0xff]   ;;  %v7518_v1 = vld [vmem:[%s8734_s2 + $0xa4] ss:$16 sps:$4 sm:$0xff]   ;;  %v7523_v2 = vld [vmem:[%s8734_s2 + $0xac] ss:$16 sps:$4 sm:$0xff]  }
  0x43   :  { %614 = vmatpush1.bf16.msra.mxu0 %v7480_v59  ;;  %657 = vmatpush1.bf16.msra.mxu1 %v7485_v60  ;;  %v7528_v3 = vld [vmem:[%s8734_s2 + $0xa0] ss:$16 sps:$4 sm:$0xff]   ;;  %v7534_v4 = vld [vmem:[%s8734_s2 + $0xa8] ss:$16 sps:$4 sm:$0xff]   ;;  %v7541_v5 = vld [vmem:[%s8734_s2 + $0x84] ss:$16 sps:$4 sm:$0xff]  }
  0x44   :  { %615 = vmatprep.subr.bf16.mxu0 %v7493_v61  ;;  %658 = vmatprep.subr.bf16.mxu1 %v7500_v62  ;;  %v7547_v6 = vld [vmem:[%s8734_s2 + $0x8c] ss:$16 sps:$4 sm:$0xff]   ;;  %v7553_v7 = vld [vmem:[%s8734_s2 + $0x80] ss:$16 sps:$4 sm:$0xff]   ;;  %v7560_v8 = vld [vmem:[%s8734_s2 + $0x88] ss:$16 sps:$4 sm:$0xff]  }
  0x45   :  { %v7565_v9 = vld [vmem:[%s8734_s2 + $0x64] ss:$16 sps:$4 sm:$0xff]   ;;  %v7571_v10 = vld [vmem:[%s8734_s2 + $0x6c] ss:$16 sps:$4 sm:$0xff]   ;;  %v7576_v11 = vld [vmem:[%s8734_s2 + $0x60] ss:$16 sps:$4 sm:$0xff]  }
  0x46   :  { %v7582_v12 = vld [vmem:[%s8734_s2 + $0x68] ss:$16 sps:$4 sm:$0xff]   ;;  %v7589_v13 = vld [vmem:[%s8734_s2 + $0x44] ss:$16 sps:$4 sm:$0xff]   ;;  %v7595_v14 = vld [vmem:[%s8734_s2 + $0x4c] ss:$16 sps:$4 sm:$0xff]  }
  0x47   :  { %616 = vmatpush1.bf16.msra.mxu0 %v7507_v63  ;;  %659 = vmatpush1.bf16.msra.mxu1 %v7512_v0  ;;  %v7601_v15 = vld [vmem:[%s8734_s2 + $0x40] ss:$16 sps:$4 sm:$0xff]   ;;  %v7608_v16 = vld [vmem:[%s8734_s2 + $0x48] ss:$16 sps:$4 sm:$0xff]   ;;  %v7613_v17 = vld [vmem:[%s8734_s2 + $0x24] ss:$16 sps:$4 sm:$0xff]  }
  0x48   :  { %617 = vmatprep.subr.bf16.mxu0 %v7518_v1  ;;  %660 = vmatprep.subr.bf16.mxu1 %v7523_v2  ;;  %v351_v18 = vld [vmem:[%s8732_s0] sm:$0xff]  ;;  %v7622_v19 = vld [vmem:[%s8734_s2 + $0x2c] ss:$16 sps:$4 sm:$0xff]   ;;  %v7632_v21 = vld [vmem:[%s8734_s2 + $0x28] ss:$16 sps:$4 sm:$0xff]   ;;  %v365_v42 = vshrl.u32 %v364_v41, 7 }
  0x49   :  { %v7627_v20 = vld [vmem:[%s8734_s2 + $0x20] ss:$16 sps:$4 sm:$0xff]   ;;  %355 = vperm.xlu0 %6531, %v351_v18   ;;  %v7637_v22 = vld [vmem:[%s8734_s2 + $0x4] ss:$16 sps:$4 sm:$0xff]   ;;  %v7646_v24 = vld [vmem:[%s8734_s2 + $0xc] ss:$16 sps:$4 sm:$0xff]  }
  0x4a   :  { %v5729_v25 = vld [vmem:[%s8732_s0 + $0x20] sm:$0xff]  ;;  %v7662_v27 = vld [vmem:[%s8734_s2 + $0x8] ss:$16 sps:$4 sm:$0xff]   ;;  %v5769_v28 = vld [vmem:[%s8732_s0 + $0x30] sm:$0xff]  ;;  %v366_v43 = vsub.s32 0, %v365_v42  ;;  %v370_v45 = vsub.s32 1, %v365_v42 }
  0x4b   :  { %618 = vmatpush1.bf16.msra.mxu0 %v7528_v3  ;;  %661 = vmatpush1.bf16.msra.mxu1 %v7534_v4  ;;  %v7657_v26 = vld [vmem:[%s8734_s2] ss:$16 sps:$4 sm:$0xff]   ;;  %v5690_v34 = vld [vmem:[%s8732_s0 + $0x18] sm:$0xff]  ;;  %v5730_v35 = vld [vmem:[%s8732_s0 + $0x28] sm:$0xff]  ;;  %v374_v54 = vsub.s32 2, %v365_v42 }
  0x4c   :  { %619 = vmatprep.subr.bf16.mxu0 %v7541_v5  ;;  %662 = vmatprep.subr.bf16.mxu1 %v7547_v6  ;;  %v5809_v29 = vld [vmem:[%s8732_s0 + $0x40] sm:$0xff]  ;;  %v5849_v30 = vld [vmem:[%s8732_s0 + $0x50] sm:$0xff]  ;;  %v5770_v36 = vld [vmem:[%s8732_s0 + $0x38] sm:$0xff] }
  0x4d   :  { %360 = vperm.xlu0 %6531, %v352_v23   ;;  %v5889_v31 = vld [vmem:[%s8732_s0 + $0x60] sm:$0xff]  ;;  %v5929_v32 = vld [vmem:[%s8732_s0 + $0x70] sm:$0xff]  ;;  %v5810_v37 = vld [vmem:[%s8732_s0 + $0x48] sm:$0xff] }
  0x4e   :  { %v5689_v33 = vld [vmem:[%s8732_s0 + $0x10] sm:$0xff]  ;;  %v5850_v38 = vld [vmem:[%s8732_s0 + $0x58] sm:$0xff]  ;;  %v5890_v39 = vld [vmem:[%s8732_s0 + $0x68] sm:$0xff] }
  0x4f   :  { %620 = vmatpush1.bf16.msra.mxu0 %v7553_v7  ;;  %663 = vmatpush1.bf16.msra.mxu1 %v7560_v8  ;;  %v5930_v40 = vld [vmem:[%s8732_s0 + $0x78] sm:$0xff]  ;;  %v349_v44 = vld [vmem:[%s8733_s1] sm:$0xf] }
  0x50   :  { %621 = vmatprep.subr.bf16.mxu0 %v7565_v9  ;;  %664 = vmatprep.subr.bf16.mxu1 %v7571_v10  ;;  %v7750_v46 = vrot.slane %v349_v44, %v366_v43  ;;  %v350_v47 = vld [vmem:[%s8735_s3] sm:$0xf]  ;;  %v7755_v48 = vrot.slane %v349_v44, %v370_v45  ;;  %v7766_v23 = vrot.slane %v349_v44, %v374_v54 }
  0x51   :  { %1129 = vperm.xlu0 %6531, %v5729_v25   ;;  %762 = vperm.xlu1 %6532, %v5689_v33   ;;  %v7758_v51 = vrot.slane %v350_v47, %v366_v43  ;;  %v7761_v53 = vrot.slane %v350_v47, %v370_v45 }
  0x53   :  { %622 = vmatpush1.bf16.msra.mxu0 %v7576_v11  ;;  %665 = vmatpush1.bf16.msra.mxu1 %v7582_v12 }
  0x54   :  { %623 = vmatprep.subr.bf16.mxu0 %v7589_v13  ;;  %666 = vmatprep.subr.bf16.mxu1 %v7595_v14 }
  0x55   :  { %1496 = vperm.xlu0 %6531, %v5769_v28   ;;  %767 = vperm.xlu1 %6532, %v5690_v34  }
  0x57   :  { %624 = vmatpush1.bf16.msra.mxu0 %v7601_v15  ;;  %667 = vmatpush1.bf16.msra.mxu1 %v7608_v16 }
  0x58   :  { %625 = vmatprep.subr.bf16.mxu0 %v7613_v17  ;;  %668 = vmatprep.subr.bf16.mxu1 %v7622_v19 }
  0x59   :  { %1863 = vperm.xlu0 %6531, %v5809_v29   ;;  %1134 = vperm.xlu1 %6532, %v5730_v35  }
  0x5b   :  { %626 = vmatpush1.bf16.msra.mxu0 %v7627_v20  ;;  %669 = vmatpush1.bf16.msra.mxu1 %v7632_v21 }
  0x5c   :  { %627 = vmatprep.subr.bf16.mxu0 %v7637_v22  ;;  %670 = vmatprep.subr.bf16.mxu1 %v7646_v24 }
  0x5d   :  { %2230 = vperm.xlu0 %6531, %v5849_v30   ;;  %1501 = vperm.xlu1 %6532, %v5770_v36   ;;  %v378_v30 = vsub.s32 3, %v365_v42  ;;  %v7771_v36 = vrot.slane %v350_v47, %v374_v54 }
  0x5f   :  { %628 = vmatpush1.bf16.msra.mxu0 %v7657_v26  ;;  %671 = vmatpush1.bf16.msra.mxu1 %v7662_v27  ;;  %v7774_v43 = vrot.slane %v349_v44, %v378_v30 }
  0x60   :  { %979 = vmatprep.subr.bf16.mxu0 %v7468_v56  ;;  %1022 = vmatprep.subr.bf16.mxu1 %v7475_v58 }
  0x61   :  { %2597 = vperm.xlu0 %6531, %v5889_v31   ;;  %1868 = vperm.xlu1 %6532, %v5810_v37  }
  0x62   :  { %646 = vmatmul.mubr.bf16.vlgmr.msra.gmra.mxu0 %v7057_v57  ;;  %689 = vmatmul.mubr.bf16.vlgmr.msra.gmra.mxu1 %v7057_v57 }
  0x63   :  { %980 = vmatpush1.bf16.msra.mxu0 %v7480_v59  ;;  %1023 = vmatpush1.bf16.msra.mxu1 %v7485_v60 }
  0x64   :  { %981 = vmatprep.subr.bf16.mxu0 %v7493_v61  ;;  %1024 = vmatprep.subr.bf16.mxu1 %v7500_v62 }
  0x65   :  { %1011 = vmatprep.mubr.bf16.mxu0 %v7057_v57  ;;  %1054 = vmatprep.mubr.bf16.mxu1 %v7057_v57 }
  0x66   :  { %2964 = vperm.xlu0 %6531, %v5929_v32   ;;  %2235 = vperm.xlu1 %6532, %v5850_v38  }
  0x67   :  { %982 = vmatpush1.bf16.msra.mxu0 %v7507_v63  ;;  %1025 = vmatpush1.bf16.msra.mxu1 %v7512_v0 }
  0x68   :  { %983 = vmatprep.subr.bf16.mxu0 %v7518_v1  ;;  %1026 = vmatprep.subr.bf16.mxu1 %v7523_v2 }
  0x6a   :  { %2602 = vperm.xlu1 %6532, %v5890_v39  }
  0x6b   :  { %984 = vmatpush1.bf16.msra.mxu0 %v7528_v3  ;;  %1027 = vmatpush1.bf16.msra.mxu1 %v7534_v4 }
  0x6c   :  { %985 = vmatprep.subr.bf16.mxu0 %v7541_v5  ;;  %1028 = vmatprep.subr.bf16.mxu1 %v7547_v6 }
  0x6e   :  { %2969 = vperm.xlu1 %6532, %v5930_v40  }
  0x6f   :  { %986 = vmatpush1.bf16.msra.mxu0 %v7553_v7  ;;  %1029 = vmatpush1.bf16.msra.mxu1 %v7560_v8 }
  0x70   :  { %987 = vmatprep.subr.bf16.mxu0 %v7565_v9  ;;  %1030 = vmatprep.subr.bf16.mxu1 %v7571_v10 }
  0x73   :  { %988 = vmatpush1.bf16.msra.mxu0 %v7576_v11  ;;  %1031 = vmatpush1.bf16.msra.mxu1 %v7582_v12 }
  0x74   :  { %989 = vmatprep.subr.bf16.mxu0 %v7589_v13  ;;  %1032 = vmatprep.subr.bf16.mxu1 %v7595_v14 }
  0x77   :  { %990 = vmatpush1.bf16.msra.mxu0 %v7601_v15  ;;  %1033 = vmatpush1.bf16.msra.mxu1 %v7608_v16 }
  0x78   :  { %991 = vmatprep.subr.bf16.mxu0 %v7613_v17  ;;  %1034 = vmatprep.subr.bf16.mxu1 %v7622_v19 }
  0x7b   :  { %992 = vmatpush1.bf16.msra.mxu0 %v7627_v20  ;;  %1035 = vmatpush1.bf16.msra.mxu1 %v7632_v21 }
  0x7c   :  { %993 = vmatprep.subr.bf16.mxu0 %v7637_v22  ;;  %1036 = vmatprep.subr.bf16.mxu1 %v7646_v24 }
  0x7f   :  { %994 = vmatpush1.bf16.msra.mxu0 %v7657_v26  ;;  %1037 = vmatpush1.bf16.msra.mxu1 %v7662_v27 }
  0x80   :  { %1346 = vmatprep.subr.bf16.mxu0 %v7468_v56  ;;  %1389 = vmatprep.subr.bf16.mxu1 %v7475_v58 }
  0xc4   :  { %v356_v49 = vpop.permute.xlu0 %355 }
  0xc5   :  { %v384_v50 = vmul.f32 %v7750_v46, %v356_v49  ;;  %v385_v52 = vmul.f32 %v7755_v48, %v356_v49  ;;  %v386_v35 = vmul.f32 %v7766_v23, %v356_v49  ;;  %v387_v54 = vmul.f32 %v7774_v43, %v356_v49 }
  0xc7   :  { %v413_v55 = vadd.f32 %v7758_v51, %v384_v50  ;;  %v414_v58 = vadd.f32 %v7761_v53, %v385_v52  ;;  %v415_v52 = vadd.f32 %v7771_v36, %v386_v35 }
  0xc8   :  { %v361_v56 = vpop.permute.xlu0 %360 }
  0xc9   :  { %v388_v18 = vmul.f32 %v7750_v46, %v361_v56  ;;  %v389_v29 = vmul.f32 %v7755_v48, %v361_v56 }
  0xcb   :  { %v417_v34 = vadd.f32 %v7758_v51, %v388_v18  ;;  %v418_v41 = vadd.f32 %v7761_v53, %v389_v29  ;;  %v7778_v18 = vrot.slane %v350_v47, %v378_v30 }
  0xcd   :  { %v416_v44 = vadd.f32 %v7778_v18, %v387_v54 }
 0x122   :  { %v647_v25 = vpop.f32.mrf.mxu0  ;;  %v690_v38 = vpop.f32.mrf.mxu1 }
 0x123   :  { %v699_v28 = vadd.f32 %v647_v25, %v413_v55  ;;  %v390_v25 = vmul.f32 %v7766_v23, %v361_v56 }
 0x124   :  { %v649_v31 = vpop.f32.mrf.mxu0  ;;  %v692_v55 = vpop.f32.mrf.mxu1 }
 0x125   :  { %v5683_v32 = vmul.f32 -1.442695, %v699_v28  ;;  %v700_v33 = vadd.f32 %v649_v31, %v414_v58  ;;  %v701_v28 = vadd.f32 %v690_v38, %v415_v52  ;;  %v419_v31 = vadd.f32 %v7771_v36, %v390_v25 }
 0x126   :  { %v651_v37 = vpop.f32.mrf.mxu0  ;;  %v694_v29 = vpop.f32.mrf.mxu1 }
 0x127   :  { %6677 = vpow2.f32 %v5683_v32  ;;  %v5684_v39 = vmul.f32 -1.442695, %v700_v33  ;;  %v703_v40 = vadd.f32 %v651_v37, %v417_v34  ;;  %v5685_v32 = vmul.f32 -1.442695, %v701_v28 }
 0x128   :  { %v653_v45 = vpop.f32.mrf.mxu0  ;;  %v705_v33 = vadd.f32 %v694_v29, %v419_v31  ;;  %v391_v34 = vmul.f32 %v7774_v43, %v361_v56  ;;  %v702_v37 = vadd.f32 %v692_v55, %v416_v44 }
 0x129   :  { %6679 = vpow2.f32 %v5684_v39  ;;  %v5686_v42 = vmul.f32 -1.442695, %v703_v40  ;;  %v704_v50 = vadd.f32 %v653_v45, %v418_v41  ;;  %v696_v40 = vpop.f32.mrf.mxu1 }
 0x12a   :  { %v5688_v47 = vmul.f32 -1.442695, %v705_v33  ;;  %v420_v30 = vadd.f32 %v7778_v18, %v391_v34 }
 0x12b   :  { %6681 = vpow2.f32 %v5686_v42  ;;  %v5687_v58 = vmul.f32 -1.442695, %v704_v50 }
 0x12c   :  { %v706_v45 = vadd.f32 %v696_v40, %v420_v30 }
 0x12d   :  { %6683 = vpow2.f32 %v5687_v58 }
 0x12e   :  { %6685 = vpow2.f32 %v5685_v32 }
 0x134   :  { %v6678_v35 = vpop.eup %6677 }
 0x135   :  { %v725_v39 = vadd.f32 1.0, %v6678_v35 }
 0x136   :  { %v6680_v49 = vpop.eup %6679 }
 0x137   :  { %6687 = vrcp.f32 %v725_v39  ;;  %v726_v38 = vadd.f32 1.0, %v6680_v49 }
 0x138   :  { %v6682_v41 = vpop.eup %6681  ;;  %6689 = vtanh.f32 %v702_v37 }
 0x139   :  { %6691 = vrcp.f32 %v726_v38  ;;  %v728_v42 = vadd.f32 1.0, %v6682_v41 }
 0x13a   :  { %v6684_v50 = vpop.eup %6683  ;;  %6693 = vpow2.f32 %v5688_v47 }
 0x13b   :  { %6695 = vrcp.f32 %v728_v42  ;;  %v729_v56 = vadd.f32 1.0, %v6684_v50  ;;  %v6686_v52 = vpop.eup %6685 }
 0x13c   :  { %6697 = vtanh.f32 %v706_v45  ;;  %v727_v25 = vadd.f32 1.0, %v6686_v52 }
 0x13d   :  { %6699 = vrcp.f32 %v729_v56 }
 0x13e   :  { %6701 = vrcp.f32 %v727_v25 }
 0x144   :  { %v6688_v55 = vpop.eup %6687 }
 0x145   :  { %v6690_v58 = vpop.eup %6689 }
 0x146   :  { %v6692_v54 = vpop.eup %6691  ;;  %v747_v44 = vmul.f32 %v6690_v58, %v6688_v55 }
 0x147   :  { %v6694_v28 = vpop.eup %6693  ;;  %v745_v29 = vmul.f32 0.0, %v6692_v54 }
 0x148   :  { %v6696_v31 = vpop.eup %6695  ;;  %v730_v35 = vadd.f32 1.0, %v6694_v28 }
 0x149   :  { %v6698_v32 = vpop.eup %6697  ;;  %v7785_v33 = vadd.f32 %v747_v44, %v745_v29 }
 0x14a   :  { %v6700_v34 = vpop.eup %6699  ;;  %v748_v39 = vmul.f32 %v6698_v32, %v6696_v31 }
 0x14b   :  { %6703 = vtanh.f32 %v7785_v33  ;;  %v746_v37 = vmul.f32 0.0, %v6700_v34  ;;  %v6702_v49 = vpop.eup %6701 }
 0x14c   :  { %6705 = vrcp.f32 %v730_v35 }
 0x14d   :  { %v7788_v40 = vadd.f32 %v748_v39, %v746_v37 }
 0x14f   :  { %6707 = vtanh.f32 %v7788_v40 }
 0x158   :  { %v6704_v47 = vpop.eup %6703 }
 0x159   :  { %v753_v30 = vmul.f32 %v6704_v47, %v6702_v49  ;;  %v6706_v38 = vpop.eup %6705 }
 0x15b   :  { %755 = vst [vmem:[#allocation5] sm:$0xff] %v753_v30 }
 0x15c   :  { %v6708_v41 = vpop.eup %6707 }
 0x15d   :  { %v754_v45 = vmul.f32 %v6708_v41, %v6706_v38 }
 0x15f   :  { %756 = vst [vmem:[#allocation5 + $0x8] sm:$0xff] %v754_v45  ;;  %v786_v42 = vpack.c.bf16 %v754_v45, %v753_v30 }
 0x161   :  { %1012 = vmatmul.mubr.bf16.vlgmr.msra.gmra.mxu0 %v786_v42  ;;  %1055 = vmatmul.mubr.bf16.vlgmr.msra.gmra.mxu1 %v786_v42 }
 0x162   :  { %1347 = vmatpush1.bf16.msra.mxu0 %v7480_v59  ;;  %1390 = vmatpush1.bf16.msra.mxu1 %v7485_v60  ;;  %v763_v59 = vpop.permute.xlu1 %762 }
 0x163   :  { %1348 = vmatprep.subr.bf16.mxu0 %v7493_v61  ;;  %1391 = vmatprep.subr.bf16.mxu1 %v7500_v62  ;;  %v770_v60 = vmul.f32 %v763_v59, %v7750_v46  ;;  %v771_v61 = vmul.f32 %v763_v59, %v7755_v48 }
 0x164   :  { %1378 = vmatprep.mubr.bf16.mxu0 %v7057_v57  ;;  %1421 = vmatprep.mubr.bf16.mxu1 %v7057_v57 }
 0x165   :  { %v778_v62 = vadd.f32 %v770_v60, %v7758_v51 }
 0x166   :  { %1349 = vmatpush1.bf16.msra.mxu0 %v7507_v63  ;;  %1392 = vmatpush1.bf16.msra.mxu1 %v7512_v0  ;;  %v768_v63 = vpop.permute.xlu1 %767  ;;  %v779_v0 = vadd.f32 %v771_v61, %v7761_v53 }
 0x167   :  { %1350 = vmatprep.subr.bf16.mxu0 %v7518_v1  ;;  %1393 = vmatprep.subr.bf16.mxu1 %v7523_v2  ;;  %v774_v1 = vmul.f32 %v768_v63, %v7750_v46  ;;  %v777_v58 = vmul.f32 %v768_v63, %v7774_v43 }
 0x169   :  { %v785_v32 = vadd.f32 %v777_v58, %v7778_v18  ;;  %v7958_v58 = vld [vmem:[%s8734_s2 + $0x60] ss:$16 sps:$4 sm:$0xff]  }
 0x16a   :  { %1351 = vmatpush1.bf16.msra.mxu0 %v7528_v3  ;;  %1394 = vmatpush1.bf16.msra.mxu1 %v7534_v4  ;;  %v775_v4 = vmul.f32 %v768_v63, %v7755_v48 }
 0x16b   :  { %1352 = vmatprep.subr.bf16.mxu0 %v7541_v5  ;;  %1395 = vmatprep.subr.bf16.mxu1 %v7547_v6 }
 0x16e   :  { %1353 = vmatpush1.bf16.msra.mxu0 %v7553_v7  ;;  %1396 = vmatpush1.bf16.msra.mxu1 %v7560_v8  ;;  %v782_v8 = vadd.f32 %v774_v1, %v7758_v51 }
 0x16f   :  { %1354 = vmatprep.subr.bf16.mxu0 %v7565_v9  ;;  %1397 = vmatprep.subr.bf16.mxu1 %v7571_v10  ;;  %v772_v9 = vmul.f32 %v763_v59, %v7766_v23 }
 0x172   :  { %1355 = vmatpush1.bf16.msra.mxu0 %v7576_v11  ;;  %1398 = vmatpush1.bf16.msra.mxu1 %v7582_v12 }
 0x173   :  { %1356 = vmatprep.subr.bf16.mxu0 %v7589_v13  ;;  %1399 = vmatprep.subr.bf16.mxu1 %v7595_v14  ;;  %v783_v14 = vadd.f32 %v775_v4, %v7761_v53 }
 0x176   :  { %1357 = vmatpush1.bf16.msra.mxu0 %v7601_v15  ;;  %1400 = vmatpush1.bf16.msra.mxu1 %v7608_v16 }
 0x177   :  { %1358 = vmatprep.subr.bf16.mxu0 %v7613_v17  ;;  %1401 = vmatprep.subr.bf16.mxu1 %v7622_v19  ;;  %v780_v19 = vadd.f32 %v772_v9, %v7771_v36 }
 0x17a   :  { %1359 = vmatpush1.bf16.msra.mxu0 %v7627_v20  ;;  %1402 = vmatpush1.bf16.msra.mxu1 %v7632_v21 }
 0x17b   :  { %1360 = vmatprep.subr.bf16.mxu0 %v7637_v22  ;;  %1403 = vmatprep.subr.bf16.mxu1 %v7646_v24  ;;  %v773_v22 = vmul.f32 %v763_v59, %v7774_v43  ;;  %v776_v24 = vmul.f32 %v768_v63, %v7766_v23 }
 0x17d   :  { %v781_v50 = vadd.f32 %v773_v22, %v7778_v18  ;;  %v784_v56 = vadd.f32 %v776_v24, %v7771_v36  ;;  %v7910_v22 = vld [vmem:[%s8734_s2 + $0xa0] ss:$16 sps:$4 sm:$0xff]   ;;  %v7915_v24 = vld [vmem:[%s8734_s2 + $0xa8] ss:$16 sps:$4 sm:$0xff]  }
 0x17e   :  { %1361 = vmatpush1.bf16.msra.mxu0 %v7657_v26  ;;  %1404 = vmatpush1.bf16.msra.mxu1 %v7662_v27 }
 0x221   :  { %v1013_v2 = vpop.f32.mrf.mxu0  ;;  %v1056_v11 = vpop.f32.mrf.mxu1 }
 0x222   :  { %v1065_v3 = vadd.f32 %v1013_v2, %v778_v62  ;;  %v1067_v26 = vadd.f32 %v1056_v11, %v780_v19  ;;  %v7891_v19 = vld [vmem:[%s8734_s2 + $0xc8] ss:$16 sps:$4 sm:$0xff]  }
 0x223   :  { %v1015_v5 = vpop.f32.mrf.mxu0  ;;  %v1058_v20 = vpop.f32.mrf.mxu1 }
 0x224   :  { %v5723_v6 = vmul.f32 -1.442695, %v1065_v3  ;;  %v1066_v7 = vadd.f32 %v1015_v5, %v779_v0  ;;  %v5725_v52 = vmul.f32 -1.442695, %v1067_v26  ;;  %v1068_v25 = vadd.f32 %v1058_v20, %v781_v50  ;;  %v7900_v20 = vld [vmem:[%s8734_s2 + $0xa4] ss:$16 sps:$4 sm:$0xff]  }
 0x225   :  { %v1017_v10 = vpop.f32.mrf.mxu0  ;;  %v1060_v27 = vpop.f32.mrf.mxu1  ;;  %v7924_v26 = vld [vmem:[%s8734_s2 + $0x84] ss:$16 sps:$4 sm:$0xff]   ;;  %v7934_v50 = vld [vmem:[%s8734_s2 + $0x80] ss:$16 sps:$4 sm:$0xff]  }
 0x226   :  { %6709 = vpow2.f32 %v5723_v6  ;;  %v5724_v12 = vmul.f32 -1.442695, %v1066_v7  ;;  %v1069_v13 = vadd.f32 %v1017_v10, %v782_v8  ;;  %v1071_v55 = vadd.f32 %v1060_v27, %v784_v56  ;;  %v7929_v27 = vld [vmem:[%s8734_s2 + $0x8c] ss:$16 sps:$4 sm:$0xff]   ;;  %v7939_v56 = vld [vmem:[%s8734_s2 + $0x88] ss:$16 sps:$4 sm:$0xff]  }
 0x227   :  { %v1019_v15 = vpop.f32.mrf.mxu0  ;;  %v1062_v29 = vpop.f32.mrf.mxu1 }
 0x228   :  { %6711 = vpow2.f32 %v5724_v12  ;;  %v5726_v16 = vmul.f32 -1.442695, %v1069_v13  ;;  %v1070_v17 = vadd.f32 %v1019_v15, %v783_v14  ;;  %v5728_v31 = vmul.f32 -1.442695, %v1071_v55  ;;  %v7857_v12 = vld [vmem:[%s8734_s2 + $0xec] ss:$16 sps:$4 sm:$0xff]  }
 0x229   :  { %v1072_v37 = vadd.f32 %v1062_v29, %v785_v32  ;;  %v7862_v13 = vld [vmem:[%s8734_s2 + $0xe0] ss:$16 sps:$4 sm:$0xff]   ;;  %v7867_v14 = vld [vmem:[%s8734_s2 + $0xe8] ss:$16 sps:$4 sm:$0xff]   ;;  %1756 = vmatprep.subr.bf16.mxu1 %v7857_v12  ;;  %v7876_v15 = vld [vmem:[%s8734_s2 + $0xc4] ss:$16 sps:$4 sm:$0xff]  }
 0x22a   :  { %6713 = vpow2.f32 %v5726_v16  ;;  %v5727_v21 = vmul.f32 -1.442695, %v1070_v17  ;;  %v7881_v16 = vld [vmem:[%s8734_s2 + $0xcc] ss:$16 sps:$4 sm:$0xff]   ;;  %v7886_v17 = vld [vmem:[%s8734_s2 + $0xc0] ss:$16 sps:$4 sm:$0xff]  }
 0x22b   :  { %v7951_v55 = vld [vmem:[%s8734_s2 + $0x6c] ss:$16 sps:$4 sm:$0xff]   ;;  %v7982_v29 = vld [vmem:[%s8734_s2 + $0x40] ss:$16 sps:$4 sm:$0xff]  }
 0x22c   :  { %6715 = vpow2.f32 %v5727_v21  ;;  %v7905_v21 = vld [vmem:[%s8734_s2 + $0xac] ss:$16 sps:$4 sm:$0xff]  }
 0x22d   :  { %6717 = vpow2.f32 %v5725_v52  ;;  %v7946_v52 = vld [vmem:[%s8734_s2 + $0x64] ss:$16 sps:$4 sm:$0xff]   ;;  %v7999_v32 = vld [vmem:[%s8734_s2 + $0x2c] ss:$16 sps:$4 sm:$0xff]  }
 0x233   :  { %v6710_v54 = vpop.eup %6709 }
 0x234   :  { %v1091_v28 = vadd.f32 1.0, %v6710_v54  ;;  %v7963_v54 = vld [vmem:[%s8734_s2 + $0x68] ss:$16 sps:$4 sm:$0xff]  }
 0x235   :  { %v6712_v44 = vpop.eup %6711 }
 0x236   :  { %6719 = vrcp.f32 %v1091_v28  ;;  %v1092_v34 = vadd.f32 1.0, %v6712_v44  ;;  %v7975_v28 = vld [vmem:[%s8734_s2 + $0x4c] ss:$16 sps:$4 sm:$0xff]   ;;  %v7987_v44 = vld [vmem:[%s8734_s2 + $0x48] ss:$16 sps:$4 sm:$0xff]  }
 0x237   :  { %v6714_v35 = vpop.eup %6713  ;;  %6721 = vtanh.f32 %v1068_v25  ;;  %v7970_v25 = vld [vmem:[%s8734_s2 + $0x44] ss:$16 sps:$4 sm:$0xff]  }
 0x238   :  { %6723 = vrcp.f32 %v1092_v34  ;;  %v1094_v39 = vadd.f32 1.0, %v6714_v35  ;;  %v8006_v34 = vld [vmem:[%s8734_s2 + $0x20] ss:$16 sps:$4 sm:$0xff]   ;;  %v8011_v35 = vld [vmem:[%s8734_s2 + $0x28] ss:$16 sps:$4 sm:$0xff]  }
 0x239   :  { %v6716_v49 = vpop.eup %6715  ;;  %6725 = vpow2.f32 %v5728_v31  ;;  %v7994_v31 = vld [vmem:[%s8734_s2 + $0x24] ss:$16 sps:$4 sm:$0xff]  }
 0x23a   :  { %6727 = vrcp.f32 %v1094_v39  ;;  %v1095_v47 = vadd.f32 1.0, %v6716_v49  ;;  %v6718_v30 = vpop.eup %6717  ;;  %v8023_v39 = vld [vmem:[%s8734_s2 + $0xc] ss:$16 sps:$4 sm:$0xff]   ;;  %v8030_v49 = vld [vmem:[%s8734_s2] ss:$16 sps:$4 sm:$0xff]  }
 0x23b   :  { %6729 = vtanh.f32 %v1072_v37  ;;  %v1093_v42 = vadd.f32 1.0, %v6718_v30  ;;  %v8018_v37 = vld [vmem:[%s8734_s2 + $0x4] ss:$16 sps:$4 sm:$0xff]   ;;  %v1130_v30 = vpop.permute.xlu0 %1129 }
 0x23c   :  { %6731 = vrcp.f32 %v1095_v47  ;;  %v8035_v47 = vld [vmem:[%s8734_s2 + $0x8] ss:$16 sps:$4 sm:$0xff]  }
 0x23d   :  { %6733 = vrcp.f32 %v1093_v42 }
 0x243   :  { %v6720_v38 = vpop.eup %6719 }
 0x244   :  { %v6722_v41 = vpop.eup %6721 }
 0x245   :  { %v6724_v45 = vpop.eup %6723  ;;  %v1113_v61 = vmul.f32 %v6722_v41, %v6720_v38  ;;  %v1137_v38 = vmul.f32 %v1130_v30, %v7750_v46  ;;  %v1138_v41 = vmul.f32 %v1130_v30, %v7755_v48 }
 0x246   :  { %v6726_v59 = vpop.eup %6725  ;;  %v1111_v60 = vmul.f32 %v6724_v45, %v7785_v33  ;;  %v1135_v45 = vpop.permute.xlu1 %1134 }
 0x247   :  { %v6728_v62 = vpop.eup %6727  ;;  %v1096_v2 = vadd.f32 1.0, %v6726_v59  ;;  %v1145_v42 = vadd.f32 %v1137_v38, %v7758_v51  ;;  %v1141_v59 = vmul.f32 %v1135_v45, %v7750_v46 }
 0x248   :  { %v6730_v63 = vpop.eup %6729  ;;  %v7840_v0 = vadd.f32 %v1113_v61, %v1111_v60 }
 0x249   :  { %v6732_v1 = vpop.eup %6731  ;;  %v1114_v4 = vmul.f32 %v6730_v63, %v6728_v62  ;;  %v1146_v62 = vadd.f32 %v1138_v41, %v7761_v53  ;;  %v1142_v63 = vmul.f32 %v1135_v45, %v7755_v48 }
 0x24a   :  { %6735 = vtanh.f32 %v7840_v0  ;;  %v1112_v3 = vmul.f32 %v6732_v1, %v7788_v40  ;;  %v6734_v6 = vpop.eup %6733  ;;  %v7852_v40 = vld [vmem:[%s8734_s2 + $0xe4] ss:$16 sps:$4 sm:$0xff]  }
 0x24b   :  { %6737 = vrcp.f32 %v1096_v2  ;;  %1713 = vmatprep.subr.bf16.mxu0 %v7852_v40 }
 0x24c   :  { %v7844_v5 = vadd.f32 %v1114_v4, %v1112_v3  ;;  %v1149_v4 = vadd.f32 %v1141_v59, %v7758_v51  ;;  %v1143_v59 = vmul.f32 %v1135_v45, %v7766_v23 }
 0x24e   :  { %6739 = vtanh.f32 %v7844_v5 }
 0x257   :  { %v6736_v33 = vpop.eup %6735 }
 0x258   :  { %v1119_v7 = vmul.f32 %v6736_v33, %v6734_v6  ;;  %v6738_v8 = vpop.eup %6737 }
 0x25a   :  { %1122 = vst [vmem:[#allocation5 + $0x10] sm:$0xff] %v1119_v7 }
 0x25b   :  { %v6740_v9 = vpop.eup %6739 }
 0x25c   :  { %v1120_v10 = vmul.f32 %v6740_v9, %v6738_v8  ;;  %v1150_v9 = vadd.f32 %v1142_v63, %v7761_v53  ;;  %v1151_v63 = vadd.f32 %v1143_v59, %v7771_v36 }
 0x25e   :  { %1123 = vst [vmem:[#allocation5 + $0x18] sm:$0xff] %v1120_v10  ;;  %v1153_v11 = vpack.c.bf16 %v1120_v10, %v1119_v7  ;;  %v1139_v10 = vmul.f32 %v1130_v30, %v7766_v23 }
 0x260   :  { %1379 = vmatmul.mubr.bf16.vlgmr.msra.gmra.mxu0 %v1153_v11  ;;  %1422 = vmatmul.mubr.bf16.vlgmr.msra.gmra.mxu1 %v1153_v11 }
 0x261   :  { %1745 = vmatprep.mubr.bf16.mxu0 %v7057_v57  ;;  %1788 = vmatprep.mubr.bf16.mxu1 %v7057_v57 }
 0x262   :  { %1714 = vmatpush1.bf16.msra.mxu0 %v7862_v13  ;;  %1757 = vmatpush1.bf16.msra.mxu1 %v7867_v14 }
 0x263   :  { %1715 = vmatprep.subr.bf16.mxu0 %v7876_v15  ;;  %1758 = vmatprep.subr.bf16.mxu1 %v7881_v16 }
 0x266   :  { %1716 = vmatpush1.bf16.msra.mxu0 %v7886_v17  ;;  %1759 = vmatpush1.bf16.msra.mxu1 %v7891_v19 }
 0x267   :  { %1717 = vmatprep.subr.bf16.mxu0 %v7900_v20  ;;  %1760 = vmatprep.subr.bf16.mxu1 %v7905_v21 }
 0x26a   :  { %1718 = vmatpush1.bf16.msra.mxu0 %v7910_v22  ;;  %1761 = vmatpush1.bf16.msra.mxu1 %v7915_v24 }
 0x26b   :  { %1719 = vmatprep.subr.bf16.mxu0 %v7924_v26  ;;  %1762 = vmatprep.subr.bf16.mxu1 %v7929_v27 }
 0x26e   :  { %1720 = vmatpush1.bf16.msra.mxu0 %v7934_v50  ;;  %1763 = vmatpush1.bf16.msra.mxu1 %v7939_v56 }
 0x26f   :  { %1721 = vmatprep.subr.bf16.mxu0 %v7946_v52  ;;  %1764 = vmatprep.subr.bf16.mxu1 %v7951_v55 }
 0x272   :  { %1722 = vmatpush1.bf16.msra.mxu0 %v7958_v58  ;;  %1765 = vmatpush1.bf16.msra.mxu1 %v7963_v54 }
 0x273   :  { %1723 = vmatprep.subr.bf16.mxu0 %v7970_v25  ;;  %1766 = vmatprep.subr.bf16.mxu1 %v7975_v28 }
 0x276   :  { %1724 = vmatpush1.bf16.msra.mxu0 %v7982_v29  ;;  %1767 = vmatpush1.bf16.msra.mxu1 %v7987_v44 }
 0x277   :  { %1725 = vmatprep.subr.bf16.mxu0 %v7994_v31  ;;  %1768 = vmatprep.subr.bf16.mxu1 %v7999_v32 }
 0x27a   :  { %1726 = vmatpush1.bf16.msra.mxu0 %v8006_v34  ;;  %1769 = vmatpush1.bf16.msra.mxu1 %v8011_v35 }
 0x27b   :  { %1727 = vmatprep.subr.bf16.mxu0 %v8018_v37  ;;  %1770 = vmatprep.subr.bf16.mxu1 %v8023_v39 }
 0x27e   :  { %1728 = vmatpush1.bf16.msra.mxu0 %v8030_v49  ;;  %1771 = vmatpush1.bf16.msra.mxu1 %v8035_v47 }
 0x27f   :  { %2080 = vmatprep.subr.bf16.mxu0 %v7852_v40  ;;  %2123 = vmatprep.subr.bf16.mxu1 %v7857_v12 }
 0x320   :  { %v1380_v60 = vpop.f32.mrf.mxu0  ;;  %v1423_v33 = vpop.f32.mrf.mxu1 }
 0x321   :  { %v1432_v61 = vadd.f32 %v1380_v60, %v1145_v42 }
 0x322   :  { %v1382_v1 = vpop.f32.mrf.mxu0  ;;  %v1425_v42 = vpop.f32.mrf.mxu1 }
 0x323   :  { %v5763_v2 = vmul.f32 -1.442695, %v1432_v61  ;;  %v1433_v3 = vadd.f32 %v1382_v1, %v1146_v62  ;;  %v1147_v61 = vadd.f32 %v1139_v10, %v7771_v36  ;;  %v1140_v1 = vmul.f32 %v1130_v30, %v7774_v43 }
 0x324   :  { %v1384_v6 = vpop.f32.mrf.mxu0 }
 0x325   :  { %6741 = vpow2.f32 %v5763_v2  ;;  %v5764_v7 = vmul.f32 -1.442695, %v1433_v3  ;;  %v1436_v8 = vadd.f32 %v1384_v6, %v1149_v4  ;;  %v1434_v62 = vadd.f32 %v1423_v33, %v1147_v61  ;;  %v1427_v2 = vpop.f32.mrf.mxu1 }
 0x326   :  { %v1386_v11 = vpop.f32.mrf.mxu0  ;;  %v1148_v4 = vadd.f32 %v1140_v1, %v7778_v18  ;;  %v1438_v6 = vadd.f32 %v1427_v2, %v1151_v63 }
 0x327   :  { %6743 = vpow2.f32 %v5764_v7  ;;  %v5766_v38 = vmul.f32 -1.442695, %v1436_v8  ;;  %v1437_v41 = vadd.f32 %v1386_v11, %v1150_v9  ;;  %v5765_v3 = vmul.f32 -1.442695, %v1434_v62 }
 0x328   :  { %v1144_v7 = vmul.f32 %v1135_v45, %v7774_v43  ;;  %v1435_v9 = vadd.f32 %v1425_v42, %v1148_v4 }
 0x329   :  { %6745 = vpow2.f32 %v5766_v38  ;;  %v5767_v60 = vmul.f32 -1.442695, %v1437_v41  ;;  %v1429_v38 = vpop.f32.mrf.mxu1  ;;  %v5768_v41 = vmul.f32 -1.442695, %v1438_v6 }
 0x32a   :  { %v1152_v33 = vadd.f32 %v1144_v7, %v7778_v18 }
 0x32b   :  { %6747 = vpow2.f32 %v5767_v60 }
 0x32c   :  { %6749 = vpow2.f32 %v5765_v3  ;;  %v1439_v61 = vadd.f32 %v1429_v38, %v1152_v33 }
 0x332   :  { %v6742_v8 = vpop.eup %6741 }
 0x333   :  { %v1458_v11 = vadd.f32 1.0, %v6742_v8 }
 0x334   :  { %v6744_v10 = vpop.eup %6743 }
 0x335   :  { %6751 = vrcp.f32 %v1458_v11  ;;  %v1459_v30 = vadd.f32 1.0, %v6744_v10 }
 0x336   :  { %v6746_v60 = vpop.eup %6745  ;;  %6753 = vtanh.f32 %v1435_v9 }
 0x337   :  { %6755 = vrcp.f32 %v1459_v30  ;;  %v1461_v59 = vadd.f32 1.0, %v6746_v60 }
 0x338   :  { %v6748_v62 = vpop.eup %6747  ;;  %6757 = vpow2.f32 %v5768_v41 }
 0x339   :  { %6759 = vrcp.f32 %v1461_v59  ;;  %v1462_v45 = vadd.f32 1.0, %v6748_v62  ;;  %v6750_v42 = vpop.eup %6749 }
 0x33a   :  { %6761 = vtanh.f32 %v1439_v61  ;;  %v1460_v3 = vadd.f32 1.0, %v6750_v42 }
 0x33b   :  { %6763 = vrcp.f32 %v1462_v45 }
 0x33c   :  { %6765 = vrcp.f32 %v1460_v3 }
 0x342   :  { %v6752_v1 = vpop.eup %6751 }
 0x343   :  { %v6754_v2 = vpop.eup %6753 }
 0x344   :  { %v6756_v63 = vpop.eup %6755  ;;  %v1480_v7 = vmul.f32 %v6754_v2, %v6752_v1 }
 0x345   :  { %v6758_v4 = vpop.eup %6757  ;;  %v1478_v6 = vmul.f32 %v6756_v63, %v7840_v0  ;;  %v1502_v63 = vpop.permute.xlu1 %1501 }
 0x346   :  { %v6760_v8 = vpop.eup %6759  ;;  %v1463_v10 = vadd.f32 1.0, %v6758_v4  ;;  %v1508_v4 = vmul.f32 %v1502_v63, %v7750_v46 }
 0x347   :  { %v6762_v9 = vpop.eup %6761  ;;  %v8060_v11 = vadd.f32 %v1480_v7, %v1478_v6 }
 0x348   :  { %v6764_v38 = vpop.eup %6763  ;;  %v1481_v33 = vmul.f32 %v6762_v9, %v6760_v8  ;;  %v1509_v9 = vmul.f32 %v1502_v63, %v7755_v48 }
 0x349   :  { %6767 = vtanh.f32 %v8060_v11  ;;  %v1479_v41 = vmul.f32 %v6764_v38, %v7844_v5  ;;  %v6766_v60 = vpop.eup %6765  ;;  %v1497_v5 = vpop.permute.xlu0 %1496 }
 0x34a   :  { %6769 = vrcp.f32 %v1463_v10  ;;  %v1504_v1 = vmul.f32 %v1497_v5, %v7750_v46  ;;  %v1505_v2 = vmul.f32 %v1497_v5, %v7755_v48 }
 0x34b   :  { %v8064_v30 = vadd.f32 %v1481_v33, %v1479_v41 }
 0x34c   :  { %v1512_v3 = vadd.f32 %v1504_v1, %v7758_v51  ;;  %v1513_v8 = vadd.f32 %v1505_v2, %v7761_v53 }
 0x34d   :  { %6771 = vtanh.f32 %v8064_v30 }
 0x356   :  { %v6768_v0 = vpop.eup %6767 }
 0x357   :  { %v1486_v61 = vmul.f32 %v6768_v0, %v6766_v60  ;;  %v6770_v59 = vpop.eup %6769 }
 0x359   :  { %1489 = vst [vmem:[#allocation5 + $0x20] sm:$0xff] %v1486_v61 }
 0x35a   :  { %v6772_v62 = vpop.eup %6771 }
 0x35b   :  { %v1487_v45 = vmul.f32 %v6772_v62, %v6770_v59  ;;  %v1506_v59 = vmul.f32 %v1497_v5, %v7766_v23 }
 0x35d   :  { %1490 = vst [vmem:[#allocation5 + $0x28] sm:$0xff] %v1487_v45  ;;  %v1520_v42 = vpack.c.bf16 %v1487_v45, %v1486_v61  ;;  %v1517_v61 = vadd.f32 %v1509_v9, %v7761_v53 }
 0x35f   :  { %1746 = vmatmul.mubr.bf16.vlgmr.msra.gmra.mxu0 %v1520_v42  ;;  %1789 = vmatmul.mubr.bf16.vlgmr.msra.gmra.mxu1 %v1520_v42 }
 0x360   :  { %2081 = vmatpush1.bf16.msra.mxu0 %v7862_v13  ;;  %2124 = vmatpush1.bf16.msra.mxu1 %v7867_v14 }
 0x361   :  { %2082 = vmatprep.subr.bf16.mxu0 %v7876_v15  ;;  %2125 = vmatprep.subr.bf16.mxu1 %v7881_v16 }
 0x362   :  { %2112 = vmatprep.mubr.bf16.mxu0 %v7057_v57  ;;  %2155 = vmatprep.mubr.bf16.mxu1 %v7057_v57 }
 0x364   :  { %2083 = vmatpush1.bf16.msra.mxu0 %v7886_v17  ;;  %2126 = vmatpush1.bf16.msra.mxu1 %v7891_v19 }
 0x365   :  { %2084 = vmatprep.subr.bf16.mxu0 %v7900_v20  ;;  %2127 = vmatprep.subr.bf16.mxu1 %v7905_v21 }
 0x368   :  { %2085 = vmatpush1.bf16.msra.mxu0 %v7910_v22  ;;  %2128 = vmatpush1.bf16.msra.mxu1 %v7915_v24 }
 0x369   :  { %2086 = vmatprep.subr.bf16.mxu0 %v7924_v26  ;;  %2129 = vmatprep.subr.bf16.mxu1 %v7929_v27 }
 0x36c   :  { %2087 = vmatpush1.bf16.msra.mxu0 %v7934_v50  ;;  %2130 = vmatpush1.bf16.msra.mxu1 %v7939_v56 }
 0x36d   :  { %2088 = vmatprep.subr.bf16.mxu0 %v7946_v52  ;;  %2131 = vmatprep.subr.bf16.mxu1 %v7951_v55 }
 0x370   :  { %2089 = vmatpush1.bf16.msra.mxu0 %v7958_v58  ;;  %2132 = vmatpush1.bf16.msra.mxu1 %v7963_v54 }
 0x371   :  { %2090 = vmatprep.subr.bf16.mxu0 %v7970_v25  ;;  %2133 = vmatprep.subr.bf16.mxu1 %v7975_v28 }
 0x374   :  { %2091 = vmatpush1.bf16.msra.mxu0 %v7982_v29  ;;  %2134 = vmatpush1.bf16.msra.mxu1 %v7987_v44 }
 0x375   :  { %2092 = vmatprep.subr.bf16.mxu0 %v7994_v31  ;;  %2135 = vmatprep.subr.bf16.mxu1 %v7999_v32 }
 0x378   :  { %2093 = vmatpush1.bf16.msra.mxu0 %v8006_v34  ;;  %2136 = vmatpush1.bf16.msra.mxu1 %v8011_v35 }
 0x379   :  { %2094 = vmatprep.subr.bf16.mxu0 %v8018_v37  ;;  %2137 = vmatprep.subr.bf16.mxu1 %v8023_v39 }
 0x37c   :  { %2095 = vmatpush1.bf16.msra.mxu0 %v8030_v49  ;;  %2138 = vmatpush1.bf16.msra.mxu1 %v8035_v47 }
 0x37d   :  { %2447 = vmatprep.subr.bf16.mxu0 %v7852_v40  ;;  %2490 = vmatprep.subr.bf16.mxu1 %v7857_v12  ;;  %v1516_v12 = vadd.f32 %v1508_v4, %v7758_v51  ;;  %v1510_v4 = vmul.f32 %v1502_v63, %v7766_v23 }
 0x37f   :  { %v1518_v9 = vadd.f32 %v1510_v4, %v7771_v36 }
 0x41f   :  { %v1747_v6 = vpop.f32.mrf.mxu0  ;;  %v1790_v33 = vpop.f32.mrf.mxu1 }
 0x420   :  { %v1799_v7 = vadd.f32 %v1747_v6, %v1512_v3  ;;  %v1514_v3 = vadd.f32 %v1506_v59, %v7771_v36 }
 0x421   :  { %v1749_v38 = vpop.f32.mrf.mxu0  ;;  %v1792_v1 = vpop.f32.mrf.mxu1 }
 0x422   :  { %v5803_v40 = vmul.f32 -1.442695, %v1799_v7  ;;  %v1800_v10 = vadd.f32 %v1749_v38, %v1513_v8  ;;  %v1801_v6 = vadd.f32 %v1790_v33, %v1514_v3  ;;  %v1507_v7 = vmul.f32 %v1497_v5, %v7774_v43 }
 0x423   :  { %v1751_v41 = vpop.f32.mrf.mxu0  ;;  %v1794_v8 = vpop.f32.mrf.mxu1 }
 0x424   :  { %6773 = vpow2.f32 %v5803_v40  ;;  %v5804_v60 = vmul.f32 -1.442695, %v1800_v10  ;;  %v1803_v0 = vadd.f32 %v1751_v41, %v1516_v12  ;;  %v5805_v38 = vmul.f32 -1.442695, %v1801_v6 }
 0x425   :  { %v1753_v62 = vpop.f32.mrf.mxu0  ;;  %v1515_v40 = vadd.f32 %v1507_v7, %v7778_v18  ;;  %v1805_v10 = vadd.f32 %v1794_v8, %v1518_v9  ;;  %v1511_v12 = vmul.f32 %v1502_v63, %v7774_v43 }
 0x426   :  { %6775 = vpow2.f32 %v5804_v60  ;;  %v5806_v45 = vmul.f32 -1.442695, %v1803_v0  ;;  %v1804_v42 = vadd.f32 %v1753_v62, %v1517_v61  ;;  %v1796_v61 = vpop.f32.mrf.mxu1 }
 0x427   :  { %v1802_v60 = vadd.f32 %v1792_v1, %v1515_v40  ;;  %v5808_v62 = vmul.f32 -1.442695, %v1805_v10  ;;  %v1519_v33 = vadd.f32 %v1511_v12, %v7778_v18 }
 0x428   :  { %6777 = vpow2.f32 %v5806_v45  ;;  %v5807_v2 = vmul.f32 -1.442695, %v1804_v42 }
 0x429   :  { %v1806_v42 = vadd.f32 %v1796_v61, %v1519_v33 }
 0x42a   :  { %6779 = vpow2.f32 %v5807_v2 }
 0x42b   :  { %6781 = vpow2.f32 %v5805_v38 }
 0x431   :  { %v6774_v41 = vpop.eup %6773 }
 0x432   :  { %v1825_v0 = vadd.f32 1.0, %v6774_v41 }
 0x433   :  { %v6776_v59 = vpop.eup %6775 }
 0x434   :  { %6783 = vrcp.f32 %v1825_v0  ;;  %v1826_v5 = vadd.f32 1.0, %v6776_v59 }
 0x435   :  { %v6778_v45 = vpop.eup %6777  ;;  %6785 = vtanh.f32 %v1802_v60 }
 0x436   :  { %6787 = vrcp.f32 %v1826_v5  ;;  %v1828_v2 = vadd.f32 1.0, %v6778_v45 }
 0x437   :  { %v6780_v3 = vpop.eup %6779  ;;  %6789 = vpow2.f32 %v5808_v62 }
 0x438   :  { %6791 = vrcp.f32 %v1828_v2  ;;  %v1829_v63 = vadd.f32 1.0, %v6780_v3  ;;  %v6782_v1 = vpop.eup %6781 }
 0x439   :  { %6793 = vtanh.f32 %v1806_v42  ;;  %v1827_v8 = vadd.f32 1.0, %v6782_v1 }
 0x43a   :  { %6795 = vrcp.f32 %v1829_v63 }
 0x43b   :  { %6797 = vrcp.f32 %v1827_v8 }
 0x441   :  { %v6784_v4 = vpop.eup %6783 }
 0x442   :  { %v6786_v6 = vpop.eup %6785 }
 0x443   :  { %v6788_v7 = vpop.eup %6787  ;;  %v1847_v40 = vmul.f32 %v6786_v6, %v6784_v4 }
 0x444   :  { %v6790_v9 = vpop.eup %6789  ;;  %v1845_v38 = vmul.f32 %v6788_v7, %v8060_v11 }
 0x445   :  { %v6792_v10 = vpop.eup %6791  ;;  %v1830_v0 = vadd.f32 1.0, %v6790_v9 }
 0x446   :  { %v6794_v12 = vpop.eup %6793  ;;  %v8118_v41 = vadd.f32 %v1847_v40, %v1845_v38 }
 0x447   :  { %v6796_v60 = vpop.eup %6795  ;;  %v1848_v59 = vmul.f32 %v6794_v12, %v6792_v10 }
 0x448   :  { %6799 = vtanh.f32 %v8118_v41  ;;  %v1846_v61 = vmul.f32 %v6796_v60, %v8064_v30  ;;  %v6798_v33 = vpop.eup %6797 }
 0x449   :  { %6801 = vrcp.f32 %v1830_v0 }
 0x44a   :  { %v8122_v62 = vadd.f32 %v1848_v59, %v1846_v61 }
 0x44c   :  { %6803 = vtanh.f32 %v8122_v62 }
 0x455   :  { %v6800_v11 = vpop.eup %6799 }
 0x456   :  { %v1853_v5 = vmul.f32 %v6800_v11, %v6798_v33  ;;  %v6802_v45 = vpop.eup %6801 }
 0x458   :  { %1856 = vst [vmem:[#allocation5 + $0x30] sm:$0xff] %v1853_v5 }
 0x459   :  { %v6804_v42 = vpop.eup %6803 }
 0x45a   :  { %v1854_v2 = vmul.f32 %v6804_v42, %v6802_v45 }
 0x45c   :  { %1857 = vst [vmem:[#allocation5 + $0x38] sm:$0xff] %v1854_v2  ;;  %v1887_v3 = vpack.c.bf16 %v1854_v2, %v1853_v5 }
 0x45e   :  { %2113 = vmatmul.mubr.bf16.vlgmr.msra.gmra.mxu0 %v1887_v3  ;;  %2156 = vmatmul.mubr.bf16.vlgmr.msra.gmra.mxu1 %v1887_v3 }
 0x45f   :  { %2448 = vmatpush1.bf16.msra.mxu0 %v7862_v13  ;;  %2491 = vmatpush1.bf16.msra.mxu1 %v7867_v14  ;;  %v1864_v13 = vpop.permute.xlu0 %1863 }
 0x460   :  { %2449 = vmatprep.subr.bf16.mxu0 %v7876_v15  ;;  %2492 = vmatprep.subr.bf16.mxu1 %v7881_v16  ;;  %v1871_v14 = vmul.f32 %v1864_v13, %v7750_v46  ;;  %v1872_v15 = vmul.f32 %v1864_v13, %v7755_v48  ;;  %v1869_v16 = vpop.permute.xlu1 %1868 }
 0x461   :  { %2479 = vmatprep.mubr.bf16.mxu0 %v7057_v57  ;;  %2522 = vmatprep.mubr.bf16.mxu1 %v7057_v57  ;;  %v1878_v6 = vmul.f32 %v1869_v16, %v7774_v43 }
 0x463   :  { %2450 = vmatpush1.bf16.msra.mxu0 %v7886_v17  ;;  %2493 = vmatpush1.bf16.msra.mxu1 %v7891_v19  ;;  %v1879_v17 = vadd.f32 %v1871_v14, %v7758_v51  ;;  %v1875_v19 = vmul.f32 %v1869_v16, %v7750_v46  ;;  %v1886_v12 = vadd.f32 %v1878_v6, %v7778_v18  ;;  %v8292_v6 = vld [vmem:[%s8734_s2 + $0x60] ss:$16 sps:$4 sm:$0xff]  }
 0x464   :  { %2451 = vmatprep.subr.bf16.mxu0 %v7900_v20  ;;  %2494 = vmatprep.subr.bf16.mxu1 %v7905_v21 }
 0x467   :  { %2452 = vmatpush1.bf16.msra.mxu0 %v7910_v22  ;;  %2495 = vmatpush1.bf16.msra.mxu1 %v7915_v24  ;;  %v1880_v22 = vadd.f32 %v1872_v15, %v7761_v53  ;;  %v1876_v24 = vmul.f32 %v1869_v16, %v7755_v48 }
 0x468   :  { %2453 = vmatprep.subr.bf16.mxu0 %v7924_v26  ;;  %2496 = vmatprep.subr.bf16.mxu1 %v7929_v27 }
 0x46b   :  { %2454 = vmatpush1.bf16.msra.mxu0 %v7934_v50  ;;  %2497 = vmatpush1.bf16.msra.mxu1 %v7939_v56  ;;  %v1883_v56 = vadd.f32 %v1875_v19, %v7758_v51 }
 0x46c   :  { %2455 = vmatprep.subr.bf16.mxu0 %v7946_v52  ;;  %2498 = vmatprep.subr.bf16.mxu1 %v7951_v55 }
 0x46f   :  { %2456 = vmatpush1.bf16.msra.mxu0 %v7958_v58  ;;  %2499 = vmatpush1.bf16.msra.mxu1 %v7963_v54 }
 0x470   :  { %2457 = vmatprep.subr.bf16.mxu0 %v7970_v25  ;;  %2500 = vmatprep.subr.bf16.mxu1 %v7975_v28  ;;  %v1884_v25 = vadd.f32 %v1876_v24, %v7761_v53  ;;  %v1873_v28 = vmul.f32 %v1864_v13, %v7766_v23 }
 0x473   :  { %2458 = vmatpush1.bf16.msra.mxu0 %v7982_v29  ;;  %2501 = vmatpush1.bf16.msra.mxu1 %v7987_v44 }
 0x474   :  { %2459 = vmatprep.subr.bf16.mxu0 %v7994_v31  ;;  %2502 = vmatprep.subr.bf16.mxu1 %v7999_v32 }
 0x477   :  { %2460 = vmatpush1.bf16.msra.mxu0 %v8006_v34  ;;  %2503 = vmatpush1.bf16.msra.mxu1 %v8011_v35  ;;  %v1881_v35 = vadd.f32 %v1873_v28, %v7771_v36  ;;  %v8201_v28 = vld [vmem:[%s8734_s2 + $0xe8] ss:$16 sps:$4 sm:$0xff]  }
 0x478   :  { %2461 = vmatprep.subr.bf16.mxu0 %v8018_v37  ;;  %2504 = vmatprep.subr.bf16.mxu1 %v8023_v39  ;;  %v1877_v37 = vmul.f32 %v1869_v16, %v7766_v23 }
 0x47a   :  { %v1885_v30 = vadd.f32 %v1877_v37, %v7771_v36  ;;  %v8244_v37 = vld [vmem:[%s8734_s2 + $0xa0] ss:$16 sps:$4 sm:$0xff]  }
 0x47b   :  { %2462 = vmatpush1.bf16.msra.mxu0 %v8030_v49  ;;  %2505 = vmatpush1.bf16.msra.mxu1 %v8035_v47  ;;  %v1874_v49 = vmul.f32 %v1864_v13, %v7774_v43 }
 0x47d   :  { %v1882_v1 = vadd.f32 %v1874_v49, %v7778_v18  ;;  %v8258_v49 = vld [vmem:[%s8734_s2 + $0x84] ss:$16 sps:$4 sm:$0xff]  }
 0x51e   :  { %v2114_v20 = vpop.f32.mrf.mxu0  ;;  %v2157_v55 = vpop.f32.mrf.mxu1 }
 0x51f   :  { %v2166_v21 = vadd.f32 %v2114_v20, %v1879_v17  ;;  %v2168_v39 = vadd.f32 %v2157_v55, %v1881_v35  ;;  %v8239_v35 = vld [vmem:[%s8734_s2 + $0xac] ss:$16 sps:$4 sm:$0xff]  }
 0x520   :  { %v2116_v26 = vpop.f32.mrf.mxu0  ;;  %v2159_v32 = vpop.f32.mrf.mxu1 }
 0x521   :  { %v5843_v27 = vmul.f32 -1.442695, %v2166_v21  ;;  %v2167_v50 = vadd.f32 %v2116_v26, %v1880_v22  ;;  %v5845_v63 = vmul.f32 -1.442695, %v2168_v39  ;;  %v2169_v8 = vadd.f32 %v2159_v32, %v1882_v1  ;;  %v8225_v32 = vld [vmem:[%s8734_s2 + $0xc8] ss:$16 sps:$4 sm:$0xff]  }
 0x522   :  { %v2118_v52 = vpop.f32.mrf.mxu0  ;;  %v2161_v47 = vpop.f32.mrf.mxu1  ;;  %v8249_v39 = vld [vmem:[%s8734_s2 + $0xa8] ss:$16 sps:$4 sm:$0xff]   ;;  %v8280_v1 = vld [vmem:[%s8734_s2 + $0x64] ss:$16 sps:$4 sm:$0xff]  }
 0x523   :  { %6805 = vpow2.f32 %v5843_v27  ;;  %v5844_v58 = vmul.f32 -1.442695, %v2167_v50  ;;  %v2170_v54 = vadd.f32 %v2118_v52, %v1883_v56  ;;  %v2172_v4 = vadd.f32 %v2161_v47, %v1885_v30  ;;  %v8263_v47 = vld [vmem:[%s8734_s2 + $0x8c] ss:$16 sps:$4 sm:$0xff]   ;;  %v8268_v30 = vld [vmem:[%s8734_s2 + $0x80] ss:$16 sps:$4 sm:$0xff]  }
 0x524   :  { %v2120_v29 = vpop.f32.mrf.mxu0  ;;  %v2163_v38 = vpop.f32.mrf.mxu1 }
 0x525   :  { %6807 = vpow2.f32 %v5844_v58  ;;  %v5846_v44 = vmul.f32 -1.442695, %v2170_v54  ;;  %v2171_v31 = vadd.f32 %v2120_v29, %v1884_v25  ;;  %v5848_v10 = vmul.f32 -1.442695, %v2172_v4  ;;  %v8191_v54 = vld [vmem:[%s8734_s2 + $0xec] ss:$16 sps:$4 sm:$0xff]  }
 0x526   :  { %v2173_v61 = vadd.f32 %v2163_v38, %v1886_v12  ;;  %v8196_v25 = vld [vmem:[%s8734_s2 + $0xe0] ss:$16 sps:$4 sm:$0xff]   ;;  %2857 = vmatprep.subr.bf16.mxu1 %v8191_v54  ;;  %v8210_v29 = vld [vmem:[%s8734_s2 + $0xc4] ss:$16 sps:$4 sm:$0xff]   ;;  %v8285_v4 = vld [vmem:[%s8734_s2 + $0x6c] ss:$16 sps:$4 sm:$0xff]  }
 0x527   :  { %6809 = vpow2.f32 %v5846_v44  ;;  %v5847_v34 = vmul.f32 -1.442695, %v2171_v31  ;;  %v8215_v44 = vld [vmem:[%s8734_s2 + $0xcc] ss:$16 sps:$4 sm:$0xff]   ;;  %v8220_v31 = vld [vmem:[%s8734_s2 + $0xc0] ss:$16 sps:$4 sm:$0xff]  }
 0x528   :  { %v8316_v38 = vld [vmem:[%s8734_s2 + $0x40] ss:$16 sps:$4 sm:$0xff]   ;;  %v8333_v12 = vld [vmem:[%s8734_s2 + $0x2c] ss:$16 sps:$4 sm:$0xff]  }
 0x529   :  { %6811 = vpow2.f32 %v5847_v34  ;;  %v8234_v34 = vld [vmem:[%s8734_s2 + $0xa4] ss:$16 sps:$4 sm:$0xff]  }
 0x52a   :  { %6813 = vpow2.f32 %v5845_v63  ;;  %v8273_v63 = vld [vmem:[%s8734_s2 + $0x88] ss:$16 sps:$4 sm:$0xff]  }
 0x530   :  { %v6806_v7 = vpop.eup %6805 }
 0x531   :  { %v2192_v9 = vadd.f32 1.0, %v6806_v7  ;;  %v8297_v7 = vld [vmem:[%s8734_s2 + $0x68] ss:$16 sps:$4 sm:$0xff]  }
 0x532   :  { %v6808_v40 = vpop.eup %6807 }
 0x533   :  { %6815 = vrcp.f32 %v2192_v9  ;;  %v2193_v60 = vadd.f32 1.0, %v6808_v40  ;;  %v8309_v9 = vld [vmem:[%s8734_s2 + $0x4c] ss:$16 sps:$4 sm:$0xff]   ;;  %v8321_v40 = vld [vmem:[%s8734_s2 + $0x48] ss:$16 sps:$4 sm:$0xff]  }
 0x534   :  { %v6810_v0 = vpop.eup %6809  ;;  %6817 = vtanh.f32 %v2169_v8  ;;  %v8304_v8 = vld [vmem:[%s8734_s2 + $0x44] ss:$16 sps:$4 sm:$0xff]  }
 0x535   :  { %6819 = vrcp.f32 %v2193_v60  ;;  %v2195_v59 = vadd.f32 1.0, %v6810_v0  ;;  %v8340_v60 = vld [vmem:[%s8734_s2 + $0x20] ss:$16 sps:$4 sm:$0xff]   ;;  %v8345_v0 = vld [vmem:[%s8734_s2 + $0x28] ss:$16 sps:$4 sm:$0xff]  }
 0x536   :  { %v6812_v33 = vpop.eup %6811  ;;  %6821 = vpow2.f32 %v5848_v10  ;;  %v8328_v10 = vld [vmem:[%s8734_s2 + $0x24] ss:$16 sps:$4 sm:$0xff]  }
 0x537   :  { %6823 = vrcp.f32 %v2195_v59  ;;  %v2196_v11 = vadd.f32 1.0, %v6812_v33  ;;  %v6814_v5 = vpop.eup %6813  ;;  %v8357_v59 = vld [vmem:[%s8734_s2 + $0xc] ss:$16 sps:$4 sm:$0xff]   ;;  %v8364_v33 = vld [vmem:[%s8734_s2] ss:$16 sps:$4 sm:$0xff]  }
 0x538   :  { %6825 = vtanh.f32 %v2173_v61  ;;  %v2194_v3 = vadd.f32 1.0, %v6814_v5  ;;  %v8352_v61 = vld [vmem:[%s8734_s2 + $0x4] ss:$16 sps:$4 sm:$0xff]   ;;  %v2231_v5 = vpop.permute.xlu0 %2230 }
 0x539   :  { %6827 = vrcp.f32 %v2196_v11  ;;  %v8369_v11 = vld [vmem:[%s8734_s2 + $0x8] ss:$16 sps:$4 sm:$0xff]  }
 0x53a   :  { %6829 = vrcp.f32 %v2194_v3 }
 0x540   :  { %v6816_v45 = vpop.eup %6815 }
 0x541   :  { %v6818_v42 = vpop.eup %6817 }
 0x542   :  { %v6820_v2 = vpop.eup %6819  ;;  %v2214_v15 = vmul.f32 %v6818_v42, %v6816_v45  ;;  %v2238_v45 = vmul.f32 %v2231_v5, %v7750_v46  ;;  %v2239_v42 = vmul.f32 %v2231_v5, %v7755_v48 }
 0x543   :  { %v6822_v13 = vpop.eup %6821  ;;  %v2212_v14 = vmul.f32 %v6820_v2, %v8118_v41  ;;  %v2236_v2 = vpop.permute.xlu1 %2235 }
 0x544   :  { %v6824_v16 = vpop.eup %6823  ;;  %v2197_v21 = vadd.f32 1.0, %v6822_v13  ;;  %v2246_v3 = vadd.f32 %v2238_v45, %v7758_v51  ;;  %v2242_v13 = vmul.f32 %v2236_v2, %v7750_v46 }
 0x545   :  { %v6826_v17 = vpop.eup %6825  ;;  %v8174_v19 = vadd.f32 %v2214_v15, %v2212_v14 }
 0x546   :  { %v6828_v20 = vpop.eup %6827  ;;  %v2215_v24 = vmul.f32 %v6826_v17, %v6824_v16  ;;  %v2247_v16 = vadd.f32 %v2239_v42, %v7761_v53  ;;  %v2243_v17 = vmul.f32 %v2236_v2, %v7755_v48 }
 0x547   :  { %6831 = vtanh.f32 %v8174_v19  ;;  %v2213_v22 = vmul.f32 %v6828_v20, %v8122_v62  ;;  %v6830_v27 = vpop.eup %6829  ;;  %v8186_v62 = vld [vmem:[%s8734_s2 + $0xe4] ss:$16 sps:$4 sm:$0xff]  }
 0x548   :  { %6833 = vrcp.f32 %v2197_v21  ;;  %2814 = vmatprep.subr.bf16.mxu0 %v8186_v62 }
 0x549   :  { %v8178_v26 = vadd.f32 %v2215_v24, %v2213_v22  ;;  %v2250_v24 = vadd.f32 %v2242_v13, %v7758_v51  ;;  %v2244_v13 = vmul.f32 %v2236_v2, %v7766_v23 }
 0x54b   :  { %6835 = vtanh.f32 %v8178_v26 }
 0x554   :  { %v6832_v41 = vpop.eup %6831 }
 0x555   :  { %v2220_v50 = vmul.f32 %v6832_v41, %v6830_v27  ;;  %v6834_v56 = vpop.eup %6833 }
 0x557   :  { %2223 = vst [vmem:[#allocation5 + $0x40] sm:$0xff] %v2220_v50 }
 0x558   :  { %v6836_v52 = vpop.eup %6835 }
 0x559   :  { %v2221_v55 = vmul.f32 %v6836_v52, %v6834_v56  ;;  %v2251_v52 = vadd.f32 %v2243_v17, %v7761_v53  ;;  %v2252_v17 = vadd.f32 %v2244_v13, %v7771_v36 }
 0x55b   :  { %2224 = vst [vmem:[#allocation5 + $0x48] sm:$0xff] %v2221_v55  ;;  %v2254_v58 = vpack.c.bf16 %v2221_v55, %v2220_v50  ;;  %v2240_v55 = vmul.f32 %v2231_v5, %v7766_v23 }
 0x55d   :  { %2480 = vmatmul.mubr.bf16.vlgmr.msra.gmra.mxu0 %v2254_v58  ;;  %2523 = vmatmul.mubr.bf16.vlgmr.msra.gmra.mxu1 %v2254_v58 }
 0x55e   :  { %2846 = vmatprep.mubr.bf16.mxu0 %v7057_v57  ;;  %2889 = vmatprep.mubr.bf16.mxu1 %v7057_v57 }
 0x55f   :  { %2815 = vmatpush1.bf16.msra.mxu0 %v8196_v25  ;;  %2858 = vmatpush1.bf16.msra.mxu1 %v8201_v28 }
 0x560   :  { %2816 = vmatprep.subr.bf16.mxu0 %v8210_v29  ;;  %2859 = vmatprep.subr.bf16.mxu1 %v8215_v44 }
 0x563   :  { %2817 = vmatpush1.bf16.msra.mxu0 %v8220_v31  ;;  %2860 = vmatpush1.bf16.msra.mxu1 %v8225_v32 }
 0x564   :  { %2818 = vmatprep.subr.bf16.mxu0 %v8234_v34  ;;  %2861 = vmatprep.subr.bf16.mxu1 %v8239_v35 }
 0x567   :  { %2819 = vmatpush1.bf16.msra.mxu0 %v8244_v37  ;;  %2862 = vmatpush1.bf16.msra.mxu1 %v8249_v39 }
 0x568   :  { %2820 = vmatprep.subr.bf16.mxu0 %v8258_v49  ;;  %2863 = vmatprep.subr.bf16.mxu1 %v8263_v47 }
 0x56b   :  { %2821 = vmatpush1.bf16.msra.mxu0 %v8268_v30  ;;  %2864 = vmatpush1.bf16.msra.mxu1 %v8273_v63 }
 0x56c   :  { %2822 = vmatprep.subr.bf16.mxu0 %v8280_v1  ;;  %2865 = vmatprep.subr.bf16.mxu1 %v8285_v4 }
 0x56f   :  { %2823 = vmatpush1.bf16.msra.mxu0 %v8292_v6  ;;  %2866 = vmatpush1.bf16.msra.mxu1 %v8297_v7 }
 0x570   :  { %2824 = vmatprep.subr.bf16.mxu0 %v8304_v8  ;;  %2867 = vmatprep.subr.bf16.mxu1 %v8309_v9 }
 0x573   :  { %2825 = vmatpush1.bf16.msra.mxu0 %v8316_v38  ;;  %2868 = vmatpush1.bf16.msra.mxu1 %v8321_v40 }
 0x574   :  { %2826 = vmatprep.subr.bf16.mxu0 %v8328_v10  ;;  %2869 = vmatprep.subr.bf16.mxu1 %v8333_v12 }
 0x577   :  { %2827 = vmatpush1.bf16.msra.mxu0 %v8340_v60  ;;  %2870 = vmatpush1.bf16.msra.mxu1 %v8345_v0 }
 0x578   :  { %2828 = vmatprep.subr.bf16.mxu0 %v8352_v61  ;;  %2871 = vmatprep.subr.bf16.mxu1 %v8357_v59 }
 0x57b   :  { %2829 = vmatpush1.bf16.msra.mxu0 %v8364_v33  ;;  %2872 = vmatpush1.bf16.msra.mxu1 %v8369_v11 }
 0x57c   :  { %3181 = vmatprep.subr.bf16.mxu0 %v8186_v62  ;;  %3224 = vmatprep.subr.bf16.mxu1 %v8191_v54 }
 0x61d   :  { %v2481_v14 = vpop.f32.mrf.mxu0  ;;  %v2524_v41 = vpop.f32.mrf.mxu1 }
 0x61e   :  { %v2533_v15 = vadd.f32 %v2481_v14, %v2246_v3  ;;  %v2248_v3 = vadd.f32 %v2240_v55, %v7771_v36 }
 0x61f   :  { %v2483_v20 = vpop.f32.mrf.mxu0  ;;  %v2526_v45 = vpop.f32.mrf.mxu1 }
 0x620   :  { %v5883_v21 = vmul.f32 -1.442695, %v2533_v15  ;;  %v2534_v22 = vadd.f32 %v2483_v20, %v2247_v16  ;;  %v2535_v14 = vadd.f32 %v2524_v41, %v2248_v3  ;;  %v2241_v15 = vmul.f32 %v2231_v5, %v7774_v43 }
 0x621   :  { %v2485_v27 = vpop.f32.mrf.mxu0  ;;  %v2528_v16 = vpop.f32.mrf.mxu1 }
 0x622   :  { %6837 = vpow2.f32 %v5883_v21  ;;  %v5884_v50 = vmul.f32 -1.442695, %v2534_v22  ;;  %v2537_v56 = vadd.f32 %v2485_v27, %v2250_v24  ;;  %v5885_v20 = vmul.f32 -1.442695, %v2535_v14 }
 0x623   :  { %v2487_v58 = vpop.f32.mrf.mxu0  ;;  %v2249_v21 = vadd.f32 %v2241_v15, %v7778_v18  ;;  %v2539_v22 = vadd.f32 %v2528_v16, %v2252_v17  ;;  %v2245_v24 = vmul.f32 %v2236_v2, %v7774_v43 }
 0x624   :  { %6839 = vpow2.f32 %v5884_v50  ;;  %v5886_v62 = vmul.f32 -1.442695, %v2537_v56  ;;  %v2538_v54 = vadd.f32 %v2487_v58, %v2251_v52  ;;  %v2530_v52 = vpop.f32.mrf.mxu1 }
 0x625   :  { %v2536_v50 = vadd.f32 %v2526_v45, %v2249_v21  ;;  %v5888_v58 = vmul.f32 -1.442695, %v2539_v22  ;;  %v2253_v41 = vadd.f32 %v2245_v24, %v7778_v18 }
 0x626   :  { %6841 = vpow2.f32 %v5886_v62  ;;  %v5887_v42 = vmul.f32 -1.442695, %v2538_v54 }
 0x627   :  { %v2540_v54 = vadd.f32 %v2530_v52, %v2253_v41 }
 0x628   :  { %6843 = vpow2.f32 %v5887_v42 }
 0x629   :  { %6845 = vpow2.f32 %v5885_v20 }
 0x62f   :  { %v6838_v27 = vpop.eup %6837 }
 0x630   :  { %v2559_v56 = vadd.f32 1.0, %v6838_v27 }
 0x631   :  { %v6840_v55 = vpop.eup %6839 }
 0x632   :  { %6847 = vrcp.f32 %v2559_v56  ;;  %v2560_v5 = vadd.f32 1.0, %v6840_v55 }
 0x633   :  { %v6842_v62 = vpop.eup %6841  ;;  %6849 = vtanh.f32 %v2536_v50 }
 0x634   :  { %6851 = vrcp.f32 %v2560_v5  ;;  %v2562_v42 = vadd.f32 1.0, %v6842_v62 }
 0x635   :  { %v6844_v3 = vpop.eup %6843  ;;  %6853 = vpow2.f32 %v5888_v58 }
 0x636   :  { %6855 = vrcp.f32 %v2562_v42  ;;  %v2563_v2 = vadd.f32 1.0, %v6844_v3  ;;  %v6846_v45 = vpop.eup %6845 }
 0x637   :  { %6857 = vtanh.f32 %v2540_v54  ;;  %v2561_v16 = vadd.f32 1.0, %v6846_v45 }
 0x638   :  { %6859 = vrcp.f32 %v2563_v2 }
 0x639   :  { %6861 = vrcp.f32 %v2561_v16 }
 0x63f   :  { %v6848_v13 = vpop.eup %6847 }
 0x640   :  { %v6850_v14 = vpop.eup %6849 }
 0x641   :  { %v6852_v15 = vpop.eup %6851  ;;  %v2581_v21 = vmul.f32 %v6850_v14, %v6848_v13 }
 0x642   :  { %v6854_v17 = vpop.eup %6853  ;;  %v2579_v20 = vmul.f32 %v6852_v15, %v8174_v19 }
 0x643   :  { %v6856_v22 = vpop.eup %6855  ;;  %v2564_v56 = vadd.f32 1.0, %v6854_v17 }
 0x644   :  { %v6858_v24 = vpop.eup %6857  ;;  %v8394_v27 = vadd.f32 %v2581_v21, %v2579_v20 }
 0x645   :  { %v6860_v50 = vpop.eup %6859  ;;  %v2582_v55 = vmul.f32 %v6858_v24, %v6856_v22 }
 0x646   :  { %6863 = vtanh.f32 %v8394_v27  ;;  %v2580_v52 = vmul.f32 %v6860_v50, %v8178_v26  ;;  %v6862_v41 = vpop.eup %6861 }
 0x647   :  { %6865 = vrcp.f32 %v2564_v56 }
 0x648   :  { %v8398_v58 = vadd.f32 %v2582_v55, %v2580_v52 }
 0x64a   :  { %6867 = vtanh.f32 %v8398_v58 }
 0x653   :  { %v6864_v19 = vpop.eup %6863 }
 0x654   :  { %v2587_v5 = vmul.f32 %v6864_v19, %v6862_v41  ;;  %v6866_v62 = vpop.eup %6865 }
 0x656   :  { %2590 = vst [vmem:[#allocation5 + $0x50] sm:$0xff] %v2587_v5 }
 0x657   :  { %v6868_v54 = vpop.eup %6867 }
 0x658   :  { %v2588_v42 = vmul.f32 %v6868_v54, %v6866_v62 }
 0x65a   :  { %2591 = vst [vmem:[#allocation5 + $0x58] sm:$0xff] %v2588_v42  ;;  %v2621_v3 = vpack.c.bf16 %v2588_v42, %v2587_v5 }
 0x65c   :  { %2847 = vmatmul.mubr.bf16.vlgmr.msra.gmra.mxu0 %v2621_v3  ;;  %2890 = vmatmul.mubr.bf16.vlgmr.msra.gmra.mxu1 %v2621_v3 }
 0x65d   :  { %3182 = vmatpush1.bf16.msra.mxu0 %v8196_v25  ;;  %3225 = vmatpush1.bf16.msra.mxu1 %v8201_v28  ;;  %v2603_v28 = vpop.permute.xlu1 %2602 }
 0x65e   :  { %3183 = vmatprep.subr.bf16.mxu0 %v8210_v29  ;;  %3226 = vmatprep.subr.bf16.mxu1 %v8215_v44  ;;  %v2609_v44 = vmul.f32 %v2603_v28, %v7750_v46  ;;  %v2612_v13 = vmul.f32 %v2603_v28, %v7774_v43 }
 0x65f   :  { %3213 = vmatprep.mubr.bf16.mxu0 %v7057_v57  ;;  %3256 = vmatprep.mubr.bf16.mxu1 %v7057_v57  ;;  %v2598_v57 = vpop.permute.xlu0 %2597 }
 0x660   :  { %v2605_v26 = vmul.f32 %v2598_v57, %v7750_v46  ;;  %v2606_v25 = vmul.f32 %v2598_v57, %v7755_v48  ;;  %v2620_v22 = vadd.f32 %v2612_v13, %v7778_v18 }
 0x661   :  { %3184 = vmatpush1.bf16.msra.mxu0 %v8220_v31  ;;  %3227 = vmatpush1.bf16.msra.mxu1 %v8225_v32 }
 0x662   :  { %3185 = vmatprep.subr.bf16.mxu0 %v8234_v34  ;;  %3228 = vmatprep.subr.bf16.mxu1 %v8239_v35  ;;  %v2613_v29 = vadd.f32 %v2605_v26, %v7758_v51  ;;  %v2614_v34 = vadd.f32 %v2606_v25, %v7761_v53  ;;  %v2610_v35 = vmul.f32 %v2603_v28, %v7755_v48 }
 0x665   :  { %3186 = vmatpush1.bf16.msra.mxu0 %v8244_v37  ;;  %3229 = vmatpush1.bf16.msra.mxu1 %v8249_v39 }
 0x666   :  { %3187 = vmatprep.subr.bf16.mxu0 %v8258_v49  ;;  %3230 = vmatprep.subr.bf16.mxu1 %v8263_v47  ;;  %v2617_v47 = vadd.f32 %v2609_v44, %v7758_v51 }
 0x669   :  { %3188 = vmatpush1.bf16.msra.mxu0 %v8268_v30  ;;  %3231 = vmatpush1.bf16.msra.mxu1 %v8273_v63 }
 0x66a   :  { %3189 = vmatprep.subr.bf16.mxu0 %v8280_v1  ;;  %3232 = vmatprep.subr.bf16.mxu1 %v8285_v4 }
 0x66d   :  { %3190 = vmatpush1.bf16.msra.mxu0 %v8292_v6  ;;  %3233 = vmatpush1.bf16.msra.mxu1 %v8297_v7  ;;  %v2618_v6 = vadd.f32 %v2610_v35, %v7761_v53  ;;  %v2607_v7 = vmul.f32 %v2598_v57, %v7766_v23 }
 0x66e   :  { %3191 = vmatprep.subr.bf16.mxu0 %v8304_v8  ;;  %3234 = vmatprep.subr.bf16.mxu1 %v8309_v9 }
 0x671   :  { %3192 = vmatpush1.bf16.msra.mxu0 %v8316_v38  ;;  %3235 = vmatpush1.bf16.msra.mxu1 %v8321_v40 }
 0x672   :  { %3193 = vmatprep.subr.bf16.mxu0 %v8328_v10  ;;  %3236 = vmatprep.subr.bf16.mxu1 %v8333_v12  ;;  %v2615_v12 = vadd.f32 %v2607_v7, %v7771_v36 }
 0x675   :  { %3194 = vmatpush1.bf16.msra.mxu0 %v8340_v60  ;;  %3237 = vmatpush1.bf16.msra.mxu1 %v8345_v0  ;;  %v2611_v60 = vmul.f32 %v2603_v28, %v7766_v23 }
 0x676   :  { %3195 = vmatprep.subr.bf16.mxu0 %v8352_v61  ;;  %3238 = vmatprep.subr.bf16.mxu1 %v8357_v59  ;;  %v2608_v61 = vmul.f32 %v2598_v57, %v7774_v43 }
 0x678   :  { %v2616_v2 = vadd.f32 %v2608_v61, %v7778_v18 }
 0x679   :  { %3196 = vmatpush1.bf16.msra.mxu0 %v8364_v33  ;;  %3239 = vmatpush1.bf16.msra.mxu1 %v8369_v11  ;;  %v2619_v33 = vadd.f32 %v2611_v60, %v7771_v36 }
 0x71c   :  { %v2848_v31 = vpop.f32.mrf.mxu0  ;;  %v2891_v63 = vpop.f32.mrf.mxu1 }
 0x71d   :  { %v2900_v32 = vadd.f32 %v2848_v31, %v2613_v29  ;;  %v2902_v0 = vadd.f32 %v2891_v63, %v2615_v12 }
 0x71e   :  { %v2850_v37 = vpop.f32.mrf.mxu0  ;;  %v2893_v40 = vpop.f32.mrf.mxu1 }
 0x71f   :  { %v5923_v39 = vmul.f32 -1.442695, %v2900_v32  ;;  %v2901_v49 = vadd.f32 %v2850_v37, %v2614_v34  ;;  %v5925_v11 = vmul.f32 -1.442695, %v2902_v0  ;;  %v2903_v15 = vadd.f32 %v2893_v40, %v2616_v2 }
 0x720   :  { %v2852_v30 = vpop.f32.mrf.mxu0  ;;  %v2895_v59 = vpop.f32.mrf.mxu1 }
 0x721   :  { %6869 = vpow2.f32 %v5923_v39  ;;  %v5924_v1 = vmul.f32 -1.442695, %v2901_v49  ;;  %v2904_v4 = vadd.f32 %v2852_v30, %v2617_v47  ;;  %v2906_v45 = vadd.f32 %v2895_v59, %v2619_v33 }
 0x722   :  { %v2854_v8 = vpop.f32.mrf.mxu0  ;;  %v2897_v17 = vpop.f32.mrf.mxu1 }
 0x723   :  { %6871 = vpow2.f32 %v5924_v1  ;;  %v5926_v9 = vmul.f32 -1.442695, %v2904_v4  ;;  %v2905_v38 = vadd.f32 %v2854_v8, %v2618_v6  ;;  %v5928_v21 = vmul.f32 -1.442695, %v2906_v45  ;;  %v2965_v1 = vpop.permute.xlu0 %2964  ;;  %v2970_v4 = vpop.permute.xlu1 %2969 }
 0x724   :  { %v2907_v56 = vadd.f32 %v2897_v17, %v2620_v22  ;;  %v2973_v6 = vmul.f32 %v2965_v1, %v7755_v48  ;;  %v2976_v7 = vmul.f32 %v2970_v4, %v7750_v46  ;;  %v2974_v45 = vmul.f32 %v2965_v1, %v7766_v23 }
 0x725   :  { %6873 = vpow2.f32 %v5926_v9  ;;  %v5927_v10 = vmul.f32 -1.442695, %v2905_v38  ;;  %v2977_v38 = vmul.f32 %v2970_v4, %v7755_v48  ;;  %v2978_v17 = vmul.f32 %v2970_v4, %v7766_v23 }
 0x726   :  { %v2984_v61 = vadd.f32 %v2976_v7, %v7758_v51 }
 0x727   :  { %6875 = vpow2.f32 %v5927_v10  ;;  %v2981_v10 = vadd.f32 %v2973_v6, %v7761_v53 }
 0x728   :  { %6877 = vpow2.f32 %v5925_v11 }
 0x72e   :  { %v6870_v14 = vpop.eup %6869 }
 0x72f   :  { %v2926_v16 = vadd.f32 1.0, %v6870_v14 }
 0x730   :  { %v6872_v20 = vpop.eup %6871 }
 0x731   :  { %6879 = vrcp.f32 %v2926_v16  ;;  %v2927_v24 = vadd.f32 1.0, %v6872_v20  ;;  %v2975_v20 = vmul.f32 %v2965_v1, %v7774_v43 }
 0x732   :  { %v6874_v50 = vpop.eup %6873  ;;  %6881 = vtanh.f32 %v2903_v15 }
 0x733   :  { %6883 = vrcp.f32 %v2927_v24  ;;  %v2929_v52 = vadd.f32 1.0, %v6874_v50  ;;  %v2979_v24 = vmul.f32 %v2970_v4, %v7774_v43 }
 0x734   :  { %v6876_v55 = vpop.eup %6875  ;;  %6885 = vpow2.f32 %v5928_v21 }
 0x735   :  { %6887 = vrcp.f32 %v2929_v52  ;;  %v2930_v41 = vadd.f32 1.0, %v6876_v55  ;;  %v6878_v19 = vpop.eup %6877 }
 0x736   :  { %6889 = vtanh.f32 %v2907_v56  ;;  %v2928_v42 = vadd.f32 1.0, %v6878_v19  ;;  %v2983_v56 = vadd.f32 %v2975_v20, %v7778_v18 }
 0x737   :  { %6891 = vrcp.f32 %v2930_v41 }
 0x738   :  { %6893 = vrcp.f32 %v2928_v42 }
 0x73e   :  { %v6880_v5 = vpop.eup %6879 }
 0x73f   :  { %v6882_v62 = vpop.eup %6881 }
 0x740   :  { %v6884_v54 = vpop.eup %6883  ;;  %v2948_v26 = vmul.f32 %v6882_v62, %v6880_v5 }
 0x741   :  { %v6886_v3 = vpop.eup %6885  ;;  %v2946_v57 = vmul.f32 %v6884_v54, %v8394_v27  ;;  %v2987_v54 = vadd.f32 %v2979_v24, %v7778_v18 }
 0x742   :  { %v6888_v25 = vpop.eup %6887  ;;  %v2931_v31 = vadd.f32 1.0, %v6886_v3 }
 0x743   :  { %v6890_v28 = vpop.eup %6889  ;;  %v8450_v29 = vadd.f32 %v2948_v26, %v2946_v57 }
 0x744   :  { %v6892_v44 = vpop.eup %6891  ;;  %v2949_v34 = vmul.f32 %v6890_v28, %v6888_v25 }
 0x745   :  { %6895 = vtanh.f32 %v8450_v29  ;;  %v2947_v32 = vmul.f32 %v6892_v44, %v8398_v58  ;;  %v6894_v37 = vpop.eup %6893  ;;  %v2972_v58 = vmul.f32 %v2965_v1, %v7750_v46  ;;  %v2985_v46 = vadd.f32 %v2977_v38, %v7761_v53 }
 0x746   :  { %6897 = vrcp.f32 %v2931_v31  ;;  %v2986_v53 = vadd.f32 %v2978_v17, %v7771_v36 }
 0x747   :  { %v8454_v35 = vadd.f32 %v2949_v34, %v2947_v32  ;;  %v2980_v8 = vadd.f32 %v2972_v58, %v7758_v51  ;;  %v2982_v51 = vadd.f32 %v2974_v45, %v7771_v36 }
 0x749   :  { %6899 = vtanh.f32 %v8454_v35 }
 0x752   :  { %v6896_v27 = vpop.eup %6895 }
 0x753   :  { %v2954_v39 = vmul.f32 %v6896_v27, %v6894_v37  ;;  %v6898_v49 = vpop.eup %6897 }
 0x755   :  { %2957 = vst [vmem:[#allocation5 + $0x60] sm:$0xff] %v2954_v39 }
 0x756   :  { %v6900_v47 = vpop.eup %6899 }
 0x757   :  { %v2955_v30 = vmul.f32 %v6900_v47, %v6898_v49 }
 0x759   :  { %2958 = vst [vmem:[#allocation5 + $0x68] sm:$0xff] %v2955_v30  ;;  %v2988_v63 = vpack.c.bf16 %v2955_v30, %v2954_v39 }
 0x75b   :  { %3214 = vmatmul.mubr.bf16.vlgmr.msra.gmra.mxu0 %v2988_v63  ;;  %3257 = vmatmul.mubr.bf16.vlgmr.msra.gmra.mxu1 %v2988_v63 }
 0x81b   :  { %v3215_v9 = vpop.f32.mrf.mxu0  ;;  %v3258_v33 = vpop.f32.mrf.mxu1 }
 0x81c   :  { %v3267_v40 = vadd.f32 %v3215_v9, %v2980_v8  ;;  %v3269_v21 = vadd.f32 %v3258_v33, %v2982_v51 }
 0x81d   :  { %v3217_v12 = vpop.f32.mrf.mxu0  ;;  %v3260_v15 = vpop.f32.mrf.mxu1 }
 0x81e   :  { %v5963_v60 = vmul.f32 -1.442695, %v3267_v40  ;;  %v3268_v0 = vadd.f32 %v3217_v12, %v2981_v10  ;;  %v5965_v50 = vmul.f32 -1.442695, %v3269_v21  ;;  %v3270_v41 = vadd.f32 %v3260_v15, %v2983_v56 }
 0x81f   :  { %v3219_v59 = vpop.f32.mrf.mxu0  ;;  %v3262_v22 = vpop.f32.mrf.mxu1 }
 0x820   :  { %6901 = vpow2.f32 %v5963_v60  ;;  %v5964_v11 = vmul.f32 -1.442695, %v3268_v0  ;;  %v3271_v2 = vadd.f32 %v3219_v59, %v2984_v61  ;;  %v3273_v52 = vadd.f32 %v3262_v22, %v2986_v53 }
 0x821   :  { %v3221_v13 = vpop.f32.mrf.mxu0  ;;  %v3264_v5 = vpop.f32.mrf.mxu1 }
 0x822   :  { %6903 = vpow2.f32 %v5964_v11  ;;  %v5966_v48 = vmul.f32 -1.442695, %v3271_v2  ;;  %v3272_v14 = vadd.f32 %v3221_v13, %v2985_v46  ;;  %v5968_v62 = vmul.f32 -1.442695, %v3273_v52 }
 0x823   :  { %v3274_v36 = vadd.f32 %v3264_v5, %v2987_v54 }
 0x824   :  { %6905 = vpow2.f32 %v5966_v48  ;;  %v5967_v16 = vmul.f32 -1.442695, %v3272_v14 }
 0x826   :  { %6907 = vpow2.f32 %v5967_v16 }
 0x827   :  { %6909 = vpow2.f32 %v5965_v50 }
 0x82d   :  { %v6902_v55 = vpop.eup %6901 }
 0x82e   :  { %v3293_v19 = vadd.f32 1.0, %v6902_v55 }
 0x82f   :  { %v6904_v23 = vpop.eup %6903 }
 0x830   :  { %6911 = vrcp.f32 %v3293_v19  ;;  %v3294_v42 = vadd.f32 1.0, %v6904_v23 }
 0x831   :  { %v6906_v3 = vpop.eup %6905  ;;  %6913 = vtanh.f32 %v3270_v41 }
 0x832   :  { %6915 = vrcp.f32 %v3294_v42  ;;  %v3296_v43 = vadd.f32 1.0, %v6906_v3 }
 0x833   :  { %v6908_v57 = vpop.eup %6907  ;;  %6917 = vpow2.f32 %v5968_v62 }
 0x834   :  { %6919 = vrcp.f32 %v3296_v43  ;;  %v3297_v26 = vadd.f32 1.0, %v6908_v57  ;;  %v6910_v25 = vpop.eup %6909 }
 0x835   :  { %6921 = vtanh.f32 %v3274_v36  ;;  %v3295_v32 = vadd.f32 1.0, %v6910_v25 }
 0x836   :  { %6923 = vrcp.f32 %v3297_v26 }
 0x837   :  { %6925 = vrcp.f32 %v3295_v32 }
 0x83d   :  { %v6912_v28 = vpop.eup %6911 }
 0x83e   :  { %v6914_v44 = vpop.eup %6913 }
 0x83f   :  { %v6916_v31 = vpop.eup %6915  ;;  %v3315_v37 = vmul.f32 %v6914_v44, %v6912_v28 }
 0x840   :  { %v6918_v34 = vpop.eup %6917  ;;  %v3313_v18 = vmul.f32 %v6916_v31, %v8450_v29 }
 0x841   :  { %v6920_v27 = vpop.eup %6919  ;;  %v3298_v30 = vadd.f32 1.0, %v6918_v34 }
 0x842   :  { %v6922_v39 = vpop.eup %6921  ;;  %v3317_v49 = vadd.f32 %v3315_v37, %v3313_v18 }
 0x843   :  { %v6924_v47 = vpop.eup %6923  ;;  %v3316_v1 = vmul.f32 %v6922_v39, %v6920_v27 }
 0x844   :  { %6927 = vtanh.f32 %v3317_v49  ;;  %v3314_v63 = vmul.f32 %v6924_v47, %v8454_v35  ;;  %v6926_v4 = vpop.eup %6925 }
 0x845   :  { %6929 = vrcp.f32 %v3298_v30 }
 0x846   :  { %v3318_v58 = vadd.f32 %v3316_v1, %v3314_v63 }
 0x848   :  { %6931 = vtanh.f32 %v3318_v58 }
 0x851   :  { %v6928_v6 = vpop.eup %6927 }
 0x852   :  { %v3321_v7 = vmul.f32 %v6928_v6, %v6926_v4  ;;  %v6930_v8 = vpop.eup %6929 }
 0x854   :  { %3324 = vst [vmem:[#allocation5 + $0x70] sm:$0xff] %v3321_v7 }
 0x855   :  { %v6932_v29 = vpop.eup %6931 }
 0x856   :  { %v3322_v9 = vmul.f32 %v6932_v29, %v6930_v8 }
 0x858   :  { %3325 = vst [vmem:[#allocation5 + $0x78] sm:$0xff] %v3322_v9 }
 0x859   :  { %7053 = dma.done.wait [#allocation4], 14336 }
 0x85a   :  { %7054 = vsyncadd [#allocation4], 4294952960 }
 0x85b   :  { %7055 = dma.done.wait [#allocation4 + $0x1], 1024 }
 0x85c   :  { %7056 = vsyncadd [#allocation4 + $0x1], 4294966272  ;;  %v7058_v38 = vmov 0.0   ;;  %vm7059_vm0 = vmmov 0   ;;  %v6933_v35 = vld [vmem:[#allocation2 + $0x78] sm:$0xff]   ;;  %v6935_v10 = vld [vmem:[#allocation2 + $0x70] sm:$0xff]  }
 0x85d   :  { %6228 = vmatprep.subr.bf16.mxu0 %v7058_v38  ;;  %6248 = vmatprep.subr.bf16.mxu1 %v7058_v38  ;;  %v6934_v40 = vld [vmem:[#allocation2 + $0x38] sm:$0xff]   ;;  %v6936_v12 = vld [vmem:[#allocation2 + $0x30] sm:$0xff]   ;;  %v6937_v60 = vld [vmem:[#allocation2 + $0x68] sm:$0xff]   ;;  %vm3417_vm1 = vcmask 1041409   ;;  %vm3420_vm2 = vcmask 1042434   ;;  %vm3423_vm3 = vcmask 1043459  }
 0x85e   :  { %6244 = vmatprep.mubr.msk.bf16.mxu0 %vm7059_vm0, %v7058_v38  ;;  %6264 = vmatprep.mubr.msk.bf16.mxu1 %vm7059_vm0, %v7058_v38  ;;  %v6938_v0 = vld [vmem:[#allocation2 + $0x28] sm:$0xff]   ;;  %v6939_v61 = vld [vmem:[#allocation2 + $0x60] sm:$0xff]   ;;  %v6941_v33 = vld [vmem:[#allocation2 + $0x58] sm:$0xff]   ;;  %vm3426_vm4 = vcmask 1044484   ;;  %vm3429_vm5 = vcmask 1045509   ;;  %vm3432_vm6 = vcmask 1046534  }
 0x85f   :  { %6229 = vmatpush3.bf16.msra.mxu0 %v6933_v35  ;;  %6249 = vmatpush3.bf16.msra.mxu1 %v6934_v40  ;;  %v6940_v59 = vld [vmem:[#allocation2 + $0x20] sm:$0xff]   ;;  %v6942_v11 = vld [vmem:[#allocation2 + $0x18] sm:$0xff]   ;;  %v6943_v2 = vld [vmem:[#allocation2 + $0x50] sm:$0xff]   ;;  %vm3435_vm7 = vcmask 1047559  }
 0x860   :  { %6230 = vmatprep.subr.bf16.mxu0 %v7058_v38  ;;  %6250 = vmatprep.subr.bf16.mxu1 %v7058_v38  ;;  %v3367_v46 = vld [vmem:[#allocation5 + $0x1] sm:$0x1]  ;;  %v3368_v45 = vld [vmem:[#allocation5 + $0x11] sm:$0x1]  ;;  %v3335_v56 = vld [vmem:[#allocation5] sm:$0x1] }
 0x861   :  { %v3369_v13 = vld [vmem:[#allocation5 + $0x21] sm:$0x1]  ;;  %v6944_v48 = vld [vmem:[#allocation2 + $0x10] sm:$0xff]   ;;  %v3375_v17 = vpack.c.bf16 %v3367_v46, %v3367_v46  ;;  %v3376_v51 = vpack.c.bf16 %v3368_v45, %v3368_v45  ;;  %v3337_v23 = vld [vmem:[#allocation5 + $0x20] sm:$0x1]  ;;  %v3343_v18 = vpack.c.bf16 %v3335_v56, %v3335_v56 }
 0x862   :  { %v3370_v14 = vld [vmem:[#allocation5 + $0x31] sm:$0x1]  ;;  %v3371_v15 = vld [vmem:[#allocation5 + $0x41] sm:$0x1]  ;;  %v3377_v20 = vpack.c.bf16 %v3369_v13, %v3369_v13  ;;  %v3336_v5 = vld [vmem:[#allocation5 + $0x10] sm:$0x1]  ;;  %v3345_v4 = vpack.c.bf16 %v3337_v23, %v3337_v23 }
 0x863   :  { %6231 = vmatpush3.bf16.msra.mxu0 %v6935_v10  ;;  %6251 = vmatpush3.bf16.msra.mxu1 %v6936_v12  ;;  %v3372_v16 = vld [vmem:[#allocation5 + $0x51] sm:$0x1]  ;;  %v3373_v21 = vld [vmem:[#allocation5 + $0x61] sm:$0x1]  ;;  %v3378_v53 = vpack.c.bf16 %v3370_v14, %v3370_v14  ;;  %v3379_v24 = vpack.c.bf16 %v3371_v15, %v3371_v15  ;;  %v3408_v41 = vunpack.c.l.b16 %v3375_v17  ;;  %v3409_v19 = vunpack.c.l.b16 %v3376_v51  ;;  %v3338_v62 = vld [vmem:[#allocation5 + $0x30] sm:$0x1] }
 0x864   :  { %6232 = vmatprep.subr.bf16.mxu0 %v7058_v38  ;;  %6252 = vmatprep.subr.bf16.mxu1 %v7058_v38  ;;  %v3374_v22 = vld [vmem:[#allocation5 + $0x71] sm:$0x1]  ;;  %v3380_v50 = vpack.c.bf16 %v3372_v16, %v3372_v16  ;;  %v3381_v52 = vpack.c.bf16 %v3373_v21, %v3373_v21  ;;  %v6945_v54 = vld [vmem:[#allocation2 + $0x48] sm:$0xff]   ;;  %v3410_v42 = vunpack.c.l.b16 %v3377_v20  ;;  %v3339_v57 = vld [vmem:[#allocation5 + $0x40] sm:$0x1]  ;;  %v3344_v1 = vpack.c.bf16 %v3336_v5, %v3336_v5 }
 0x865   :  { %v3382_v55 = vpack.c.bf16 %v3374_v22, %v3374_v22  ;;  %v3411_v3 = vunpack.c.l.b16 %v3378_v53  ;;  %v3412_v36 = vunpack.c.l.b16 %v3379_v24  ;;  %v3340_v26 = vld [vmem:[#allocation5 + $0x50] sm:$0x1]  ;;  %v3341_v25 = vld [vmem:[#allocation5 + $0x60] sm:$0x1]  ;;  %v6946_v28 = vld [vmem:[#allocation2 + $0x8] sm:$0xff]   ;;  %v3416_v32 = vrot.slane %v3409_v19, 7 }
 0x866   :  { %v3413_v43 = vunpack.c.l.b16 %v3380_v50  ;;  %v3414_v44 = vunpack.c.l.b16 %v3381_v52  ;;  %v3342_v34 = vld [vmem:[#allocation5 + $0x70] sm:$0x1]  ;;  %v3419_v37 = vrot.slane %v3410_v42, 6  ;;  %v3346_v6 = vpack.c.bf16 %v3338_v62, %v3338_v62  ;;  %v6947_v40 = vld [vmem:[#allocation2 + $0x40] sm:$0xff]   ;;  %v6949_v22 = vld [vmem:[#allocation2 + $0xb8] sm:$0xff]  }
 0x867   :  { %6233 = vmatpush3.bf16.msra.mxu0 %v6937_v60  ;;  %6253 = vmatpush3.bf16.msra.mxu1 %v6938_v0  ;;  %v3415_v31 = vunpack.c.l.b16 %v3382_v55  ;;  %v3422_v27 = vrot.slane %v3411_v3, 5  ;;  %v3425_v39 = vrot.slane %v3412_v36, 4  ;;  %v3418_v47 = vsel %vm3417_vm1, %v3416_v32, %v3408_v41  ;;  %v6951_v41 = vld [vmem:[#allocation2 + $0xb0] sm:$0xff]   ;;  %v6950_v23 = vld [vmem:[#allocation2 + $0xf8] sm:$0xff]   ;;  %v6953_v42 = vld [vmem:[#allocation2 + $0xa8] sm:$0xff]  }
 0x868   :  { %6234 = vmatprep.subr.bf16.mxu0 %v7058_v38  ;;  %6254 = vmatprep.subr.bf16.mxu1 %v7058_v38  ;;  %v3428_v49 = vrot.slane %v3413_v43, 3  ;;  %v3431_v30 = vrot.slane %v3414_v44, 2  ;;  %v3421_v58 = vsel %vm3420_vm2, %v3419_v37, %v3418_v47  ;;  %v3347_v7 = vpack.c.bf16 %v3339_v57, %v3339_v57  ;;  %v3647_v3 = vld [vmem:[#allocation5 + $0x2] sm:$0x1]  ;;  %v3648_v36 = vld [vmem:[#allocation5 + $0x12] sm:$0x1] }
 0x869   :  { %v3434_v63 = vrot.slane %v3415_v31, 1  ;;  %v3424_v8 = vsel %vm3423_vm3, %v3422_v27, %v3421_v58  ;;  %v3348_v29 = vpack.c.bf16 %v3340_v26, %v3340_v26  ;;  %v3349_v9 = vpack.c.bf16 %v3341_v25, %v3341_v25  ;;  %v3649_v43 = vld [vmem:[#allocation5 + $0x22] sm:$0x1]  ;;  %v3650_v57 = vld [vmem:[#allocation5 + $0x32] sm:$0x1] }
 0x86a   :  { %v3350_v35 = vpack.c.bf16 %v3342_v34, %v3342_v34  ;;  %v3427_v10 = vsel %vm3426_vm4, %v3425_v39, %v3424_v8  ;;  %v3535_v12 = vunpack.c.l.b16 %v3343_v18  ;;  %v3536_v60 = vunpack.c.l.b16 %v3344_v1  ;;  %v3651_v25 = vld [vmem:[#allocation5 + $0x42] sm:$0x1]  ;;  %v3654_v18 = vld [vmem:[#allocation5 + $0x72] sm:$0x1] }
 0x86b   :  { %6235 = vmatpush3.bf16.msra.mxu0 %v6939_v61  ;;  %6255 = vmatpush3.bf16.msra.mxu1 %v6940_v59  ;;  %v3537_v0 = vunpack.c.l.b16 %v3345_v4  ;;  %v6948_v61 = vld [vmem:[#allocation2] sm:$0xff]   ;;  %v3430_v59 = vsel %vm3429_vm5, %v3428_v49, %v3427_v10  ;;  %v3541_v45 = vunpack.c.l.b16 %v3349_v9  ;;  %v3655_v26 = vpack.c.bf16 %v3647_v3, %v3647_v3  ;;  %v3802_v4 = vld [vmem:[#allocation5 + $0x13] sm:$0x1]  ;;  %v6954_v10 = vld [vmem:[#allocation2 + $0xe8] sm:$0xff]  }
 0x86c   :  { %6236 = vmatprep.subr.bf16.mxu0 %v7058_v38  ;;  %6256 = vmatprep.subr.bf16.mxu1 %v7058_v38  ;;  %v3433_v46 = vsel %vm3432_vm6, %v3431_v30, %v3430_v59  ;;  %v3542_v13 = vunpack.c.l.b16 %v3350_v35  ;;  %v3653_v44 = vld [vmem:[#allocation5 + $0x62] sm:$0x1]  ;;  %v3656_v31 = vpack.c.bf16 %v3648_v36, %v3648_v36  ;;  %v3657_v32 = vpack.c.bf16 %v3649_v43, %v3649_v43  ;;  %v3801_v49 = vld [vmem:[#allocation5 + $0x3] sm:$0x1]  ;;  %v3804_v9 = vld [vmem:[#allocation5 + $0x33] sm:$0x1] }
 0x86d   :  { %v3436_v14 = vsel %vm3435_vm7, %v3434_v63, %v3433_v46  ;;  %v3545_v15 = vrot.slane %v3537_v0, 6  ;;  %v3553_v24 = vrot.slane %v3541_v45, 2  ;;  %v3658_v34 = vpack.c.bf16 %v3650_v57, %v3650_v57  ;;  %v6955_v47 = vld [vmem:[#allocation2 + $0xa0] sm:$0xff]   ;;  %v6957_v46 = vld [vmem:[#allocation2 + $0x98] sm:$0xff]   ;;  %v6961_v36 = vld [vmem:[#allocation2 + $0x88] sm:$0xff]  }
 0x86e   :  { %v3437_v51 = vpack.c.b16 %v3436_v14, %v3436_v14  ;;  %v3555_v50 = vrot.slane %v3542_v13, 1  ;;  %v3659_v37 = vpack.c.bf16 %v3651_v25, %v3651_v25  ;;  %v3661_v39 = vpack.c.bf16 %v3653_v44, %v3653_v44  ;;  %v3805_v35 = vld [vmem:[#allocation5 + $0x43] sm:$0x1]  ;;  %v6958_v3 = vld [vmem:[#allocation2 + $0xd8] sm:$0xff]  }
 0x86f   :  { %6237 = vmatpush3.bf16.msra.mxu0 %v6941_v33  ;;  %6257 = vmatpush3.bf16.msra.mxu1 %v6942_v11  ;;  %v3538_v33 = vunpack.c.l.b16 %v3346_v6  ;;  %v3539_v11 = vunpack.c.l.b16 %v3347_v7  ;;  %v3688_v30 = vunpack.c.l.b16 %v3655_v26  ;;  %v3689_v63 = vunpack.c.l.b16 %v3656_v31  ;;  %v3803_v6 = vld [vmem:[#allocation5 + $0x23] sm:$0x1] }
 0x870   :  { %6238 = vmatprep.subr.bf16.mxu0 %v7058_v38  ;;  %6258 = vmatprep.subr.bf16.mxu1 %v7058_v38  ;;  %v3690_v1 = vunpack.c.l.b16 %v3657_v32  ;;  %v3691_v58 = vunpack.c.l.b16 %v3658_v34  ;;  %v3662_v7 = vpack.c.bf16 %v3654_v18, %v3654_v18  ;;  %v3692_v8 = vunpack.c.l.b16 %v3659_v37  ;;  %v6960_v37 = vld [vmem:[#allocation2 + $0xd0] sm:$0xff]  }
 0x871   :  { %v3547_v16 = vrot.slane %v3538_v33, 5  ;;  %v3549_v17 = vrot.slane %v3539_v11, 4  ;;  %v3694_v59 = vunpack.c.l.b16 %v3661_v39  ;;  %v3807_v11 = vld [vmem:[#allocation5 + $0x63] sm:$0x1]  ;;  %v3812_v14 = vpack.c.bf16 %v3804_v9, %v3804_v9  ;;  %v3957_v9 = vld [vmem:[#allocation5 + $0x24] sm:$0x1] }
 0x872   :  { %v3700_v0 = vrot.slane %v3691_v58, 5  ;;  %v3702_v33 = vrot.slane %v3692_v8, 4  ;;  %v3956_v8 = vld [vmem:[#allocation5 + $0x14] sm:$0x1] }
 0x873   :  { %6239 = vmatpush3.bf16.msra.mxu0 %v6943_v2  ;;  %6259 = vmatpush3.bf16.msra.mxu1 %v6944_v48  ;;  %v3540_v2 = vunpack.c.l.b16 %v3348_v29  ;;  %v3543_v48 = vrot.slane %v3536_v60, 7  ;;  %v3698_v60 = vrot.slane %v3690_v1, 6  ;;  %v6962_v1 = vld [vmem:[#allocation2 + $0xc8] sm:$0xff]  }
 0x874   :  { %6240 = vmatprep.subr.bf16.mxu0 %v7058_v38  ;;  %6260 = vmatprep.subr.bf16.mxu1 %v7058_v38 }
 0x875   :  { %v3544_v20 = vsel %vm3417_vm1, %v3543_v48, %v3535_v12  ;;  %v3551_v21 = vrot.slane %v3540_v2, 3  ;;  %v3696_v12 = vrot.slane %v3689_v63, 7  ;;  %v3810_v2 = vpack.c.bf16 %v3802_v4, %v3802_v4 }
 0x876   :  { %v3546_v53 = vsel %vm3420_vm2, %v3545_v15, %v3544_v20  ;;  %v3811_v48 = vpack.c.bf16 %v3803_v6, %v3803_v6  ;;  %v3695_v15 = vunpack.c.l.b16 %v3662_v7  ;;  %v6956_v20 = vld [vmem:[#allocation2 + $0xe0] sm:$0xff]  }
 0x877   :  { %6241 = vmatpush3.bf16.msra.mxu0 %v6945_v54  ;;  %6261 = vmatpush3.bf16.msra.mxu1 %v6946_v28  ;;  %v3548_v56 = vsel %vm3423_vm3, %v3547_v16, %v3546_v53  ;;  %v6952_v54 = vld [vmem:[#allocation2 + $0xf0] sm:$0xff]   ;;  %v3697_v45 = vsel %vm3417_vm1, %v3696_v12, %v3688_v30  ;;  %v3955_v7 = vld [vmem:[#allocation5 + $0x4] sm:$0x1] }
 0x878   :  { %6242 = vmatprep.subr.bf16.mxu0 %v7058_v38  ;;  %6262 = vmatprep.subr.bf16.mxu1 %v7058_v38  ;;  %v3550_v52 = vsel %vm3426_vm4, %v3549_v17, %v3548_v56  ;;  %v3652_v28 = vld [vmem:[#allocation5 + $0x52] sm:$0x1]  ;;  %v3699_v16 = vsel %vm3420_vm2, %v3698_v60, %v3697_v45  ;;  %v3813_v17 = vpack.c.bf16 %v3805_v35, %v3805_v35  ;;  %v3808_v56 = vld [vmem:[#allocation5 + $0x73] sm:$0x1]  ;;  %v3708_v25 = vrot.slane %v3695_v15, 1  ;;  %v6964_v12 = vld [vmem:[#allocation2 + $0xc0] sm:$0xff]  }
 0x879   :  { %v3552_v55 = vsel %vm3429_vm5, %v3551_v21, %v3550_v52  ;;  %v3660_v27 = vpack.c.bf16 %v3652_v28, %v3652_v28  ;;  %v3701_v21 = vsel %vm3423_vm3, %v3700_v0, %v3699_v16  ;;  %v3844_v52 = vunpack.c.l.b16 %v3811_v48  ;;  %v6969_v15 = vld [vmem:[#allocation2 + $0x128] sm:$0xff]   ;;  %v3960_v16 = vld [vmem:[#allocation5 + $0x54] sm:$0x1] }
 0x87a   :  { %v3554_v19 = vsel %vm3432_vm6, %v3553_v24, %v3552_v55  ;;  %v3843_v24 = vunpack.c.l.b16 %v3810_v2  ;;  %v3845_v55 = vunpack.c.l.b16 %v3812_v14  ;;  %v3816_v57 = vpack.c.bf16 %v3808_v56, %v3808_v56  ;;  %v4109_v14 = vld [vmem:[#allocation5 + $0x5] sm:$0x1] }
 0x87b   :  { %6243 = vmatpush3.bf16.msra.mxu0 %v6947_v40  ;;  %6263 = vmatpush3.bf16.msra.mxu1 %v6948_v61  ;;  %v3556_v5 = vsel %vm3435_vm7, %v3555_v50, %v3554_v19  ;;  %v3693_v29 = vunpack.c.l.b16 %v3660_v27  ;;  %v3806_v40 = vld [vmem:[#allocation5 + $0x53] sm:$0x1]  ;;  %v3809_v61 = vpack.c.bf16 %v3801_v49, %v3801_v49  ;;  %v3703_v50 = vsel %vm3426_vm4, %v3702_v33, %v3701_v21  ;;  %v4110_v33 = vld [vmem:[#allocation5 + $0x15] sm:$0x1] }
 0x87c   :  { %6268 = vmatprep.subr.bf16.mxu0 %v7058_v38  ;;  %6288 = vmatprep.subr.bf16.mxu1 %v7058_v38  ;;  %v3557_v62 = vpack.c.b16 %v3556_v5, %v3556_v5  ;;  %v6959_v19 = vld [vmem:[#allocation2 + $0x90] sm:$0xff]   ;;  %v3849_v27 = vunpack.c.l.b16 %v3816_v57  ;;  %v3964_v35 = vpack.c.bf16 %v3956_v8, %v3956_v8  ;;  %v3963_v0 = vpack.c.bf16 %v3955_v7, %v3955_v7 }
 0x87d   :  { %v3704_v13 = vrot.slane %v3693_v29, 3  ;;  %v3842_v53 = vunpack.c.l.b16 %v3809_v61  ;;  %v6965_v29 = vld [vmem:[#allocation2 + $0x138] sm:$0xff]   ;;  %v6967_v61 = vld [vmem:[#allocation2 + $0x130] sm:$0xff]   ;;  %v4117_v56 = vpack.c.bf16 %v4109_v14, %v4109_v14 }
 0x87e   :  { %6245 = vmatmul.mubr.bf16.vlgmr.msra.gmra.mxu0 %v3437_v51  ;;  %6265 = vmatmul.mubr.bf16.vlgmr.msra.gmra.mxu1 %v3557_v62  ;;  %v3814_v51 = vpack.c.bf16 %v3806_v40, %v3806_v40  ;;  %v3850_v62 = vrot.slane %v3843_v24, 7  ;;  %v3862_v58 = vrot.slane %v3849_v27, 1  ;;  %v3958_v40 = vld [vmem:[#allocation5 + $0x34] sm:$0x1]  ;;  %v3961_v24 = vld [vmem:[#allocation5 + $0x64] sm:$0x1] }
 0x87f   :  { %6269 = vmatpush3.bf16.msra.mxu0 %v6949_v22  ;;  %6284 = vmatprep.mubr.msk.bf16.mxu0 %vm7059_vm0, %v7058_v38  ;;  %v3815_v22 = vpack.c.bf16 %v3807_v11, %v3807_v11  ;;  %v3705_v43 = vsel %vm3429_vm5, %v3704_v13, %v3703_v50  ;;  %v3959_v11 = vld [vmem:[#allocation5 + $0x44] sm:$0x1]  ;;  %v3966_v2 = vpack.c.bf16 %v3958_v40, %v3958_v40  ;;  %v6966_v13 = vld [vmem:[#allocation2 + $0x178] sm:$0xff]  }
 0x880   :  { %6270 = vmatprep.subr.bf16.mxu0 %v7058_v38  ;;  %6289 = vmatpush3.bf16.msra.mxu1 %v6950_v23  ;;  %v3847_v5 = vunpack.c.l.b16 %v3814_v51  ;;  %v3706_v23 = vrot.slane %v3694_v59, 2  ;;  %v3851_v44 = vsel %vm3417_vm1, %v3850_v62, %v3842_v53  ;;  %v3997_v59 = vunpack.c.l.b16 %v3964_v35 }
 0x881   :  { %6304 = vmatprep.mubr.msk.bf16.mxu1 %vm7059_vm0, %v7058_v38  ;;  %6290 = vmatprep.subr.bf16.mxu1 %v7058_v38  ;;  %v3848_v28 = vunpack.c.l.b16 %v3815_v22  ;;  %v3967_v21 = vpack.c.bf16 %v3959_v11, %v3959_v11  ;;  %v4112_v22 = vld [vmem:[#allocation5 + $0x35] sm:$0x1]  ;;  %v3999_v50 = vunpack.c.l.b16 %v3966_v2 }
 0x882   :  { %v3858_v31 = vrot.slane %v3847_v5, 3  ;;  %v3707_v34 = vsel %vm3432_vm6, %v3706_v23, %v3705_v43  ;;  %v4004_v51 = vrot.slane %v3997_v59, 7  ;;  %v4113_v23 = vld [vmem:[#allocation5 + $0x45] sm:$0x1]  ;;  %v4120_v62 = vpack.c.bf16 %v4112_v22, %v4112_v22  ;;  %v3962_v43 = vld [vmem:[#allocation5 + $0x74] sm:$0x1] }
 0x883   :  { %6271 = vmatpush3.bf16.msra.mxu0 %v6951_v41  ;;  %v3846_v41 = vunpack.c.l.b16 %v3813_v17  ;;  %v3860_v49 = vrot.slane %v3848_v28, 2  ;;  %v3709_v30 = vsel %vm3435_vm7, %v3708_v25, %v3707_v34  ;;  %v3996_v17 = vunpack.c.l.b16 %v3963_v0  ;;  %v6973_v34 = vld [vmem:[#allocation2 + $0x118] sm:$0xff]  }
 0x884   :  { %6272 = vmatprep.subr.bf16.mxu0 %v7058_v38  ;;  %6291 = vmatpush3.bf16.msra.mxu1 %v6952_v54  ;;  %v3852_v54 = vrot.slane %v3844_v52, 6  ;;  %v3710_v4 = vpack.c.b16 %v3709_v30, %v3709_v30  ;;  %v6968_v52 = vld [vmem:[#allocation2 + $0x170] sm:$0xff]   ;;  %v4008_v57 = vrot.slane %v3999_v50, 5  ;;  %v3969_v28 = vpack.c.bf16 %v3961_v24, %v3961_v24  ;;  %v6978_v24 = vld [vmem:[#allocation2 + $0x148] sm:$0xff]  }
 0x885   :  { %6292 = vmatprep.subr.bf16.mxu1 %v7058_v38  ;;  %v3856_v26 = vrot.slane %v3846_v41, 4  ;;  %v4005_v5 = vsel %vm3417_vm1, %v4004_v51, %v3996_v17  ;;  %v6976_v17 = vld [vmem:[#allocation2 + $0x150] sm:$0xff]  }
 0x886   :  { %v3853_v32 = vsel %vm3420_vm2, %v3852_v54, %v3851_v44  ;;  %v6971_v54 = vld [vmem:[#allocation2 + $0x120] sm:$0xff]  }
 0x887   :  { %6273 = vmatpush3.bf16.msra.mxu0 %v6953_v42  ;;  %v3854_v42 = vrot.slane %v3845_v55, 5 }
 0x888   :  { %6274 = vmatprep.subr.bf16.mxu0 %v7058_v38  ;;  %6293 = vmatpush3.bf16.msra.mxu1 %v6954_v10  ;;  %v3965_v10 = vpack.c.bf16 %v3957_v9, %v3957_v9 }
 0x889   :  { %6294 = vmatprep.subr.bf16.mxu1 %v7058_v38  ;;  %v3855_v18 = vsel %vm3423_vm3, %v3854_v42, %v3853_v32  ;;  %v4000_v42 = vunpack.c.l.b16 %v3967_v21  ;;  %v4121_v32 = vpack.c.bf16 %v4113_v23, %v4113_v23  ;;  %v6979_v21 = vld [vmem:[#allocation2 + $0x100] sm:$0xff]   ;;  %v4266_v23 = vld [vmem:[#allocation5 + $0x36] sm:$0x1] }
 0x88a   :  { %v3857_v39 = vsel %vm3426_vm4, %v3856_v26, %v3855_v18  ;;  %v3998_v48 = vunpack.c.l.b16 %v3965_v10  ;;  %v4150_v26 = vunpack.c.l.b16 %v4117_v56  ;;  %v6975_v10 = vld [vmem:[#allocation2 + $0x110] sm:$0xff]   ;;  %v6981_v56 = vld [vmem:[#allocation2 + $0x1b8] sm:$0xff]  }
 0x88b   :  { %6275 = vmatpush3.bf16.msra.mxu0 %v6955_v47  ;;  %v6963_v47 = vld [vmem:[#allocation2 + $0x80] sm:$0xff]   ;;  %v3859_v63 = vsel %vm3429_vm5, %v3858_v31, %v3857_v39  ;;  %v4114_v31 = vld [vmem:[#allocation5 + $0x55] sm:$0x1]  ;;  %v4010_v27 = vrot.slane %v4000_v42, 4  ;;  %v4154_v7 = vunpack.c.l.b16 %v4121_v32 }
 0x88c   :  { %6276 = vmatprep.subr.bf16.mxu0 %v7058_v38  ;;  %6295 = vmatpush3.bf16.msra.mxu1 %v6956_v20  ;;  %v3861_v6 = vsel %vm3432_vm6, %v3860_v49, %v3859_v63  ;;  %v4118_v20 = vpack.c.bf16 %v4110_v33, %v4110_v33  ;;  %v4006_v55 = vrot.slane %v3998_v48, 6  ;;  %v6972_v49 = vld [vmem:[#allocation2 + $0x160] sm:$0xff]   ;;  %v6974_v33 = vld [vmem:[#allocation2 + $0x158] sm:$0xff]  }
 0x88d   :  { %6296 = vmatprep.subr.bf16.mxu1 %v7058_v38  ;;  %v3863_v60 = vsel %vm3435_vm7, %v3862_v58, %v3861_v6  ;;  %v4115_v63 = vld [vmem:[#allocation5 + $0x65] sm:$0x1]  ;;  %v4116_v6 = vld [vmem:[#allocation5 + $0x75] sm:$0x1]  ;;  %v4164_v59 = vrot.slane %v4154_v7, 4 }
 0x88e   :  { %v3864_v45 = vpack.c.b16 %v3863_v60, %v3863_v60  ;;  %v4151_v41 = vunpack.c.l.b16 %v4118_v20  ;;  %v4007_v44 = vsel %vm3420_vm2, %v4006_v55, %v4005_v5  ;;  %v4123_v35 = vpack.c.bf16 %v4115_v63, %v4115_v63  ;;  %v4264_v20 = vld [vmem:[#allocation5 + $0x16] sm:$0x1]  ;;  %v4263_v5 = vld [vmem:[#allocation5 + $0x6] sm:$0x1] }
 0x88f   :  { %6277 = vmatpush3.bf16.msra.mxu0 %v6957_v46  ;;  %v4111_v46 = vld [vmem:[#allocation5 + $0x25] sm:$0x1]  ;;  %v4009_v30 = vsel %vm3423_vm3, %v4008_v57, %v4007_v44  ;;  %v4272_v55 = vpack.c.bf16 %v4264_v20, %v4264_v20  ;;  %v6983_v57 = vld [vmem:[#allocation2 + $0x1b0] sm:$0xff]   ;;  %v4419_v44 = vld [vmem:[#allocation5 + $0x27] sm:$0x1] }
 0x890   :  { %6278 = vmatprep.subr.bf16.mxu0 %v7058_v38  ;;  %6297 = vmatpush3.bf16.msra.mxu1 %v6958_v3  ;;  %v4119_v53 = vpack.c.bf16 %v4111_v46, %v4111_v46  ;;  %v4158_v25 = vrot.slane %v4151_v41, 7  ;;  %v4011_v9 = vsel %vm3426_vm4, %v4010_v27, %v4009_v30  ;;  %v4156_v46 = vunpack.c.l.b16 %v4123_v35  ;;  %v6980_v42 = vld [vmem:[#allocation2 + $0x140] sm:$0xff]   ;;  %v6985_v27 = vld [vmem:[#allocation2 + $0x1a8] sm:$0xff]   ;;  %v4420_v30 = vld [vmem:[#allocation5 + $0x37] sm:$0x1] }
 0x891   :  { %6298 = vmatprep.subr.bf16.mxu1 %v7058_v38  ;;  %v4427_v63 = vpack.c.bf16 %v4419_v44, %v4419_v44  ;;  %v6984_v7 = vld [vmem:[#allocation2 + $0x1f0] sm:$0xff]   ;;  %v4421_v35 = vld [vmem:[#allocation5 + $0x47] sm:$0x1]  ;;  %v6993_v44 = vld [vmem:[#allocation2 + $0x188] sm:$0xff]  }
 0x892   :  { %v4152_v3 = vunpack.c.l.b16 %v4119_v53  ;;  %v4159_v58 = vsel %vm3417_vm1, %v4158_v25, %v4150_v26  ;;  %v4168_v51 = vrot.slane %v4156_v46, 2  ;;  %v4267_v26 = vld [vmem:[#allocation5 + $0x46] sm:$0x1]  ;;  %v6982_v25 = vld [vmem:[#allocation2 + $0x1f8] sm:$0xff]   ;;  %v4422_v46 = vld [vmem:[#allocation5 + $0x57] sm:$0x1] }
 0x893   :  { %6279 = vmatpush3.bf16.msra.mxu0 %v6959_v19  ;;  %v3968_v19 = vpack.c.bf16 %v3960_v16, %v3960_v16 }
 0x894   :  { %6280 = vmatprep.subr.bf16.mxu0 %v7058_v38  ;;  %6299 = vmatpush3.bf16.msra.mxu1 %v6960_v37  ;;  %v4153_v37 = vunpack.c.l.b16 %v4120_v62  ;;  %v4160_v39 = vrot.slane %v4152_v3, 6 }
 0x895   :  { %6300 = vmatprep.subr.bf16.mxu1 %v7058_v38  ;;  %v4001_v18 = vunpack.c.l.b16 %v3968_v19 }
 0x896   :  { %v4161_v40 = vsel %vm3420_vm2, %v4160_v39, %v4159_v58 }
 0x897   :  { %6281 = vmatpush3.bf16.msra.mxu0 %v6961_v36  ;;  %v6970_v36 = vld [vmem:[#allocation2 + $0x168] sm:$0xff]   ;;  %v4012_v8 = vrot.slane %v4001_v18, 3 }
 0x898   :  { %6282 = vmatprep.subr.bf16.mxu0 %v7058_v38  ;;  %6301 = vmatpush3.bf16.msra.mxu1 %v6962_v1  ;;  %v4122_v1 = vpack.c.bf16 %v4114_v31, %v4114_v31 }
 0x899   :  { %6302 = vmatprep.subr.bf16.mxu1 %v7058_v38  ;;  %v4013_v11 = vsel %vm3429_vm5, %v4012_v8, %v4011_v9 }
 0x89a   :  { %v4155_v60 = vunpack.c.l.b16 %v4122_v1  ;;  %v4269_v1 = vld [vmem:[#allocation5 + $0x66] sm:$0x1] }
 0x89b   :  { %6283 = vmatpush3.bf16.msra.mxu0 %v6963_v47  ;;  %v3970_v47 = vpack.c.bf16 %v3962_v43, %v3962_v43  ;;  %v4305_v43 = vunpack.c.l.b16 %v4272_v55  ;;  %v4424_v55 = vld [vmem:[#allocation5 + $0x77] sm:$0x1] }
 0x89c   :  { %6308 = vmatprep.subr.bf16.mxu0 %v7058_v38  ;;  %6303 = vmatpush3.bf16.msra.mxu1 %v6964_v12  ;;  %v4166_v48 = vrot.slane %v4155_v60, 3  ;;  %v4460_v60 = vunpack.c.l.b16 %v4427_v63 }
 0x89d   :  { %6328 = vmatprep.subr.bf16.mxu1 %v7058_v38  ;;  %v4003_v12 = vunpack.c.l.b16 %v3970_v47  ;;  %v4275_v47 = vpack.c.bf16 %v4267_v26, %v4267_v26 }
 0x89e   :  { %6285 = vmatmul.mubr.bf16.vlgmr.msra.gmra.mxu0 %v3710_v4  ;;  %v4002_v4 = vunpack.c.l.b16 %v3969_v28  ;;  %v4274_v28 = vpack.c.bf16 %v4266_v23, %v4266_v23 }
 0x89f   :  { %6309 = vmatpush3.bf16.msra.mxu0 %v6965_v29  ;;  %6324 = vmatprep.mubr.msk.bf16.mxu0 %vm7059_vm0, %v7058_v38  ;;  %v4162_v29 = vrot.slane %v4153_v37, 5  ;;  %v4417_v37 = vld [vmem:[#allocation5 + $0x7] sm:$0x1] }
 0x8a0   :  { %6310 = vmatprep.subr.bf16.mxu0 %v7058_v38  ;;  %6305 = vmatmul.mubr.bf16.vlgmr.msra.gmra.mxu1 %v3864_v45  ;;  %v4014_v0 = vrot.slane %v4002_v4, 2  ;;  %v6977_v45 = vld [vmem:[#allocation2 + $0x108] sm:$0xff]   ;;  %v4307_v58 = vunpack.c.l.b16 %v4274_v28  ;;  %v4425_v4 = vpack.c.bf16 %v4417_v37, %v4417_v37 }
 0x8a1   :  { %6329 = vmatpush3.bf16.msra.mxu1 %v6966_v13  ;;  %6344 = vmatprep.mubr.msk.bf16.mxu1 %vm7059_vm0, %v7058_v38  ;;  %v4163_v2 = vsel %vm3423_vm3, %v4162_v29, %v4161_v40  ;;  %v4016_v13 = vrot.slane %v4003_v12, 1  ;;  %v4428_v40 = vpack.c.bf16 %v4420_v30, %v4420_v30  ;;  %v4308_v12 = vunpack.c.l.b16 %v4275_v47  ;;  %v6995_v47 = vld [vmem:[#allocation2 + $0x180] sm:$0xff]  }
 0x8a2   :  { %6330 = vmatprep.subr.bf16.mxu1 %v7058_v38  ;;  %v4015_v14 = vsel %vm3432_vm6, %v4014_v0, %v4013_v11  ;;  %v4165_v16 = vsel %vm3426_vm4, %v4164_v59, %v4163_v2  ;;  %v4316_v0 = vrot.slane %v4307_v58, 5  ;;  %v4277_v11 = vpack.c.bf16 %v4269_v1, %v4269_v1  ;;  %v6994_v1 = vld [vmem:[#allocation2 + $0x1c8] sm:$0xff]  }
 0x8a3   :  { %6311 = vmatpush3.bf16.msra.mxu0 %v6967_v61  ;;  %v4124_v61 = vpack.c.bf16 %v4116_v6, %v4116_v6  ;;  %v4017_v22 = vsel %vm3435_vm7, %v4016_v13, %v4015_v14  ;;  %v4167_v53 = vsel %vm3429_vm5, %v4166_v48, %v4165_v16  ;;  %v6986_v13 = vld [vmem:[#allocation2 + $0x1e8] sm:$0xff]   ;;  %v4461_v14 = vunpack.c.l.b16 %v4428_v40  ;;  %v4423_v16 = vld [vmem:[#allocation5 + $0x67] sm:$0x1] }
 0x8a4   :  { %6312 = vmatprep.subr.bf16.mxu0 %v7058_v38  ;;  %v4018_v41 = vpack.c.b16 %v4017_v22, %v4017_v22  ;;  %v4169_v19 = vsel %vm3432_vm6, %v4168_v51, %v4167_v53  ;;  %v6989_v51 = vld [vmem:[#allocation2 + $0x198] sm:$0xff]   ;;  %v4430_v22 = vpack.c.bf16 %v4422_v46, %v4422_v46 }
 0x8a5   :  { %6331 = vmatpush3.bf16.msra.mxu1 %v6968_v52  ;;  %v4265_v52 = vld [vmem:[#allocation5 + $0x26] sm:$0x1] }
 0x8a6   :  { %6332 = vmatprep.subr.bf16.mxu1 %v7058_v38  ;;  %v4273_v62 = vpack.c.bf16 %v4265_v52, %v4265_v52 }
 0x8a7   :  { %6313 = vmatpush3.bf16.msra.mxu0 %v6969_v15  ;;  %v4157_v15 = vunpack.c.l.b16 %v4124_v61  ;;  %v4458_v61 = vunpack.c.l.b16 %v4425_v4  ;;  %v6997_v4 = vld [vmem:[#allocation2 + $0x238] sm:$0xff]  }
 0x8a8   :  { %6314 = vmatprep.subr.bf16.mxu0 %v7058_v38  ;;  %v4306_v18 = vunpack.c.l.b16 %v4273_v62  ;;  %v6991_v62 = vld [vmem:[#allocation2 + $0x190] sm:$0xff]  }
 0x8a9   :  { %6333 = vmatpush3.bf16.msra.mxu1 %v6970_v36  ;;  %v4170_v50 = vrot.slane %v4157_v15, 1  ;;  %v4271_v36 = vpack.c.bf16 %v4263_v5, %v4263_v5  ;;  %v4318_v15 = vrot.slane %v4308_v12, 4  ;;  %v6996_v12 = vld [vmem:[#allocation2 + $0x1c0] sm:$0xff]  }
 0x8aa   :  { %6334 = vmatprep.subr.bf16.mxu1 %v7058_v38  ;;  %v4314_v8 = vrot.slane %v4306_v18, 6 }
 0x8ab   :  { %6315 = vmatpush3.bf16.msra.mxu0 %v6971_v54  ;;  %v4418_v54 = vld [vmem:[#allocation5 + $0x17] sm:$0x1]  ;;  %v4171_v3 = vsel %vm3435_vm7, %v4170_v50, %v4169_v19  ;;  %v4304_v39 = vunpack.c.l.b16 %v4271_v36  ;;  %v4310_v50 = vunpack.c.l.b16 %v4277_v11  ;;  %v4470_v19 = vrot.slane %v4461_v14, 5  ;;  %v6998_v14 = vld [vmem:[#allocation2 + $0x278] sm:$0xff]  }
 0x8ac   :  { %6316 = vmatprep.subr.bf16.mxu0 %v7058_v38  ;;  %v4426_v31 = vpack.c.bf16 %v4418_v54, %v4418_v54  ;;  %v4172_v32 = vpack.c.b16 %v4171_v3, %v4171_v3  ;;  %v4432_v36 = vpack.c.bf16 %v4424_v55, %v4424_v55  ;;  %v4577_v55 = vld [vmem:[#allocation5 + $0x68] sm:$0x1] }
 0x8ad   :  { %6335 = vmatpush3.bf16.msra.mxu1 %v6972_v49  ;;  %v4312_v49 = vrot.slane %v4305_v43, 7  ;;  %v4322_v3 = vrot.slane %v4310_v50, 2 }
 0x8ae   :  { %6336 = vmatprep.subr.bf16.mxu1 %v7058_v38  ;;  %v4459_v6 = vunpack.c.l.b16 %v4426_v31  ;;  %v4465_v18 = vunpack.c.l.b16 %v4432_v36  ;;  %v7002_v36 = vld [vmem:[#allocation2 + $0x268] sm:$0xff]  }
 0x8af   :  { %6317 = vmatpush3.bf16.msra.mxu0 %v6973_v34  ;;  %v4268_v34 = vld [vmem:[#allocation5 + $0x56] sm:$0x1]  ;;  %v4313_v9 = vsel %vm3417_vm1, %v4312_v49, %v4304_v39  ;;  %v4572_v49 = vld [vmem:[#allocation5 + $0x18] sm:$0x1] }
 0x8b0   :  { %6318 = vmatprep.subr.bf16.mxu0 %v7058_v38  ;;  %v4276_v29 = vpack.c.bf16 %v4268_v34, %v4268_v34  ;;  %v4466_v59 = vrot.slane %v4459_v6, 7  ;;  %v4315_v2 = vsel %vm3420_vm2, %v4314_v8, %v4313_v9  ;;  %v4478_v58 = vrot.slane %v4465_v18, 1  ;;  %v4573_v6 = vld [vmem:[#allocation5 + $0x28] sm:$0x1] }
 0x8b1   :  { %6337 = vmatpush3.bf16.msra.mxu1 %v6974_v33  ;;  %v4270_v33 = vld [vmem:[#allocation5 + $0x76] sm:$0x1]  ;;  %v4571_v9 = vld [vmem:[#allocation5 + $0x8] sm:$0x1]  ;;  %v4581_v40 = vpack.c.bf16 %v4573_v6, %v4573_v6 }
 0x8b2   :  { %6338 = vmatprep.subr.bf16.mxu1 %v7058_v38  ;;  %v4309_v48 = vunpack.c.l.b16 %v4276_v29  ;;  %v4278_v20 = vpack.c.bf16 %v4270_v33, %v4270_v33  ;;  %v4467_v53 = vsel %vm3417_vm1, %v4466_v59, %v4458_v61  ;;  %v6999_v59 = vld [vmem:[#allocation2 + $0x230] sm:$0xff]   ;;  %v4575_v33 = vld [vmem:[#allocation5 + $0x48] sm:$0x1] }
 0x8b3   :  { %6319 = vmatpush3.bf16.msra.mxu0 %v6975_v10  ;;  %v6987_v10 = vld [vmem:[#allocation2 + $0x1a0] sm:$0xff]  }
 0x8b4   :  { %6320 = vmatprep.subr.bf16.mxu0 %v7058_v38  ;;  %v4320_v52 = vrot.slane %v4309_v48, 3  ;;  %v4311_v54 = vunpack.c.l.b16 %v4278_v20  ;;  %v4725_v48 = vld [vmem:[#allocation5 + $0x9] sm:$0x1]  ;;  %v4728_v20 = vld [vmem:[#allocation5 + $0x39] sm:$0x1] }
 0x8b5   :  { %6339 = vmatpush3.bf16.msra.mxu1 %v6976_v17  ;;  %v4468_v17 = vrot.slane %v4460_v60, 6 }
 0x8b6   :  { %6340 = vmatprep.subr.bf16.mxu1 %v7058_v38  ;;  %v4324_v31 = vrot.slane %v4311_v54, 1  ;;  %v4578_v54 = vld [vmem:[#allocation5 + $0x78] sm:$0x1] }
 0x8b7   :  { %6321 = vmatpush3.bf16.msra.mxu0 %v6977_v45  ;;  %v4429_v45 = vpack.c.bf16 %v4421_v35, %v4421_v35  ;;  %v4469_v23 = vsel %vm3420_vm2, %v4468_v17, %v4467_v53  ;;  %v4574_v35 = vld [vmem:[#allocation5 + $0x38] sm:$0x1] }
 0x8b8   :  { %6322 = vmatprep.subr.bf16.mxu0 %v7058_v38  ;;  %v4471_v28 = vsel %vm3423_vm3, %v4470_v19, %v4469_v23  ;;  %v4582_v11 = vpack.c.bf16 %v4574_v35, %v4574_v35  ;;  %v4576_v17 = vld [vmem:[#allocation5 + $0x58] sm:$0x1]  ;;  %v4736_v23 = vpack.c.bf16 %v4728_v20, %v4728_v20 }
 0x8b9   :  { %6341 = vmatpush3.bf16.msra.mxu1 %v6978_v24  ;;  %v6988_v24 = vld [vmem:[#allocation2 + $0x1e0] sm:$0xff]  }
 0x8ba   :  { %6342 = vmatprep.subr.bf16.mxu1 %v7058_v38  ;;  %v4615_v53 = vunpack.c.l.b16 %v4582_v11  ;;  %v4769_v18 = vunpack.c.l.b16 %v4736_v23  ;;  %v7013_v23 = vld [vmem:[#allocation2 + $0x2b8] sm:$0xff]  }
 0x8bb   :  { %6323 = vmatpush3.bf16.msra.mxu0 %v6979_v21  ;;  %v4317_v21 = vsel %vm3423_vm3, %v4316_v0, %v4315_v2  ;;  %v4579_v0 = vpack.c.bf16 %v4571_v9, %v4571_v9  ;;  %v4727_v2 = vld [vmem:[#allocation5 + $0x29] sm:$0x1] }
 0x8bc   :  { %6348 = vmatprep.subr.bf16.mxu0 %v7058_v38  ;;  %v4319_v5 = vsel %vm3426_vm4, %v4318_v15, %v4317_v21  ;;  %v4735_v21 = vpack.c.bf16 %v4727_v2, %v4727_v2 }
 0x8bd   :  { %6343 = vmatpush3.bf16.msra.mxu1 %v6980_v42  ;;  %v4463_v42 = vunpack.c.l.b16 %v4430_v22  ;;  %v4321_v26 = vsel %vm3429_vm5, %v4320_v52, %v4319_v5  ;;  %v4612_v15 = vunpack.c.l.b16 %v4579_v0  ;;  %v7001_v22 = vld [vmem:[#allocation2 + $0x228] sm:$0xff]  }
 0x8be   :  { %6325 = vmatmul.mubr.bf16.vlgmr.msra.gmra.mxu0 %v4018_v41  ;;  %6368 = vmatprep.subr.bf16.mxu1 %v7058_v38  ;;  %v4431_v41 = vpack.c.bf16 %v4423_v16, %v4423_v16  ;;  %v4323_v34 = vsel %vm3432_vm6, %v4322_v3, %v4321_v26  ;;  %v4729_v5 = vld [vmem:[#allocation5 + $0x49] sm:$0x1]  ;;  %v4768_v3 = vunpack.c.l.b16 %v4735_v21  ;;  %v7011_v21 = vld [vmem:[#allocation2 + $0x200] sm:$0xff]  }
 0x8bf   :  { %6349 = vmatpush3.bf16.msra.mxu0 %v6981_v56  ;;  %6364 = vmatprep.mubr.msk.bf16.mxu0 %vm7059_vm0, %v7058_v38  ;;  %v4462_v56 = vunpack.c.l.b16 %v4429_v45  ;;  %v4325_v30 = vsel %vm3435_vm7, %v4324_v31, %v4323_v34  ;;  %v4737_v31 = vpack.c.bf16 %v4729_v5, %v4729_v5  ;;  %v7012_v5 = vld [vmem:[#allocation2 + $0x240] sm:$0xff]  }
 0x8c0   :  { %6350 = vmatprep.subr.bf16.mxu0 %v7058_v38  ;;  %6345 = vmatmul.mubr.bf16.vlgmr.msra.gmra.mxu1 %v4172_v32  ;;  %v4474_v32 = vrot.slane %v4463_v42, 3  ;;  %v4326_v8 = vpack.c.b16 %v4325_v30, %v4325_v30 }
 0x8c1   :  { %6369 = vmatpush3.bf16.msra.mxu1 %v6982_v25  ;;  %6384 = vmatprep.mubr.msk.bf16.mxu1 %vm7059_vm0, %v7058_v38  ;;  %v4472_v43 = vrot.slane %v4462_v56, 4  ;;  %v4464_v25 = vunpack.c.l.b16 %v4431_v41  ;;  %v7000_v56 = vld [vmem:[#allocation2 + $0x270] sm:$0xff]   ;;  %v4584_v41 = vpack.c.bf16 %v4576_v17, %v4576_v17 }
 0x8c2   :  { %6370 = vmatprep.subr.bf16.mxu1 %v7058_v38 }
 0x8c3   :  { %6351 = vmatpush3.bf16.msra.mxu0 %v6983_v57  ;;  %v6990_v57 = vld [vmem:[#allocation2 + $0x1d8] sm:$0xff]   ;;  %v4473_v37 = vsel %vm3426_vm4, %v4472_v43, %v4471_v28  ;;  %v4476_v39 = vrot.slane %v4464_v25, 2  ;;  %v4624_v43 = vrot.slane %v4615_v53, 5  ;;  %v4585_v25 = vpack.c.bf16 %v4577_v55, %v4577_v55 }
 0x8c4   :  { %6352 = vmatprep.subr.bf16.mxu0 %v7058_v38  ;;  %v4475_v63 = vsel %vm3429_vm5, %v4474_v32, %v4473_v37  ;;  %v7005_v32 = vld [vmem:[#allocation2 + $0x218] sm:$0xff]   ;;  %v4617_v34 = vunpack.c.l.b16 %v4584_v41 }
 0x8c5   :  { %6371 = vmatpush3.bf16.msra.mxu1 %v6984_v7  ;;  %v4580_v7 = vpack.c.bf16 %v4572_v49, %v4572_v49  ;;  %v4477_v29 = vsel %vm3432_vm6, %v4476_v39, %v4475_v63  ;;  %v4586_v39 = vpack.c.bf16 %v4578_v54, %v4578_v54 }
 0x8c6   :  { %6372 = vmatprep.subr.bf16.mxu1 %v7058_v38  ;;  %v4479_v60 = vsel %vm3435_vm7, %v4478_v58, %v4477_v29  ;;  %v4618_v58 = vunpack.c.l.b16 %v4585_v25  ;;  %v4628_v6 = vrot.slane %v4617_v34, 3  ;;  %v4732_v29 = vld [vmem:[#allocation5 + $0x79] sm:$0x1]  ;;  %v5035_v25 = vld [vmem:[#allocation5 + $0x2b] sm:$0x1] }
 0x8c7   :  { %6353 = vmatpush3.bf16.msra.mxu0 %v6985_v27  ;;  %v6992_v27 = vld [vmem:[#allocation2 + $0x1d0] sm:$0xff]   ;;  %v4613_v61 = vunpack.c.l.b16 %v4580_v7  ;;  %v4480_v45 = vpack.c.b16 %v4479_v60, %v4479_v60  ;;  %v4778_v7 = vrot.slane %v4769_v18, 5  ;;  %v4740_v11 = vpack.c.bf16 %v4732_v29, %v4732_v29 }
 0x8c8   :  { %6354 = vmatprep.subr.bf16.mxu0 %v7058_v38  ;;  %v4630_v0 = vrot.slane %v4618_v58, 2 }
 0x8c9   :  { %6373 = vmatpush3.bf16.msra.mxu1 %v6986_v13  ;;  %v4614_v13 = vunpack.c.l.b16 %v4581_v40  ;;  %v4620_v16 = vrot.slane %v4613_v61, 7  ;;  %v7006_v40 = vld [vmem:[#allocation2 + $0x258] sm:$0xff]   ;;  %v4773_v17 = vunpack.c.l.b16 %v4740_v11 }
 0x8ca   :  { %6374 = vmatprep.subr.bf16.mxu1 %v7058_v38 }
 0x8cb   :  { %6355 = vmatpush3.bf16.msra.mxu0 %v6987_v10  ;;  %v4726_v10 = vld [vmem:[#allocation5 + $0x19] sm:$0x1]  ;;  %v4622_v52 = vrot.slane %v4614_v13, 6  ;;  %v4621_v19 = vsel %vm3417_vm1, %v4620_v16, %v4612_v15  ;;  %v7008_v16 = vld [vmem:[#allocation2 + $0x250] sm:$0xff]  }
 0x8cc   :  { %6356 = vmatprep.subr.bf16.mxu0 %v7058_v38  ;;  %v4734_v46 = vpack.c.bf16 %v4726_v10, %v4726_v10  ;;  %v7007_v10 = vld [vmem:[#allocation2 + $0x210] sm:$0xff]  }
 0x8cd   :  { %6375 = vmatpush3.bf16.msra.mxu1 %v6988_v24  ;;  %v4733_v24 = vpack.c.bf16 %v4725_v48, %v4725_v48  ;;  %v4623_v28 = vsel %vm3420_vm2, %v4622_v52, %v4621_v19  ;;  %v4879_v19 = vld [vmem:[#allocation5 + $0xa] sm:$0x1] }
 0x8ce   :  { %6376 = vmatprep.subr.bf16.mxu1 %v7058_v38  ;;  %v4767_v50 = vunpack.c.l.b16 %v4734_v46  ;;  %v4625_v49 = vsel %vm3423_vm3, %v4624_v43, %v4623_v28  ;;  %v4883_v43 = vld [vmem:[#allocation5 + $0x4a] sm:$0x1]  ;;  %v5033_v28 = vld [vmem:[#allocation5 + $0xb] sm:$0x1] }
 0x8cf   :  { %6357 = vmatpush3.bf16.msra.mxu0 %v6989_v51  ;;  %v4583_v51 = vpack.c.bf16 %v4575_v33, %v4575_v33 }
 0x8d0   :  { %6358 = vmatprep.subr.bf16.mxu0 %v7058_v38  ;;  %v4774_v26 = vrot.slane %v4767_v50, 7  ;;  %v4786_v50 = vrot.slane %v4773_v17, 1 }
 0x8d1   :  { %6377 = vmatpush3.bf16.msra.mxu1 %v6990_v57  ;;  %v4616_v42 = vunpack.c.l.b16 %v4583_v51  ;;  %v4766_v57 = vunpack.c.l.b16 %v4733_v24  ;;  %v7010_v24 = vld [vmem:[#allocation2 + $0x248] sm:$0xff]  }
 0x8d2   :  { %6378 = vmatprep.subr.bf16.mxu1 %v7058_v38 }
 0x8d3   :  { %6359 = vmatpush3.bf16.msra.mxu0 %v6991_v62  ;;  %v7003_v62 = vld [vmem:[#allocation2 + $0x220] sm:$0xff]   ;;  %v4626_v37 = vrot.slane %v4616_v42, 4  ;;  %v4775_v63 = vsel %vm3417_vm1, %v4774_v26, %v4766_v57  ;;  %v5034_v42 = vld [vmem:[#allocation5 + $0x1b] sm:$0x1]  ;;  %v4887_v57 = vpack.c.bf16 %v4879_v19, %v4879_v19 }
 0x8d4   :  { %6360 = vmatprep.subr.bf16.mxu0 %v7058_v38 }
 0x8d5   :  { %6379 = vmatpush3.bf16.msra.mxu1 %v6992_v27  ;;  %v4776_v27 = vrot.slane %v4768_v3, 6 }
 0x8d6   :  { %6380 = vmatprep.subr.bf16.mxu1 %v7058_v38 }
 0x8d7   :  { %6361 = vmatpush3.bf16.msra.mxu0 %v6993_v44  ;;  %v4730_v44 = vld [vmem:[#allocation5 + $0x59] sm:$0x1]  ;;  %v4777_v35 = vsel %vm3420_vm2, %v4776_v27, %v4775_v63  ;;  %v4884_v27 = vld [vmem:[#allocation5 + $0x5a] sm:$0x1] }
 0x8d8   :  { %6362 = vmatprep.subr.bf16.mxu0 %v7058_v38  ;;  %v4738_v30 = vpack.c.bf16 %v4730_v44, %v4730_v44  ;;  %v4779_v2 = vsel %vm3423_vm3, %v4778_v7, %v4777_v35  ;;  %v7014_v44 = vld [vmem:[#allocation2 + $0x2f8] sm:$0xff]   ;;  %v4885_v7 = vld [vmem:[#allocation5 + $0x6a] sm:$0x1] }
 0x8d9   :  { %6381 = vmatpush3.bf16.msra.mxu1 %v6994_v1  ;;  %v7004_v1 = vld [vmem:[#allocation2 + $0x260] sm:$0xff]  }
 0x8da   :  { %6382 = vmatprep.subr.bf16.mxu1 %v7058_v38  ;;  %v4771_v60 = vunpack.c.l.b16 %v4738_v30  ;;  %v7017_v30 = vld [vmem:[#allocation2 + $0x2a8] sm:$0xff]  }
 0x8db   :  { %6363 = vmatpush3.bf16.msra.mxu0 %v6995_v47  ;;  %v4731_v47 = vld [vmem:[#allocation5 + $0x69] sm:$0x1] }
 0x8dc   :  { %6388 = vmatprep.subr.bf16.mxu0 %v7058_v38  ;;  %v4739_v9 = vpack.c.bf16 %v4731_v47, %v4731_v47  ;;  %v4782_v48 = vrot.slane %v4771_v60, 3  ;;  %v5043_v47 = vpack.c.bf16 %v5035_v25, %v5035_v25 }
 0x8dd   :  { %6383 = vmatpush3.bf16.msra.mxu1 %v6996_v12  ;;  %v4619_v12 = vunpack.c.l.b16 %v4586_v39  ;;  %v4891_v39 = vpack.c.bf16 %v4883_v43, %v4883_v43 }
 0x8de   :  { %6365 = vmatmul.mubr.bf16.vlgmr.msra.gmra.mxu0 %v4326_v8  ;;  %6408 = vmatprep.subr.bf16.mxu1 %v7058_v38  ;;  %v4627_v8 = vsel %vm3426_vm4, %v4626_v37, %v4625_v49  ;;  %v4772_v46 = vunpack.c.l.b16 %v4739_v9  ;;  %v4920_v37 = vunpack.c.l.b16 %v4887_v57  ;;  %v5036_v49 = vld [vmem:[#allocation5 + $0x3b] sm:$0x1]  ;;  %v5037_v9 = vld [vmem:[#allocation5 + $0x4b] sm:$0x1] }
 0x8df   :  { %6389 = vmatpush3.bf16.msra.mxu0 %v6997_v4  ;;  %6404 = vmatprep.mubr.msk.bf16.mxu0 %vm7059_vm0, %v7058_v38  ;;  %v4770_v4 = vunpack.c.l.b16 %v4737_v31  ;;  %v4629_v33 = vsel %vm3429_vm5, %v4628_v6, %v4627_v8  ;;  %v4632_v13 = vrot.slane %v4619_v12, 1  ;;  %v7016_v6 = vld [vmem:[#allocation2 + $0x2f0] sm:$0xff]   ;;  %v4892_v8 = vpack.c.bf16 %v4884_v27, %v4884_v27  ;;  %v7019_v12 = vld [vmem:[#allocation2 + $0x2a0] sm:$0xff]  }
 0x8e0   :  { %6390 = vmatprep.subr.bf16.mxu0 %v7058_v38  ;;  %6385 = vmatmul.mubr.bf16.vlgmr.msra.gmra.mxu1 %v4480_v45  ;;  %v4880_v45 = vld [vmem:[#allocation5 + $0x1a] sm:$0x1]  ;;  %v4784_v20 = vrot.slane %v4772_v46, 2  ;;  %v5044_v35 = vpack.c.bf16 %v5036_v49, %v5036_v49  ;;  %v5045_v46 = vpack.c.bf16 %v5037_v9, %v5037_v9  ;;  %v7027_v49 = vld [vmem:[#allocation2 + $0x280] sm:$0xff]   ;;  %v5190_v9 = vld [vmem:[#allocation5 + $0x3c] sm:$0x1] }
 0x8e1   :  { %6409 = vmatpush3.bf16.msra.mxu1 %v6998_v14  ;;  %6424 = vmatprep.mubr.msk.bf16.mxu1 %vm7059_vm0, %v7058_v38  ;;  %v4780_v61 = vrot.slane %v4770_v4, 4  ;;  %v4631_v14 = vsel %vm3432_vm6, %v4630_v0, %v4629_v33  ;;  %v4888_v51 = vpack.c.bf16 %v4880_v45, %v4880_v45  ;;  %v4893_v33 = vpack.c.bf16 %v4885_v7, %v4885_v7  ;;  %v7018_v45 = vld [vmem:[#allocation2 + $0x2e8] sm:$0xff]  }
 0x8e2   :  { %6410 = vmatprep.subr.bf16.mxu1 %v7058_v38 }
 0x8e3   :  { %6391 = vmatpush3.bf16.msra.mxu0 %v6999_v59  ;;  %v7009_v59 = vld [vmem:[#allocation2 + $0x208] sm:$0xff]   ;;  %v4781_v15 = vsel %vm3426_vm4, %v4780_v61, %v4779_v2  ;;  %v4921_v52 = vunpack.c.l.b16 %v4888_v51  ;;  %v5038_v2 = vld [vmem:[#allocation5 + $0x5b] sm:$0x1] }
 0x8e4   :  { %6392 = vmatprep.subr.bf16.mxu0 %v7058_v38  ;;  %v4783_v53 = vsel %vm3429_vm5, %v4782_v48, %v4781_v15  ;;  %v5077_v48 = vunpack.c.l.b16 %v5044_v35 }
 0x8e5   :  { %6411 = vmatpush3.bf16.msra.mxu1 %v7000_v56  ;;  %v4881_v56 = vld [vmem:[#allocation5 + $0x2a] sm:$0x1]  ;;  %v4785_v41 = vsel %vm3432_vm6, %v4784_v20, %v4783_v53  ;;  %v4928_v26 = vrot.slane %v4921_v52, 7  ;;  %v5039_v20 = vld [vmem:[#allocation5 + $0x6b] sm:$0x1]  ;;  %v4926_v53 = vunpack.c.l.b16 %v4893_v33  ;;  %v5198_v33 = vpack.c.bf16 %v5190_v9, %v5190_v9 }
 0x8e6   :  { %6412 = vmatprep.subr.bf16.mxu1 %v7058_v38  ;;  %v4889_v54 = vpack.c.bf16 %v4881_v56, %v4881_v56  ;;  %v4787_v3 = vsel %vm3435_vm7, %v4786_v50, %v4785_v41  ;;  %v7020_v50 = vld [vmem:[#allocation2 + $0x2e0] sm:$0xff]   ;;  %v5086_v52 = vrot.slane %v5077_v48, 5  ;;  %v5040_v41 = vld [vmem:[#allocation5 + $0x7b] sm:$0x1]  ;;  %v5047_v19 = vpack.c.bf16 %v5039_v20, %v5039_v20 }
 0x8e7   :  { %6393 = vmatpush3.bf16.msra.mxu0 %v7001_v22  ;;  %v4633_v22 = vsel %vm3435_vm7, %v4632_v13, %v4631_v14  ;;  %v4788_v34 = vpack.c.b16 %v4787_v3, %v4787_v3  ;;  %v4929_v29 = vsel %vm3417_vm1, %v4928_v26, %v4920_v37  ;;  %v4925_v13 = vunpack.c.l.b16 %v4892_v8  ;;  %v5187_v8 = vld [vmem:[#allocation5 + $0xc] sm:$0x1]  ;;  %v7030_v48 = vld [vmem:[#allocation2 + $0x378] sm:$0xff]  }
 0x8e8   :  { %6394 = vmatprep.subr.bf16.mxu0 %v7058_v38  ;;  %v4634_v55 = vpack.c.b16 %v4633_v22, %v4633_v22  ;;  %v4922_v18 = vunpack.c.l.b16 %v4889_v54  ;;  %v5048_v57 = vpack.c.bf16 %v5040_v41, %v5040_v41  ;;  %v5080_v25 = vunpack.c.l.b16 %v5047_v19  ;;  %v5345_v19 = vld [vmem:[#allocation5 + $0x4d] sm:$0x1] }
 0x8e9   :  { %6413 = vmatpush3.bf16.msra.mxu1 %v7002_v36  ;;  %v7015_v36 = vld [vmem:[#allocation2 + $0x2b0] sm:$0xff]   ;;  %v4936_v56 = vrot.slane %v4925_v13, 3  ;;  %v5341_v13 = vld [vmem:[#allocation5 + $0xd] sm:$0x1] }
 0x8ea   :  { %6414 = vmatprep.subr.bf16.mxu1 %v7058_v38  ;;  %v4930_v4 = vrot.slane %v4922_v18, 6  ;;  %v7024_v18 = vld [vmem:[#allocation2 + $0x2d0] sm:$0xff]   ;;  %v5081_v37 = vunpack.c.l.b16 %v5048_v57  ;;  %v5092_v27 = vrot.slane %v5080_v25, 2  ;;  %v5346_v25 = vld [vmem:[#allocation5 + $0x5d] sm:$0x1] }
 0x8eb   :  { %6395 = vmatpush3.bf16.msra.mxu0 %v7003_v62  ;;  %v4882_v62 = vld [vmem:[#allocation5 + $0x3a] sm:$0x1] }
 0x8ec   :  { %6396 = vmatprep.subr.bf16.mxu0 %v7058_v38  ;;  %v4890_v31 = vpack.c.bf16 %v4882_v62, %v4882_v62  ;;  %v4931_v11 = vsel %vm3420_vm2, %v4930_v4, %v4929_v29  ;;  %v7029_v29 = vld [vmem:[#allocation2 + $0x338] sm:$0xff]  }
 0x8ed   :  { %6415 = vmatpush3.bf16.msra.mxu1 %v7004_v1  ;;  %v5041_v1 = vpack.c.bf16 %v5033_v28, %v5033_v28  ;;  %v7025_v28 = vld [vmem:[#allocation2 + $0x288] sm:$0xff]  }
 0x8ee   :  { %6416 = vmatprep.subr.bf16.mxu1 %v7058_v38  ;;  %v4923_v63 = vunpack.c.l.b16 %v4890_v31 }
 0x8ef   :  { %6397 = vmatpush3.bf16.msra.mxu0 %v7005_v32  ;;  %v5042_v32 = vpack.c.bf16 %v5034_v42, %v5034_v42  ;;  %v5074_v0 = vunpack.c.l.b16 %v5041_v1  ;;  %v4938_v42 = vrot.slane %v4926_v53, 2  ;;  %v5094_v1 = vrot.slane %v5081_v37, 1  ;;  %v7037_v37 = vld [vmem:[#allocation2 + $0x318] sm:$0xff]  }
 0x8f0   :  { %6398 = vmatprep.subr.bf16.mxu0 %v7058_v38  ;;  %v4932_v60 = vrot.slane %v4923_v63, 5  ;;  %v7026_v63 = vld [vmem:[#allocation2 + $0x2c8] sm:$0xff]   ;;  %v5349_v53 = vpack.c.bf16 %v5341_v13, %v5341_v13 }
 0x8f1   :  { %6417 = vmatpush3.bf16.msra.mxu1 %v7006_v40  ;;  %v5075_v58 = vunpack.c.l.b16 %v5042_v32  ;;  %v4924_v40 = vunpack.c.l.b16 %v4891_v39  ;;  %v5188_v39 = vld [vmem:[#allocation5 + $0x1c] sm:$0x1] }
 0x8f2   :  { %6418 = vmatprep.subr.bf16.mxu1 %v7058_v38  ;;  %v4933_v51 = vsel %vm3423_vm3, %v4932_v60, %v4931_v11  ;;  %v5196_v4 = vpack.c.bf16 %v5188_v39, %v5188_v39  ;;  %v5195_v60 = vpack.c.bf16 %v5187_v8, %v5187_v8  ;;  %v5343_v11 = vld [vmem:[#allocation5 + $0x2d] sm:$0x1]  ;;  %v5348_v8 = vld [vmem:[#allocation5 + $0x7d] sm:$0x1] }
 0x8f3   :  { %6399 = vmatpush3.bf16.msra.mxu0 %v7007_v10  ;;  %v5076_v10 = vunpack.c.l.b16 %v5043_v47  ;;  %v5082_v61 = vrot.slane %v5075_v58, 7  ;;  %v4934_v14 = vrot.slane %v4924_v40, 4  ;;  %v5189_v58 = vld [vmem:[#allocation5 + $0x2c] sm:$0x1]  ;;  %v5342_v40 = vld [vmem:[#allocation5 + $0x1d] sm:$0x1]  ;;  %v5351_v20 = vpack.c.bf16 %v5343_v11, %v5343_v11 }
 0x8f4   :  { %6400 = vmatprep.subr.bf16.mxu0 %v7058_v38  ;;  %v5197_v35 = vpack.c.bf16 %v5189_v58, %v5189_v58  ;;  %v7036_v58 = vld [vmem:[#allocation2 + $0x360] sm:$0xff]  }
 0x8f5   :  { %6419 = vmatpush3.bf16.msra.mxu1 %v7008_v16  ;;  %v5084_v15 = vrot.slane %v5076_v10, 6  ;;  %v7021_v16 = vld [vmem:[#allocation2 + $0x298] sm:$0xff]   ;;  %v5083_v22 = vsel %vm3417_vm1, %v5082_v61, %v5074_v0  ;;  %v7028_v10 = vld [vmem:[#allocation2 + $0x2c0] sm:$0xff]   ;;  %v5229_v0 = vunpack.c.l.b16 %v5196_v4  ;;  %v7031_v61 = vld [vmem:[#allocation2 + $0x330] sm:$0xff]  }
 0x8f6   :  { %6420 = vmatprep.subr.bf16.mxu1 %v7058_v38 }
 0x8f7   :  { %6401 = vmatpush3.bf16.msra.mxu0 %v7009_v59  ;;  %v4886_v59 = vld [vmem:[#allocation5 + $0x7a] sm:$0x1] }
 0x8f8   :  { %6402 = vmatprep.subr.bf16.mxu0 %v7058_v38  ;;  %v4894_v17 = vpack.c.bf16 %v4886_v59, %v4886_v59  ;;  %v5191_v59 = vld [vmem:[#allocation5 + $0x4c] sm:$0x1] }
 0x8f9   :  { %6421 = vmatpush3.bf16.msra.mxu1 %v7010_v24  ;;  %v5078_v24 = vunpack.c.l.b16 %v5045_v46 }
 0x8fa   :  { %6422 = vmatprep.subr.bf16.mxu1 %v7058_v38  ;;  %v4927_v62 = vunpack.c.l.b16 %v4894_v17  ;;  %v5199_v17 = vpack.c.bf16 %v5191_v59, %v5191_v59  ;;  %v5356_v59 = vpack.c.bf16 %v5348_v8, %v5348_v8 }
 0x8fb   :  { %6403 = vmatpush3.bf16.msra.mxu0 %v7011_v21  ;;  %v5046_v21 = vpack.c.bf16 %v5038_v2, %v5038_v2  ;;  %v5088_v3 = vrot.slane %v5078_v24, 4  ;;  %v5350_v2 = vpack.c.bf16 %v5342_v40, %v5342_v40 }
 0x8fc   :  { %6428 = vmatprep.subr.bf16.mxu0 %v7058_v38 }
 0x8fd   :  { %6423 = vmatpush3.bf16.msra.mxu1 %v7012_v5  ;;  %v5085_v5 = vsel %vm3420_vm2, %v5084_v15, %v5083_v22  ;;  %v5079_v54 = vunpack.c.l.b16 %v5046_v21  ;;  %v5236_v15 = vrot.slane %v5229_v0, 7  ;;  %v7033_v21 = vld [vmem:[#allocation2 + $0x328] sm:$0xff]   ;;  %v5231_v22 = vunpack.c.l.b16 %v5198_v33  ;;  %v7038_v0 = vld [vmem:[#allocation2 + $0x358] sm:$0xff]  }
 0x8fe   :  { %6405 = vmatmul.mubr.bf16.vlgmr.msra.gmra.mxu0 %v4634_v55  ;;  %6448 = vmatprep.subr.bf16.mxu1 %v7058_v38  ;;  %v4935_v55 = vsel %vm3426_vm4, %v4934_v14, %v4933_v51  ;;  %v5087_v26 = vsel %vm3423_vm3, %v5086_v52, %v5085_v5  ;;  %v5228_v14 = vunpack.c.l.b16 %v5195_v60  ;;  %v5344_v51 = vld [vmem:[#allocation5 + $0x3d] sm:$0x1]  ;;  %v5383_v24 = vunpack.c.l.b16 %v5350_v2  ;;  %v5193_v52 = vld [vmem:[#allocation5 + $0x6c] sm:$0x1] }
 0x8ff   :  { %6429 = vmatpush3.bf16.msra.mxu0 %v7013_v23  ;;  %6444 = vmatprep.mubr.msk.bf16.mxu0 %vm7059_vm0, %v7058_v38  ;;  %v7023_v23 = vld [vmem:[#allocation2 + $0x290] sm:$0xff]   ;;  %v4937_v43 = vsel %vm3429_vm5, %v4936_v56, %v4935_v55  ;;  %v5090_v31 = vrot.slane %v5079_v54, 3  ;;  %v5352_v5 = vpack.c.bf16 %v5344_v51, %v5344_v51  ;;  %v7035_v54 = vld [vmem:[#allocation2 + $0x320] sm:$0xff]   ;;  %v5201_v57 = vpack.c.bf16 %v5193_v52, %v5193_v52  ;;  %v7041_v2 = vld [vmem:[#allocation2 + $0x308] sm:$0xff]  }
 0x900   :  { %6430 = vmatprep.subr.bf16.mxu0 %v7058_v38  ;;  %6425 = vmatmul.mubr.bf16.vlgmr.msra.gmra.mxu1 %v4788_v34  ;;  %v4939_v32 = vsel %vm3432_vm6, %v4938_v42, %v4937_v43  ;;  %v5089_v34 = vsel %vm3426_vm4, %v5088_v3, %v5087_v26  ;;  %v7032_v56 = vld [vmem:[#allocation2 + $0x370] sm:$0xff]   ;;  %v5237_v41 = vsel %vm3417_vm1, %v5236_v15, %v5228_v14  ;;  %v5240_v42 = vrot.slane %v5231_v22, 5  ;;  %v5194_v43 = vld [vmem:[#allocation5 + $0x7c] sm:$0x1] }
 0x901   :  { %6449 = vmatpush3.bf16.msra.mxu1 %v7014_v44  ;;  %6464 = vmatprep.mubr.msk.bf16.mxu1 %vm7059_vm0, %v7058_v38  ;;  %v4940_v44 = vrot.slane %v4927_v62, 1  ;;  %v5384_v62 = vunpack.c.l.b16 %v5351_v20  ;;  %v5382_v3 = vunpack.c.l.b16 %v5349_v53  ;;  %v7040_v14 = vld [vmem:[#allocation2 + $0x350] sm:$0xff]   ;;  %v5389_v15 = vunpack.c.l.b16 %v5356_v59 }
 0x902   :  { %6450 = vmatprep.subr.bf16.mxu1 %v7058_v38 }
 0x903   :  { %6431 = vmatpush3.bf16.msra.mxu0 %v7015_v36  ;;  %v7022_v36 = vld [vmem:[#allocation2 + $0x2d8] sm:$0xff]   ;;  %v4941_v47 = vsel %vm3435_vm7, %v4940_v44, %v4939_v32  ;;  %v7034_v44 = vld [vmem:[#allocation2 + $0x368] sm:$0xff]   ;;  %v5385_v32 = vunpack.c.l.b16 %v5352_v5  ;;  %v5402_v22 = vrot.slane %v5389_v15, 1 }
 0x904   :  { %6432 = vmatprep.subr.bf16.mxu0 %v7058_v38 }
 0x905   :  { %6451 = vmatpush3.bf16.msra.mxu1 %v7016_v6  ;;  %v4942_v6 = vpack.c.b16 %v4941_v47, %v4941_v47  ;;  %v5354_v47 = vpack.c.bf16 %v5346_v25, %v5346_v25 }
 0x906   :  { %6452 = vmatprep.subr.bf16.mxu1 %v7058_v38 }
 0x907   :  { %6433 = vmatpush3.bf16.msra.mxu0 %v7017_v30  ;;  %v5091_v30 = vsel %vm3429_vm5, %v5090_v31, %v5089_v34 }
 0x908   :  { %6434 = vmatprep.subr.bf16.mxu0 %v7058_v38  ;;  %v5093_v7 = vsel %vm3432_vm6, %v5092_v27, %v5091_v30  ;;  %v5202_v27 = vpack.c.bf16 %v5194_v43, %v5194_v43 }
 0x909   :  { %6453 = vmatpush3.bf16.msra.mxu1 %v7018_v45  ;;  %v5230_v45 = vunpack.c.l.b16 %v5197_v35  ;;  %v7039_v35 = vld [vmem:[#allocation2 + $0x310] sm:$0xff]  }
 0x90a   :  { %6454 = vmatprep.subr.bf16.mxu1 %v7058_v38  ;;  %v5235_v40 = vunpack.c.l.b16 %v5202_v27  ;;  %v7047_v27 = vld [vmem:[#allocation3 + $0x28] sm:$0xff]  }
 0x90b   :  { %6435 = vmatpush3.bf16.msra.mxu0 %v7019_v12  ;;  %v5095_v12 = vsel %vm3435_vm7, %v5094_v1, %v5093_v7 }
 0x90c   :  { %6436 = vmatprep.subr.bf16.mxu0 %v7058_v38  ;;  %v5096_v46 = vpack.c.b16 %v5095_v12, %v5095_v12 }
 0x90d   :  { %6455 = vmatpush3.bf16.msra.mxu1 %v7020_v50  ;;  %v5238_v50 = vrot.slane %v5230_v45, 6 }
 0x90e   :  { %6456 = vmatprep.subr.bf16.mxu1 %v7058_v38 }
 0x90f   :  { %6437 = vmatpush3.bf16.msra.mxu0 %v7021_v16  ;;  %v5192_v16 = vld [vmem:[#allocation5 + $0x5c] sm:$0x1]  ;;  %v5239_v26 = vsel %vm3420_vm2, %v5238_v50, %v5237_v41  ;;  %v7044_v50 = vld [vmem:[#allocation2 + $0x340] sm:$0xff]  }
 0x910   :  { %6438 = vmatprep.subr.bf16.mxu0 %v7058_v38  ;;  %v5200_v55 = vpack.c.bf16 %v5192_v16, %v5192_v16  ;;  %v5241_v39 = vsel %vm3423_vm3, %v5240_v42, %v5239_v26 }
 0x911   :  { %6457 = vmatpush3.bf16.msra.mxu1 %v7022_v36  ;;  %v5390_v36 = vrot.slane %v5383_v24, 7 }
 0x912   :  { %6458 = vmatprep.subr.bf16.mxu1 %v7058_v38  ;;  %v5233_v31 = vunpack.c.l.b16 %v5200_v55 }
 0x913   :  { %6439 = vmatpush3.bf16.msra.mxu0 %v7023_v23  ;;  %v5232_v23 = vunpack.c.l.b16 %v5199_v17  ;;  %v5391_v30 = vsel %vm3417_vm1, %v5390_v36, %v5382_v3  ;;  %v7043_v17 = vld [vmem:[#allocation2 + $0x300] sm:$0xff]  }
 0x914   :  { %6440 = vmatprep.subr.bf16.mxu0 %v7058_v38  ;;  %v5244_v4 = vrot.slane %v5233_v31, 3 }
 0x915   :  { %6459 = vmatpush3.bf16.msra.mxu1 %v7024_v18  ;;  %v5242_v34 = vrot.slane %v5232_v23, 4  ;;  %v5392_v18 = vrot.slane %v5384_v62, 6 }
 0x916   :  { %6460 = vmatprep.subr.bf16.mxu1 %v7058_v38 }
 0x917   :  { %6441 = vmatpush3.bf16.msra.mxu0 %v7025_v28  ;;  %v5353_v28 = vpack.c.bf16 %v5345_v19, %v5345_v19  ;;  %v5243_v7 = vsel %vm3426_vm4, %v5242_v34, %v5241_v39  ;;  %v5393_v9 = vsel %vm3420_vm2, %v5392_v18, %v5391_v30  ;;  %v7045_v18 = vld [vmem:[#allocation3 + $0x38] sm:$0xff]   ;;  %v7048_v39 = vld [vmem:[#allocation3 + $0x20] sm:$0xff]  }
 0x918   :  { %6442 = vmatprep.subr.bf16.mxu0 %v7058_v38 }
 0x919   :  { %6461 = vmatpush3.bf16.msra.mxu1 %v7026_v63  ;;  %v5234_v63 = vunpack.c.l.b16 %v5201_v57  ;;  %v5386_v1 = vunpack.c.l.b16 %v5353_v28 }
 0x91a   :  { %6462 = vmatprep.subr.bf16.mxu1 %v7058_v38 }
 0x91b   :  { %6443 = vmatpush3.bf16.msra.mxu0 %v7027_v49  ;;  %v5347_v49 = vld [vmem:[#allocation5 + $0x6d] sm:$0x1]  ;;  %v5246_v12 = vrot.slane %v5234_v63, 2  ;;  %v5396_v60 = vrot.slane %v5386_v1, 4 }
 0x91c   :  { %6468 = vmatprep.subr.bf16.mxu0 %v7058_v38 }
 0x91d   :  { %6463 = vmatpush3.bf16.msra.mxu1 %v7028_v10  ;;  %v5387_v10 = vunpack.c.l.b16 %v5354_v47 }
 0x91e   :  { %6445 = vmatmul.mubr.bf16.vlgmr.msra.gmra.mxu0 %v4942_v6  ;;  %6488 = vmatprep.subr.bf16.mxu1 %v7058_v38  ;;  %v5394_v6 = vrot.slane %v5385_v32, 5 }
 0x91f   :  { %6469 = vmatpush3.bf16.msra.mxu0 %v7029_v29  ;;  %6484 = vmatprep.mubr.msk.bf16.mxu0 %vm7059_vm0, %v7058_v38  ;;  %v5355_v29 = vpack.c.bf16 %v5347_v49, %v5347_v49  ;;  %v5398_v45 = vrot.slane %v5387_v10, 3  ;;  %v7049_v49 = vld [vmem:[#allocation3 + $0x18] sm:$0xff]  }
 0x920   :  { %6470 = vmatprep.subr.bf16.mxu0 %v7058_v38  ;;  %6465 = vmatmul.mubr.bf16.vlgmr.msra.gmra.mxu1 %v5096_v46  ;;  %v5395_v33 = vsel %vm3423_vm3, %v5394_v6, %v5393_v9  ;;  %v5248_v46 = vrot.slane %v5235_v40, 1  ;;  %v7052_v40 = vld [vmem:[#allocation3] sm:$0xff]  }
 0x921   :  { %6489 = vmatpush3.bf16.msra.mxu1 %v7030_v48  ;;  %6504 = vmatprep.mubr.msk.bf16.mxu1 %vm7059_vm0, %v7058_v38  ;;  %v5388_v11 = vunpack.c.l.b16 %v5355_v29  ;;  %v5397_v48 = vsel %vm3426_vm4, %v5396_v60, %v5395_v33  ;;  %v7051_v29 = vld [vmem:[#allocation3 + $0x8] sm:$0xff]  }
 0x922   :  { %6490 = vmatprep.subr.bf16.mxu1 %v7058_v38  ;;  %v5399_v20 = vsel %vm3429_vm5, %v5398_v45, %v5397_v48 }
 0x923   :  { %6471 = vmatpush3.bf16.msra.mxu0 %v7031_v61  ;;  %v5245_v61 = vsel %vm3429_vm5, %v5244_v4, %v5243_v7  ;;  %v5400_v16 = vrot.slane %v5388_v11, 2 }
 0x924   :  { %6472 = vmatprep.subr.bf16.mxu0 %v7058_v38  ;;  %v5247_v13 = vsel %vm3432_vm6, %v5246_v12, %v5245_v61 }
 0x925   :  { %6491 = vmatpush3.bf16.msra.mxu1 %v7032_v56  ;;  %v5249_v51 = vsel %vm3435_vm7, %v5248_v46, %v5247_v13  ;;  %v5401_v24 = vsel %vm3432_vm6, %v5400_v16, %v5399_v20 }
 0x926   :  { %6492 = vmatprep.subr.bf16.mxu1 %v7058_v38  ;;  %v5250_v53 = vpack.c.b16 %v5249_v51, %v5249_v51  ;;  %v5403_v56 = vsel %vm3435_vm7, %v5402_v22, %v5401_v24 }
 0x927   :  { %6473 = vmatpush3.bf16.msra.mxu0 %v7033_v21  ;;  %v7042_v21 = vld [vmem:[#allocation2 + $0x348] sm:$0xff]   ;;  %v5404_v55 = vpack.c.b16 %v5403_v56, %v5403_v56 }
 0x928   :  { %6474 = vmatprep.subr.bf16.mxu0 %v7058_v38 }
 0x929   :  { %6493 = vmatpush3.bf16.msra.mxu1 %v7034_v44 }
 0x92a   :  { %6494 = vmatprep.subr.bf16.mxu1 %v7058_v38 }
 0x92b   :  { %6475 = vmatpush3.bf16.msra.mxu0 %v7035_v54 }
 0x92c   :  { %6476 = vmatprep.subr.bf16.mxu0 %v7058_v38 }
 0x92d   :  { %6495 = vmatpush3.bf16.msra.mxu1 %v7036_v58  ;;  %v7050_v58 = vld [vmem:[#allocation3 + $0x10] sm:$0xff]  }
 0x92e   :  { %6496 = vmatprep.subr.bf16.mxu1 %v7058_v38 }
 0x92f   :  { %6477 = vmatpush3.bf16.msra.mxu0 %v7037_v37  ;;  %v7046_v37 = vld [vmem:[#allocation3 + $0x30] sm:$0xff]  }
 0x930   :  { %6478 = vmatprep.subr.bf16.mxu0 %v7058_v38 }
 0x931   :  { %6497 = vmatpush3.bf16.msra.mxu1 %v7038_v0 }
 0x932   :  { %6498 = vmatprep.subr.bf16.mxu1 %v7058_v38 }
 0x933   :  { %6479 = vmatpush3.bf16.msra.mxu0 %v7039_v35 }
 0x934   :  { %6480 = vmatprep.subr.bf16.mxu0 %v7058_v38 }
 0x935   :  { %6499 = vmatpush3.bf16.msra.mxu1 %v7040_v14 }
 0x936   :  { %6500 = vmatprep.subr.bf16.mxu1 %v7058_v38 }
 0x937   :  { %6481 = vmatpush3.bf16.msra.mxu0 %v7041_v2 }
 0x938   :  { %6482 = vmatprep.subr.bf16.mxu0 %v7058_v38 }
 0x939   :  { %6501 = vmatpush3.bf16.msra.mxu1 %v7042_v21 }
 0x93a   :  { %6502 = vmatprep.subr.bf16.mxu1 %v7058_v38 }
 0x93b   :  { %6483 = vmatpush3.bf16.msra.mxu0 %v7043_v17 }
 0x93c   :  { %6508 = vmatprep.subr.bf16.mxu0 %v7058_v38 }
 0x93d   :  { %6503 = vmatpush3.bf16.msra.mxu1 %v7044_v50 }
 0x93e   :  { %v3521_v52 = vpop.f32.mrf.mxu0  ;;  %6485 = vmatmul.mubr.bf16.vlgmr.msra.gmra.mxu0 %v5250_v53  ;;  %v3641_v5 = vpop.f32.mrf.mxu1 }
 0x93f   :  { %6524 = vmatprep.mubr.msk.bf16.mxu0 %vm7059_vm0, %v7058_v38  ;;  %v3642_v62 = vadd.f32 %v3641_v5, %v3521_v52  ;;  %6509 = vmatpush3.bf16.msra.mxu0 %v7045_v18 }
 0x940   :  { %v6246_v41 = vpop.f32.mrf.mxu0  ;;  %6505 = vmatmul.mubr.bf16.vlgmr.msra.gmra.mxu1 %v5404_v55  ;;  %v6266_v54 = vpop.f32.mrf.mxu1  ;;  %6510 = vmatprep.subr.bf16.mxu0 %v7058_v38 }
 0x942   :  { %v3524_v19 = vpop.f32.mrf.mxu0  ;;  %v3644_v42 = vpop.f32.mrf.mxu1 }
 0x943   :  { %6511 = vmatpush3.bf16.msra.mxu0 %v7046_v37 }
 0x944   :  { %v6247_v23 = vpop.f32.mrf.mxu0  ;;  %v6267_v3 = vpop.f32.mrf.mxu1  ;;  %6512 = vmatprep.subr.bf16.mxu0 %v7058_v38 }
 0x945   :  { %v6081_v3 = vld [vmem:[%s8736_s4] ss:$0 sm:$0xff] }
 0x947   :  { %6513 = vmatpush3.bf16.msra.mxu0 %v7047_v27 }
 0x948   :  { %6514 = vmatprep.subr.bf16.mxu0 %v7058_v38 }
 0x94b   :  { %6515 = vmatpush3.bf16.msra.mxu0 %v7048_v39 }
 0x94c   :  { %6516 = vmatprep.subr.bf16.mxu0 %v7058_v38 }
 0x94f   :  { %6517 = vmatpush3.bf16.msra.mxu0 %v7049_v49 }
 0x950   :  { %6518 = vmatprep.subr.bf16.mxu0 %v7058_v38 }
 0x953   :  { %6519 = vmatpush3.bf16.msra.mxu0 %v7050_v58 }
 0x954   :  { %6520 = vmatprep.subr.bf16.mxu0 %v7058_v38 }
 0x957   :  { %6521 = vmatpush3.bf16.msra.mxu0 %v7051_v29 }
 0x958   :  { %6522 = vmatprep.subr.bf16.mxu0 %v7058_v38 }
 0x95b   :  { %6523 = vmatpush3.bf16.msra.mxu0 %v7052_v40 }
 0x95e   :  { %v3794_v36 = vpop.f32.mrf.mxu0 }
 0x95f   :  { %v3800_v43 = vadd.f32 %v3794_v36, %v3642_v62 }
 0x960   :  { %v6286_v57 = vpop.f32.mrf.mxu0  ;;  %v3948_v25 = vpop.f32.mrf.mxu1 }
 0x961   :  { %v3954_v44 = vadd.f32 %v3948_v25, %v3800_v43 }
 0x962   :  { %v3797_v26 = vpop.f32.mrf.mxu0  ;;  %v6306_v31 = vpop.f32.mrf.mxu1 }
 0x964   :  { %v6287_v28 = vpop.f32.mrf.mxu0  ;;  %v3951_v32 = vpop.f32.mrf.mxu1 }
 0x965   :  { %v6082_v32 = vld [vmem:[%s8737_s5] ss:$0 sm:$0xff] }
 0x966   :  { %v6307_v34 = vpop.f32.mrf.mxu1 }
 0x97e   :  { %v4102_v47 = vpop.f32.mrf.mxu0 }
 0x97f   :  { %v4108_v30 = vadd.f32 %v4102_v47, %v3954_v44 }
 0x980   :  { %v6326_v63 = vpop.f32.mrf.mxu0  ;;  %v4256_v4 = vpop.f32.mrf.mxu1 }
 0x981   :  { %v4262_v7 = vadd.f32 %v4256_v4, %v4108_v30 }
 0x982   :  { %v4105_v1 = vpop.f32.mrf.mxu0  ;;  %v6346_v8 = vpop.f32.mrf.mxu1 }
 0x984   :  { %v6327_v6 = vpop.f32.mrf.mxu0  ;;  %v4259_v9 = vpop.f32.mrf.mxu1 }
 0x986   :  { %v6347_v35 = vpop.f32.mrf.mxu1 }
 0x99e   :  { %v4410_v10 = vpop.f32.mrf.mxu0 }
 0x99f   :  { %v4416_v12 = vadd.f32 %v4410_v10, %v4262_v7 }
 0x9a0   :  { %v6366_v60 = vpop.f32.mrf.mxu0  ;;  %v4564_v61 = vpop.f32.mrf.mxu1 }
 0x9a1   :  { %v4570_v33 = vadd.f32 %v4564_v61, %v4416_v12 }
 0x9a2   :  { %v4413_v0 = vpop.f32.mrf.mxu0  ;;  %v6386_v11 = vpop.f32.mrf.mxu1 }
 0x9a4   :  { %v6367_v59 = vpop.f32.mrf.mxu0  ;;  %v4567_v2 = vpop.f32.mrf.mxu1 }
 0x9a6   :  { %v6387_v46 = vpop.f32.mrf.mxu1 }
 0x9be   :  { %v4718_v45 = vpop.f32.mrf.mxu0 }
 0x9bf   :  { %v4724_v52 = vadd.f32 %v4718_v45, %v4570_v33 }
 0x9c0   :  { %v6406_v13 = vpop.f32.mrf.mxu0  ;;  %v4872_v14 = vpop.f32.mrf.mxu1 }
 0x9c1   :  { %v4878_v55 = vadd.f32 %v4872_v14, %v4724_v52 }
 0x9c2   :  { %v4721_v48 = vpop.f32.mrf.mxu0  ;;  %v6426_v16 = vpop.f32.mrf.mxu1 }
 0x9c4   :  { %v6407_v15 = vpop.f32.mrf.mxu0  ;;  %v4875_v38 = vpop.f32.mrf.mxu1 }
 0x9c6   :  { %v6427_v17 = vpop.f32.mrf.mxu1 }
 0x9de   :  { %v5026_v51 = vpop.f32.mrf.mxu0 }
 0x9df   :  { %v5032_v41 = vadd.f32 %v5026_v51, %v4878_v55 }
 0x9e0   :  { %v6446_v20 = vpop.f32.mrf.mxu0  ;;  %v5180_v22 = vpop.f32.mrf.mxu1 }
 0x9e1   :  { %v5186_v5 = vadd.f32 %v5180_v22, %v5032_v41 }
 0x9e2   :  { %v5029_v21 = vpop.f32.mrf.mxu0  ;;  %v6466_v24 = vpop.f32.mrf.mxu1 }
 0x9e4   :  { %v6447_v53 = vpop.f32.mrf.mxu0  ;;  %v5183_v50 = vpop.f32.mrf.mxu1 }
 0x9e6   :  { %v6467_v56 = vpop.f32.mrf.mxu1 }
 0x9fe   :  { %v5334_v19 = vpop.f32.mrf.mxu0 }
 0x9ff   :  { %v5340_v62 = vadd.f32 %v5334_v19, %v5186_v5 }
 0xa00   :  { %v6486_v23 = vpop.f32.mrf.mxu0  ;;  %v5488_v42 = vpop.f32.mrf.mxu1 }
 0xa01   :  { %v5494_v43 = vadd.f32 %v5488_v42, %v5340_v62 }
 0xa02   :  { %v5337_v54 = vpop.f32.mrf.mxu0  ;;  %v6506_v57 = vpop.f32.mrf.mxu1 }
 0xa03   :  { %v5502_v26 = vadd.f32 %v6081_v3, %v5494_v43 }
 0xa04   :  { %v6487_v36 = vpop.f32.mrf.mxu0  ;;  %v5491_v25 = vpop.f32.mrf.mxu1 }
 0xa05   :  { %v5503_v28 = vmax.f32 %v5502_v26, 0.0 }
 0xa06   :  { %v6507_v44 = vpop.f32.mrf.mxu1 }
 0xa07   :  { %v5504_v31 = vpack.c.bf16 %v5503_v28, %v5503_v28 }
 0xa09   :  { %6525 = vmatmul.mubr.bf16.vlgmr.msra.gmra.mxu0 %v5504_v31 }
 0xac9   :  { %v5610_v34 = vpop.f32.mrf.mxu0 }
 0xaca   :  { %v5611_v18 = vadd.f32 %v6082_v32, %v5610_v34 }
 0xacb   :  { %v6526_v37 = vpop.f32.mrf.mxu0 }
 0xacc   :  { %v5616_v27 = vmax.f32 %v5611_v18, 0.0 }
 0xacd   :  { %v5613_v39 = vpop.f32.mrf.mxu0 }
 0xace   :  { %5617 = vst [vmem:[%s8740_s8] sm:$0xff] %v5616_v27 }
 0xacf   :  { %v6527_v49 = vpop.f32.mrf.mxu0 }
 0xad0   :  { %5622 = vsyncmov [#allocation4] }
 0xad3   :  { %s5623_s25 = vpop.sfrf %5622 }
 0xad4   :  { %p6091_p0 = scmp.ne.s32.totalorder %s5623_s25, 0 }
 0xad6   :  { %5627 = shalt.err (%p6091_p0)  }
 0xad7   :  { %5629 = vsyncmov [#allocation4 + $0x1] }
 0xada   :  { %s5630_s26 = vpop.sfrf %5629 }
 0xadb   :  { %p6092_p1 = scmp.ne.s32.totalorder %s5630_s26, 0 }
 0xadd   :  { %5634 = shalt.err (%p6092_p1)  }

</bundles_post_ra>
